<compile_context>
chip_gen: v6e
topology: v6e:2x2x1
jax: 0.10.0
libtpu: 0.0.40
codegen_flags: <defaults>
</compile_context>

<pallas_src>
import math
import functools

import numpy as np
import jax
import jax.numpy as jnp
from jax import lax
from jax.experimental import pallas as pl
from jax.experimental.pallas import tpu as pltpu

_PAD = 8  # leading rows of the conv scratch (>= d_conv - 1, sublane aligned)


def _silu(x):
    return x * jax.nn.sigmoid(x)


def _softplus(x):
    # numerically stable softplus, used identically in kernel and reference
    return jnp.log1p(jnp.exp(-jnp.abs(x))) + jnp.maximum(x, 0.0)


def _round_up(x, m):
    return ((x + m - 1) // m) * m


def mamba_kernel(d_inner, d_state, d_conv, chunk, d_block,
                 # inputs
                 h_ref, w_in_x_ref, w_in_z_ref, conv_w_ref, conv_b_ref,
                 w_xp_ref, w_dt_pad_ref, dt_bias_ref, neg_a_ref, d_par_ref,
                 w_out_ref,
                 # output
                 out_ref,
                 # scratch
                 z_ref, delta_ref, xdbl_ref, state_ref, xpad_ref, tail_ref):
    f32 = jnp.float32
    bf16 = jnp.bfloat16
    l_tile = delta_ref.shape[0]
    tail = d_conv - 1
    lt = pl.program_id(1)

    # ---- carried state (SSM state + raw conv tail live across L-tiles). ----
    # Relies on the L grid axis being innermost & strictly sequential per batch
    # element ("arbitrary") and on scratch persisting across grid steps.
    @pl.when(lt == 0)
    def _():
        state_ref[...] = jnp.zeros_like(state_ref)
        xpad_ref[0:_PAD, :] = jnp.zeros((_PAD, d_inner), f32)

    @pl.when(lt > 0)
    def _():
        xpad_ref[_PAD - tail:_PAD, :] = tail_ref[0:tail, :]

    # ---- in_proj (bf16 MXU operands, f32 accumulation); pre-split x / z halves ----
    h_bf = h_ref[0].astype(bf16)                                     # (Lt, d_model)
    x_in = jnp.dot(h_bf, w_in_x_ref[...], preferred_element_type=f32)
    z_ref[...] = jnp.dot(h_bf, w_in_z_ref[...],
                         preferred_element_type=f32).astype(bf16)    # gate, bf16

    # ---- causal depthwise conv1d, in place in the padded slab (no concat) ----
    xpad_ref[pl.ds(_PAD, l_tile), :] = x_in
    # save the raw tail for the next tile BEFORE overwriting with silu(conv)
    tail_ref[0:tail, :] = xpad_ref[pl.ds(_PAD + l_tile - tail, tail), :]
    acc = conv_b_ref[...]                                            # (1, d_inner)
    for k in range(d_conv):                                          # static taps
        acc = acc + (xpad_ref[pl.ds(_PAD - tail + k, l_tile), :]
                     * conv_w_ref[k:k + 1, :])
    x_act = _silu(acc)
    xpad_ref[pl.ds(_PAD, l_tile), :] = x_act                         # overwrite raw x

    # ---- fused x_proj: one lane-dense matmul -> [B | C | dt_low | 0] ----
    x_bf = x_act.astype(bf16)
    xdbl = jnp.dot(x_bf, w_xp_ref[...], preferred_element_type=f32)  # (Lt, 128k)
    xdbl_ref[...] = xdbl
    # factored (un-folded) dt_proj second stage: only dt_rank rows are non-zero,
    # B/C lanes contract against exact zeros.
    delta_ref[...] = _softplus(
        jnp.dot(xdbl.astype(bf16), w_dt_pad_ref[...], preferred_element_type=f32)
        + dt_bias_ref[...])

    # ---- selective scan: d_inner blocks outer, chunks of timesteps inner ----
    n_chunks = l_tile // chunk
    n_dblk = d_inner // d_block
    for db in range(n_dblk):                                         # static
        d0 = db * d_block
        neg_a_blk = neg_a_ref[:, d0:d0 + d_block]                    # (N, Dt)
        d_par_blk = d_par_ref[:, d0:d0 + d_block]                    # (1, Dt)

        def chunk_body(c, st):
            t0 = pl.multiple_of(c * chunk, chunk)
            d_chunk = delta_ref[pl.ds(t0, chunk), d0:d0 + d_block]   # (T, Dt)
            x_chunk = xpad_ref[pl.ds(_PAD + t0, chunk), d0:d0 + d_block]
            gate = _silu(z_ref[pl.ds(t0, chunk), d0:d0 + d_block].astype(f32))
            skip = x_chunk * d_par_blk
            dx = d_chunk * x_chunk
            bcT = xdbl_ref[pl.ds(t0, chunk), 0:2 * d_state].T        # (2N, T)
            # all chunk*d_state*d_block exps issued as ONE batched EUP stream
            dA_all = jnp.exp(jnp.concatenate(
                [d_chunk[t:t + 1, :] * neg_a_blk for t in range(chunk)], axis=0))
            for t in range(chunk):      # serial recurrence: VPU mul-add + reduce only
                dBx = bcT[0:d_state, t:t + 1] * dx[t:t + 1, :]       # outer product
                st = st * dA_all[t * d_state:(t + 1) * d_state, :] + dBx
                y_row = jnp.sum(bcT[d_state:2 * d_state, t:t + 1] * st,
                                axis=0, keepdims=True)               # (1, Dt)
                # fused epilogue, row written straight into the destination slab
                y_row = (y_row + skip[t:t + 1, :]) * gate[t:t + 1, :]
                xpad_ref[pl.ds(_PAD + t0 + t, 1), d0:d0 + d_block] = y_row
            return st

        # state slice stays vreg-resident across the tile; one load + one store
        state_ref[:, d0:d0 + d_block] = lax.fori_loop(
            0, n_chunks, chunk_body, state_ref[:, d0:d0 + d_block])

    # ---- out_proj (bf16 MXU, f32 accumulation); self.had is identity ----
    out_ref[0] = jnp.dot(xpad_ref[pl.ds(_PAD, l_tile), :].astype(bf16),
                         w_out_ref[...], preferred_element_type=f32)


def prepare_mamba_params(w_in, conv_wT, conv_b, w_x, w_dt, dt_bias, a_log, d_skip,
                         w_out, *, d_state, dt_rank):
    """One-time, wrapper-side conversion of module-style weights to kernel layout."""
    bf16, f32 = jnp.bfloat16, jnp.float32
    d_inner = w_dt.shape[1]
    xproj_out = _round_up(2 * d_state + dt_rank, 128)
    # fused x_proj weight, output-column layout [B | C | dt_low | zero pad]
    w_xp = jnp.zeros((d_inner, xproj_out), f32)
    w_xp = w_xp.at[:, 0:d_state].set(w_x[:, dt_rank:dt_rank + d_state])
    w_xp = w_xp.at[:, d_state:2 * d_state].set(
        w_x[:, dt_rank + d_state:dt_rank + 2 * d_state])
    w_xp = w_xp.at[:, 2 * d_state:2 * d_state + dt_rank].set(w_x[:, 0:dt_rank])
    # dt_proj second stage, padded so it contracts the full fused x_proj output
    w_dt_pad = jnp.zeros((xproj_out, d_inner), f32)
    w_dt_pad = w_dt_pad.at[2 * d_state:2 * d_state + dt_rank, :].set(w_dt)
    return dict(
        w_in_x=w_in[:, :d_inner].astype(bf16),          # in_proj, x half
        w_in_z=w_in[:, d_inner:].astype(bf16),          # in_proj, z half
        conv_w=conv_wT.astype(f32),                     # (d_conv, d_inner)
        conv_b=conv_b.astype(f32),
        w_xp=w_xp.astype(bf16),                         # fused, lane-padded x_proj
        w_dt_pad=w_dt_pad.astype(bf16),                 # factored dt_proj (padded K)
        dt_bias=dt_bias.astype(f32),
        neg_aT=(-jnp.exp(a_log)).T.astype(f32),         # hoisted -exp(A_log), (N, D)
        D=d_skip.astype(f32),
        w_out=w_out.astype(bf16),
    )


def _vmem_budget_bytes(params, l_tile, d_model, d_inner, d_state, xproj_out, wb):
    weight_bytes = sum(int(np.prod(v.shape)) * v.dtype.itemsize
                       for v in params.values()) * wb
    scratch_bytes = (l_tile * d_inner * 2          # z gate (bf16)
                     + l_tile * d_inner * 4        # delta
                     + l_tile * xproj_out * 4      # x_dbl slab
                     + d_state * d_inner * 4       # SSM state carry
                     + (_PAD + l_tile) * d_inner * 4   # conv / y slab
                     + 8 * d_inner * 4)            # raw conv tail
    io_bytes = 2 * 2 * l_tile * d_model * 4        # double-buffered in/out tiles
    total = weight_bytes + scratch_bytes + io_bytes
    return int(min(100 * 2 ** 20, max(32 * 2 ** 20, int(total * 1.5))))


def mamba_pallas(hidden, params, *, l_tile=None, chunk=8, d_block=None,
                 weight_buffers=1):
    Bsz, L, d_model = hidden.shape
    d_inner = params['w_in_x'].shape[1]
    d_state = params['neg_aT'].shape[0]
    d_conv = params['conv_w'].shape[0]
    xproj_out = params['w_xp'].shape[1]

    if l_tile is None:
        l_tile = min(L, 256)
    if d_block is None:
        d_block = d_inner
    assert L % l_tile == 0, "L must be a multiple of l_tile"
    assert l_tile % chunk == 0 and l_tile % 8 == 0 and chunk % 8 == 0
    assert d_conv - 1 <= _PAD
    assert d_state % 8 == 0
    assert d_inner % d_block == 0 and (d_block == d_inner or d_block % 128 == 0)

    kern = functools.partial(mamba_kernel, d_inner, d_state, d_conv, chunk, d_block)

    def wspec(arr):
        idx = lambda b, t: (0,) * arr.ndim
        if weight_buffers is None:
            return pl.BlockSpec(arr.shape, idx)
        # constant-index weights: single-buffer to halve resident weight VMEM (v7x)
        return pl.BlockSpec(arr.shape, idx,
                            pipeline_mode=pl.Buffered(weight_buffers))

    vmem_limit = _vmem_budget_bytes(params, l_tile, d_model, d_inner, d_state,
                                    xproj_out, weight_buffers or 2)

    return pl.pallas_call(
        kern,
        out_shape=jax.ShapeDtypeStruct((Bsz, L, d_model), jnp.float32),
        grid_spec=pltpu.PrefetchScalarGridSpec(
            num_scalar_prefetch=0,
            grid=(Bsz, L // l_tile),
            in_specs=[
                pl.BlockSpec((1, l_tile, d_model), lambda b, t: (b, t, 0)),
                wspec(params['w_in_x']), wspec(params['w_in_z']),
                wspec(params['conv_w']), wspec(params['conv_b']),
                wspec(params['w_xp']), wspec(params['w_dt_pad']),
                wspec(params['dt_bias']), wspec(params['neg_aT']),
                wspec(params['D']), wspec(params['w_out']),
            ],
            out_specs=pl.BlockSpec((1, l_tile, d_model), lambda b, t: (b, t, 0)),
            scratch_shapes=[
                pltpu.VMEM((l_tile, d_inner), jnp.bfloat16),          # z gate
                pltpu.VMEM((l_tile, d_inner), jnp.float32),           # delta
                pltpu.VMEM((l_tile, xproj_out), jnp.float32),         # x_dbl [B|C|dt]
                pltpu.VMEM((d_state, d_inner), jnp.float32),          # SSM state
                pltpu.VMEM((_PAD + l_tile, d_inner), jnp.float32),    # conv/x_act/y
                pltpu.VMEM((8, d_inner), jnp.float32),                # raw conv tail
            ],
        ),
        compiler_params=pltpu.CompilerParams(
            dimension_semantics=("parallel", "arbitrary"),
            vmem_limit_bytes=vmem_limit),
    )(hidden, params['w_in_x'], params['w_in_z'], params['conv_w'],
      params['conv_b'], params['w_xp'], params['w_dt_pad'], params['dt_bias'],
      params['neg_aT'], params['D'], params['w_out'])


def mamba_ref(hidden, params, d_conv, d_state):
    """Pure-JAX reference with the module's forward semantics (factored dt_proj)
    and the same precision policy as the kernel (bf16 matmul operands with f32
    accumulation, bf16-stored z gate, f32 conv / scan / epilogue)."""
    f32, bf16 = jnp.float32, jnp.bfloat16
    Bsz, L, _ = hidden.shape

    h_bf = hidden.astype(bf16)
    x = jnp.dot(h_bf, params['w_in_x'], preferred_element_type=f32)
    z = jnp.dot(h_bf, params['w_in_z'], preferred_element_type=f32)
    z = z.astype(bf16).astype(f32)     # kernel stores the gate in bf16

    xp = jnp.pad(x, ((0, 0), (d_conv - 1, 0), (0, 0)))
    acc = params['conv_b'][None]
    for k in range(d_conv):
        acc = acc + xp[:, k:k + L, :] * params['conv_w'][k][None, None, :]
    xa = _silu(acc)

    xdbl = jnp.dot(xa.astype(bf16), params['w_xp'], preferred_element_type=f32)
    Bm = xdbl[..., 0:d_state]
    Cm = xdbl[..., d_state:2 * d_state]
    delta = _softplus(jnp.dot(xdbl.astype(bf16), params['w_dt_pad'],
                              preferred_element_type=f32) + params['dt_bias'][None])

    A = params['neg_aT'].T                                    # (d_inner, d_state)

    def step(state, inp):
        d_t, x_t, b_t, c_t = inp
        dA = jnp.exp(d_t[:, :, None] * A[None])
        dBx = (d_t * x_t)[:, :, None] * b_t[:, None, :]
        state = state * dA + dBx
        y_t = jnp.einsum('bdn,bn->bd', state, c_t)
        return state, y_t

    init = jnp.zeros((Bsz, xa.shape[-1], d_state), f32)
    _, ys = lax.scan(step, init, (delta.transpose(1, 0, 2), xa.transpose(1, 0, 2),
                                  Bm.transpose(1, 0, 2), Cm.transpose(1, 0, 2)))
    y = ys.transpose(1, 0, 2)
    y = (y + xa * params['D'][None]) * _silu(z)
    return jnp.dot(y.astype(bf16), params['w_out'], preferred_element_type=f32)


if __name__ == "__main__":
    # Small shapes consistent with the module: d_model=32, expand=2 (d_inner=64),
    # d_state=16, d_conv=4, dt_rank=ceil(32/16)=2, batch=2, seqlen=32.
    # L=32 with l_tile=16 and chunk=8 exercises both L-tile carries (state + conv
    # tail) and multiple scan chunks per tile.
    d_model, expand, d_state, d_conv = 32, 2, 16, 4
    d_inner = expand * d_model
    dt_rank = math.ceil(d_model / 16)
    Bsz, L = 2, 32

    key = jax.random.PRNGKey(0)
    ks = jax.random.split(key, 8)
    # module-style parameters (nn.Linear weights pre-transposed to (in, out))
    w_in = jax.random.normal(ks[0], (d_model, 2 * d_inner), jnp.float32) / math.sqrt(d_model)
    conv_wT = jax.random.normal(ks[1], (d_conv, d_inner), jnp.float32) * 0.2
    conv_b = jax.random.normal(ks[2], (1, d_inner), jnp.float32) * 0.1
    w_x = jax.random.normal(ks[3], (d_inner, dt_rank + 2 * d_state), jnp.float32) / math.sqrt(d_inner)
    w_dt = jax.random.normal(ks[4], (dt_rank, d_inner), jnp.float32) / math.sqrt(dt_rank)
    dt_bias = jax.random.normal(ks[5], (1, d_inner), jnp.float32) * 0.1
    # A_log[d, n] = log(n+1) as in Mamba (module layout (d_inner, d_state))
    a_log = jnp.broadcast_to(
        jnp.log(jnp.arange(1, d_state + 1, dtype=jnp.float32))[None, :],
        (d_inner, d_state))
    d_skip = jnp.ones((1, d_inner), jnp.float32)
    w_out = jax.random.normal(ks[6], (d_inner, d_model), jnp.float32) / math.sqrt(d_inner)
    hidden = jax.random.normal(ks[7], (Bsz, L, d_model), jnp.float32)

    params = prepare_mamba_params(w_in, conv_wT, conv_b, w_x, w_dt, dt_bias,
                                  a_log, d_skip, w_out,
                                  d_state=d_state, dt_rank=dt_rank)

    try:
        out = jax.block_until_ready(
            mamba_pallas(hidden, params, l_tile=16, chunk=8, weight_buffers=1))
    except Exception:
        # pipeline_mode=pl.Buffered(1) not supported by this jax build ->
        # fall back to default (double-buffered) weight inputs.
        out = jax.block_until_ready(
            mamba_pallas(hidden, params, l_tile=16, chunk=8, weight_buffers=None))
    ref = jax.block_until_ready(mamba_ref(hidden, params, d_conv, d_state))
    # tolerance accounts for bf16 matmul operands / bf16 z gate (f32 accumulation)
    np.testing.assert_allclose(np.asarray(out), np.asarray(ref), rtol=1e-2, atol=1e-2)
    print("KERNEL_OK")
</pallas_src>

<mosaic_0001>
module attributes {stable_mosaic.version = 11 : i64} {
  func.func @mamba_kernel(%arg0: i32, %arg1: i32, %arg2: memref<1x16x32xf32, #tpu.memory_space<vmem>>, %arg3: memref<32x64xbf16, #tpu.memory_space<vmem>>, %arg4: memref<32x64xbf16, #tpu.memory_space<vmem>>, %arg5: memref<4x64xf32, #tpu.memory_space<vmem>>, %arg6: memref<1x64xf32, #tpu.memory_space<vmem>>, %arg7: memref<64x128xbf16, #tpu.memory_space<vmem>>, %arg8: memref<128x64xbf16, #tpu.memory_space<vmem>>, %arg9: memref<1x64xf32, #tpu.memory_space<vmem>>, %arg10: memref<16x64xf32, #tpu.memory_space<vmem>>, %arg11: memref<1x64xf32, #tpu.memory_space<vmem>>, %arg12: memref<64x32xbf16, #tpu.memory_space<vmem>>, %arg13: memref<1x16x32xf32, #tpu.memory_space<vmem>>, %arg14: memref<16x64xbf16, #tpu.memory_space<vmem>>, %arg15: memref<16x64xf32, #tpu.memory_space<vmem>>, %arg16: memref<16x128xf32, #tpu.memory_space<vmem>>, %arg17: memref<16x64xf32, #tpu.memory_space<vmem>>, %arg18: memref<24x64xf32, #tpu.memory_space<vmem>>, %arg19: memref<8x64xf32, #tpu.memory_space<vmem>>) attributes {dimension_semantics = [#tpu.dimension_semantics<parallel>, #tpu.dimension_semantics<arbitrary>], iteration_bounds = array<i64: 2, 2>, scalar_prefetch = 0 : i64, scratch_operands = 6 : i64, tpu.core_type = #tpu.core_type<tc>, window_params = [{transform_indices = @transform_0, window_bounds = array<i64: 1, 16, 32>}, {pipeline_mode = #tpu.pipeline_mode<synchronous>, transform_indices = @transform_1, window_bounds = array<i64: 32, 64>}, {pipeline_mode = #tpu.pipeline_mode<synchronous>, transform_indices = @transform_2, window_bounds = array<i64: 32, 64>}, {pipeline_mode = #tpu.pipeline_mode<synchronous>, transform_indices = @transform_3, window_bounds = array<i64: 4, 64>}, {pipeline_mode = #tpu.pipeline_mode<synchronous>, transform_indices = @transform_4, window_bounds = array<i64: 1, 64>}, {pipeline_mode = #tpu.pipeline_mode<synchronous>, transform_indices = @transform_5, window_bounds = array<i64: 64, 128>}, {pipeline_mode = #tpu.pipeline_mode<synchronous>, transform_indices = @transform_6, window_bounds = array<i64: 128, 64>}, {pipeline_mode = #tpu.pipeline_mode<synchronous>, transform_indices = @transform_7, window_bounds = array<i64: 1, 64>}, {pipeline_mode = #tpu.pipeline_mode<synchronous>, transform_indices = @transform_8, window_bounds = array<i64: 16, 64>}, {pipeline_mode = #tpu.pipeline_mode<synchronous>, transform_indices = @transform_9, window_bounds = array<i64: 1, 64>}, {pipeline_mode = #tpu.pipeline_mode<synchronous>, transform_indices = @transform_10, window_bounds = array<i64: 64, 32>}, {transform_indices = @transform_11, window_bounds = array<i64: 1, 16, 32>}]} {
    %c0_i32 = arith.constant 0 : i32
    %0 = arith.cmpi eq, %arg1, %c0_i32 : i32
    %1 = arith.extui %0 : i1 to i32
    %c0_i32_0 = arith.constant 0 : i32
    %2 = arith.cmpi ne, %1, %c0_i32_0 : i32
    scf.if %2 {
      %cst_63 = arith.constant 0.000000e+00 : f32
      %79 = vector.broadcast %cst_63 : f32 to vector<16x64xf32>
      %c0_64 = arith.constant 0 : index
      %c0_65 = arith.constant 0 : index
      %80 = vector.load %arg17[%c0_64, %c0_65] : memref<16x64xf32, #tpu.memory_space<vmem>>, vector<16x64xf32>
      tpu.vector_store %arg17[%c0_64, %c0_65], %79 {strides = array<i32>} : memref<16x64xf32, #tpu.memory_space<vmem>>, vector<16x64xf32>,
      %cst_66 = arith.constant 0.000000e+00 : f32
      %81 = vector.broadcast %cst_66 : f32 to vector<8x64xf32>
      %c0_67 = arith.constant 0 : index
      %c0_68 = arith.constant 0 : index
      %82 = vector.load %arg18[%c0_67, %c0_68] : memref<24x64xf32, #tpu.memory_space<vmem>>, vector<8x64xf32>
      tpu.vector_store %arg18[%c0_67, %c0_68], %81 {strides = array<i32>} : memref<24x64xf32, #tpu.memory_space<vmem>>, vector<8x64xf32>,
    } else {
    }
    %c0_i32_1 = arith.constant 0 : i32
    %3 = arith.cmpi sgt, %arg1, %c0_i32_1 : i32
    %4 = arith.extui %3 : i1 to i32
    %c0_i32_2 = arith.constant 0 : i32
    %5 = arith.cmpi ne, %4, %c0_i32_2 : i32
    scf.if %5 {
      %c0_63 = arith.constant 0 : index
      %c0_64 = arith.constant 0 : index
      %79 = vector.load %arg19[%c0_63, %c0_64] : memref<8x64xf32, #tpu.memory_space<vmem>>, vector<3x64xf32>
      %c5_65 = arith.constant 5 : index
      %c0_66 = arith.constant 0 : index
      %80 = vector.load %arg18[%c5_65, %c0_66] : memref<24x64xf32, #tpu.memory_space<vmem>>, vector<3x64xf32>
      tpu.vector_store %arg18[%c5_65, %c0_66], %79 {strides = array<i32>} : memref<24x64xf32, #tpu.memory_space<vmem>>, vector<3x64xf32>,
    } else {
    }
    %c0 = arith.constant 0 : index
    %c0_3 = arith.constant 0 : index
    %c0_4 = arith.constant 0 : index
    %6 = vector.load %arg2[%c0, %c0_3, %c0_4] : memref<1x16x32xf32, #tpu.memory_space<vmem>>, vector<1x16x32xf32>
    %7 = vector.shape_cast %6 : vector<1x16x32xf32> to vector<16x32xf32>
    %8 = arith.truncf %7 : vector<16x32xf32> to vector<16x32xbf16>
    %c0_5 = arith.constant 0 : index
    %c0_6 = arith.constant 0 : index
    %9 = vector.load %arg3[%c0_5, %c0_6] : memref<32x64xbf16, #tpu.memory_space<vmem>>, vector<32x64xbf16>
    %cst = arith.constant dense<0.000000e+00> : vector<16x64xf32>
    %10 = tpu.matmul %8, %9, %cst {dimension_numbers = #tpu.dot_dimension_numbers<[1], [0], [0], [1], [0, 0, 1, 1], [], []>} : vector<16x32xbf16>, vector<32x64xbf16>, vector<16x64xf32> -> vector<16x64xf32>
    %c0_7 = arith.constant 0 : index
    %c0_8 = arith.constant 0 : index
    %11 = vector.load %arg4[%c0_7, %c0_8] : memref<32x64xbf16, #tpu.memory_space<vmem>>, vector<32x64xbf16>
    %cst_9 = arith.constant dense<0.000000e+00> : vector<16x64xf32>
    %12 = tpu.matmul %8, %11, %cst_9 {dimension_numbers = #tpu.dot_dimension_numbers<[1], [0], [0], [1], [0, 0, 1, 1], [], []>} : vector<16x32xbf16>, vector<32x64xbf16>, vector<16x64xf32> -> vector<16x64xf32>
    %13 = arith.truncf %12 : vector<16x64xf32> to vector<16x64xbf16>
    %c0_10 = arith.constant 0 : index
    %c0_11 = arith.constant 0 : index
    %14 = vector.load %arg14[%c0_10, %c0_11] : memref<16x64xbf16, #tpu.memory_space<vmem>>, vector<16x64xbf16>
    tpu.vector_store %arg14[%c0_10, %c0_11], %13 {strides = array<i32>} : memref<16x64xbf16, #tpu.memory_space<vmem>>, vector<16x64xbf16>,
    %c8 = arith.constant 8 : index
    %c0_12 = arith.constant 0 : index
    %15 = vector.load %arg18[%c8, %c0_12] : memref<24x64xf32, #tpu.memory_space<vmem>>, vector<16x64xf32>
    tpu.vector_store %arg18[%c8, %c0_12], %10 {strides = array<i32>} : memref<24x64xf32, #tpu.memory_space<vmem>>, vector<16x64xf32>,
    %c21 = arith.constant 21 : index
    %c0_13 = arith.constant 0 : index
    %16 = vector.load %arg18[%c21, %c0_13] : memref<24x64xf32, #tpu.memory_space<vmem>>, vector<3x64xf32>
    %c0_14 = arith.constant 0 : index
    %c0_15 = arith.constant 0 : index
    %17 = vector.load %arg19[%c0_14, %c0_15] : memref<8x64xf32, #tpu.memory_space<vmem>>, vector<3x64xf32>
    tpu.vector_store %arg19[%c0_14, %c0_15], %16 {strides = array<i32>} : memref<8x64xf32, #tpu.memory_space<vmem>>, vector<3x64xf32>,
    %c0_16 = arith.constant 0 : index
    %c0_17 = arith.constant 0 : index
    %18 = vector.load %arg6[%c0_16, %c0_17] : memref<1x64xf32, #tpu.memory_space<vmem>>, vector<1x64xf32>
    %c5 = arith.constant 5 : index
    %c0_18 = arith.constant 0 : index
    %19 = vector.load %arg18[%c5, %c0_18] : memref<24x64xf32, #tpu.memory_space<vmem>>, vector<16x64xf32>
    %c0_19 = arith.constant 0 : index
    %c0_20 = arith.constant 0 : index
    %20 = vector.load %arg5[%c0_19, %c0_20] : memref<4x64xf32, #tpu.memory_space<vmem>>, vector<1x64xf32>
    %21 = vector.broadcast %20 : vector<1x64xf32> to vector<16x64xf32>
    %22 = arith.mulf %19, %21 : vector<16x64xf32>
    %23 = vector.broadcast %18 : vector<1x64xf32> to vector<16x64xf32>
    %24 = arith.addf %23, %22 : vector<16x64xf32>
    %c6 = arith.constant 6 : index
    %c0_21 = arith.constant 0 : index
    %25 = vector.load %arg18[%c6, %c0_21] : memref<24x64xf32, #tpu.memory_space<vmem>>, vector<16x64xf32>
    %c1 = arith.constant 1 : index
    %c0_22 = arith.constant 0 : index
    %26 = vector.load %arg5[%c1, %c0_22] : memref<4x64xf32, #tpu.memory_space<vmem>>, vector<1x64xf32>
    %27 = vector.broadcast %26 : vector<1x64xf32> to vector<16x64xf32>
    %28 = arith.mulf %25, %27 : vector<16x64xf32>
    %29 = arith.addf %24, %28 : vector<16x64xf32>
    %c7 = arith.constant 7 : index
    %c0_23 = arith.constant 0 : index
    %30 = vector.load %arg18[%c7, %c0_23] : memref<24x64xf32, #tpu.memory_space<vmem>>, vector<16x64xf32>
    %c2 = arith.constant 2 : index
    %c0_24 = arith.constant 0 : index
    %31 = vector.load %arg5[%c2, %c0_24] : memref<4x64xf32, #tpu.memory_space<vmem>>, vector<1x64xf32>
    %32 = vector.broadcast %31 : vector<1x64xf32> to vector<16x64xf32>
    %33 = arith.mulf %30, %32 : vector<16x64xf32>
    %34 = arith.addf %29, %33 : vector<16x64xf32>
    %c8_25 = arith.constant 8 : index
    %c0_26 = arith.constant 0 : index
    %35 = vector.load %arg18[%c8_25, %c0_26] : memref<24x64xf32, #tpu.memory_space<vmem>>, vector<16x64xf32>
    %c3 = arith.constant 3 : index
    %c0_27 = arith.constant 0 : index
    %36 = vector.load %arg5[%c3, %c0_27] : memref<4x64xf32, #tpu.memory_space<vmem>>, vector<1x64xf32>
    %37 = vector.broadcast %36 : vector<1x64xf32> to vector<16x64xf32>
    %38 = arith.mulf %35, %37 : vector<16x64xf32>
    %39 = arith.addf %34, %38 : vector<16x64xf32>
    %40 = arith.negf %39 : vector<16x64xf32>
    %41 = math.exp %40 : vector<16x64xf32>
    %cst_28 = arith.constant 1.000000e+00 : f32
    %42 = vector.broadcast %cst_28 : f32 to vector<16x64xf32>
    %43 = arith.addf %42, %41 : vector<16x64xf32>
    %44 = arith.divf %42, %43 : vector<16x64xf32>
    %45 = arith.mulf %39, %44 : vector<16x64xf32>
    %c8_29 = arith.constant 8 : index
    %c0_30 = arith.constant 0 : index
    %46 = vector.load %arg18[%c8_29, %c0_30] : memref<24x64xf32, #tpu.memory_space<vmem>>, vector<16x64xf32>
    tpu.vector_store %arg18[%c8_29, %c0_30], %45 {strides = array<i32>} : memref<24x64xf32, #tpu.memory_space<vmem>>, vector<16x64xf32>,
    %47 = arith.truncf %45 : vector<16x64xf32> to vector<16x64xbf16>
    %c0_31 = arith.constant 0 : index
    %c0_32 = arith.constant 0 : index
    %48 = vector.load %arg7[%c0_31, %c0_32] : memref<64x128xbf16, #tpu.memory_space<vmem>>, vector<64x128xbf16>
    %cst_33 = arith.constant dense<0.000000e+00> : vector<16x128xf32>
    %49 = tpu.matmul %47, %48, %cst_33 {dimension_numbers = #tpu.dot_dimension_numbers<[1], [0], [0], [1], [0, 0, 1, 1], [], []>} : vector<16x64xbf16>, vector<64x128xbf16>, vector<16x128xf32> -> vector<16x128xf32>
    %c0_34 = arith.constant 0 : index
    %c0_35 = arith.constant 0 : index
    %50 = vector.load %arg16[%c0_34, %c0_35] : memref<16x128xf32, #tpu.memory_space<vmem>>, vector<16x128xf32>
    tpu.vector_store %arg16[%c0_34, %c0_35], %49 {strides = array<i32>} : memref<16x128xf32, #tpu.memory_space<vmem>>, vector<16x128xf32>,
    %51 = arith.truncf %49 : vector<16x128xf32> to vector<16x128xbf16>
    %c0_36 = arith.constant 0 : index
    %c0_37 = arith.constant 0 : index
    %52 = vector.load %arg8[%c0_36, %c0_37] : memref<128x64xbf16, #tpu.memory_space<vmem>>, vector<128x64xbf16>
    %cst_38 = arith.constant dense<0.000000e+00> : vector<16x64xf32>
    %53 = tpu.matmul %51, %52, %cst_38 {dimension_numbers = #tpu.dot_dimension_numbers<[1], [0], [0], [1], [0, 0, 1, 1], [], []>} : vector<16x128xbf16>, vector<128x64xbf16>, vector<16x64xf32> -> vector<16x64xf32>
    %c0_39 = arith.constant 0 : index
    %c0_40 = arith.constant 0 : index
    %54 = vector.load %arg9[%c0_39, %c0_40] : memref<1x64xf32, #tpu.memory_space<vmem>>, vector<1x64xf32>
    %55 = vector.broadcast %54 : vector<1x64xf32> to vector<16x64xf32>
    %56 = arith.addf %53, %55 : vector<16x64xf32>
    %57 = math.absf %56 : vector<16x64xf32>
    %cst_41 = arith.constant 0.000000e+00 : f32
    %58 = vector.broadcast %cst_41 : f32 to vector<16x64xf32>
    %59 = arith.subf %58, %57 : vector<16x64xf32>
    %60 = math.exp %59 : vector<16x64xf32>
    %61 = math.log1p %60 : vector<16x64xf32>
    %cst_42 = arith.constant 0.000000e+00 : f32
    %62 = vector.broadcast %cst_42 : f32 to vector<16x64xf32>
    %63 = arith.maximumf %56, %62 : vector<16x64xf32>
    %64 = arith.addf %61, %63 : vector<16x64xf32>
    %c0_43 = arith.constant 0 : index
    %c0_44 = arith.constant 0 : index
    %65 = vector.load %arg15[%c0_43, %c0_44] : memref<16x64xf32, #tpu.memory_space<vmem>>, vector<16x64xf32>
    tpu.vector_store %arg15[%c0_43, %c0_44], %64 {strides = array<i32>} : memref<16x64xf32, #tpu.memory_space<vmem>>, vector<16x64xf32>,
    %c0_45 = arith.constant 0 : index
    %c0_46 = arith.constant 0 : index
    %66 = vector.load %arg10[%c0_45, %c0_46] : memref<16x64xf32, #tpu.memory_space<vmem>>, vector<16x64xf32>
    %c0_47 = arith.constant 0 : index
    %c0_48 = arith.constant 0 : index
    %67 = vector.load %arg11[%c0_47, %c0_48] : memref<1x64xf32, #tpu.memory_space<vmem>>, vector<1x64xf32>
    %c0_49 = arith.constant 0 : index
    %c0_50 = arith.constant 0 : index
    %68 = vector.load %arg17[%c0_49, %c0_50] : memref<16x64xf32, #tpu.memory_space<vmem>>, vector<16x64xf32>
    %c0_i32_51 = arith.constant 0 : i32
    %c2_i32 = arith.constant 2 : i32
    %69 = arith.addi %c0_i32_51, %c2_i32 : i32
    %c1_i32 = arith.constant 1 : i32
    %70 = scf.for %arg20 = %c0_i32_51 to %69 step %c1_i32 iter_args(%arg21 = %68) -> (vector<16x64xf32>)  : i32 {
      %c8_i32 = arith.constant 8 : i32
      %79 = arith.muli %arg20, %c8_i32 : i32
      %80 = tpu.assume_multiple %79, 8 : i32
      %81 = arith.index_cast %80 : i32 to index
      %c0_63 = arith.constant 0 : index
      %82 = vector.load %arg15[%81, %c0_63] : memref<16x64xf32, #tpu.memory_space<vmem>>, vector<8x64xf32>
      %c8_i32_64 = arith.constant 8 : i32
      %83 = arith.addi %c8_i32_64, %80 : i32
      %84 = arith.index_cast %83 : i32 to index
      %c0_65 = arith.constant 0 : index
      %85 = vector.load %arg18[%84, %c0_65] : memref<24x64xf32, #tpu.memory_space<vmem>>, vector<8x64xf32>
      %86 = arith.index_cast %80 : i32 to index
      %c0_66 = arith.constant 0 : index
      %87 = vector.load %arg14[%86, %c0_66] : memref<16x64xbf16, #tpu.memory_space<vmem>>, vector<8x64xbf16>
      %88 = arith.extf %87 : vector<8x64xbf16> to vector<8x64xf32>
      %89 = arith.negf %88 : vector<8x64xf32>
      %90 = math.exp %89 : vector<8x64xf32>
      %cst_67 = arith.constant 1.000000e+00 : f32
      %91 = vector.broadcast %cst_67 : f32 to vector<8x64xf32>
      %92 = arith.addf %91, %90 : vector<8x64xf32>
      %93 = arith.divf %91, %92 : vector<8x64xf32>
      %94 = arith.mulf %88, %93 : vector<8x64xf32>
      %95 = vector.broadcast %67 : vector<1x64xf32> to vector<8x64xf32>
      %96 = arith.mulf %85, %95 : vector<8x64xf32>
      %97 = arith.mulf %82, %85 : vector<8x64xf32>
      %98 = arith.index_cast %80 : i32 to index
      %c0_68 = arith.constant 0 : index
      %99 = vector.load %arg16[%98, %c0_68] : memref<16x128xf32, #tpu.memory_space<vmem>>, vector<8x32xf32>
      %100 = tpu.transpose %99, [1, 0] : vector<8x32xf32> -> vector<32x8xf32>
      %101 = vector.extract_strided_slice %82 {offsets = [0, 0], sizes = [1, 64], strides = [1, 1]} : vector<8x64xf32> to vector<1x64xf32>
      %102 = vector.broadcast %101 : vector<1x64xf32> to vector<16x64xf32>
      %103 = arith.mulf %102, %66 : vector<16x64xf32>
      %104 = vector.extract_strided_slice %82 {offsets = [1, 0], sizes = [1, 64], strides = [1, 1]} : vector<8x64xf32> to vector<1x64xf32>
      %105 = vector.broadcast %104 : vector<1x64xf32> to vector<16x64xf32>
      %106 = arith.mulf %105, %66 : vector<16x64xf32>
      %107 = vector.extract_strided_slice %82 {offsets = [2, 0], sizes = [1, 64], strides = [1, 1]} : vector<8x64xf32> to vector<1x64xf32>
      %108 = vector.broadcast %107 : vector<1x64xf32> to vector<16x64xf32>
      %109 = arith.mulf %108, %66 : vector<16x64xf32>
      %110 = vector.extract_strided_slice %82 {offsets = [3, 0], sizes = [1, 64], strides = [1, 1]} : vector<8x64xf32> to vector<1x64xf32>
      %111 = vector.broadcast %110 : vector<1x64xf32> to vector<16x64xf32>
      %112 = arith.mulf %111, %66 : vector<16x64xf32>
      %113 = vector.extract_strided_slice %82 {offsets = [4, 0], sizes = [1, 64], strides = [1, 1]} : vector<8x64xf32> to vector<1x64xf32>
      %114 = vector.broadcast %113 : vector<1x64xf32> to vector<16x64xf32>
      %115 = arith.mulf %114, %66 : vector<16x64xf32>
      %116 = vector.extract_strided_slice %82 {offsets = [5, 0], sizes = [1, 64], strides = [1, 1]} : vector<8x64xf32> to vector<1x64xf32>
      %117 = vector.broadcast %116 : vector<1x64xf32> to vector<16x64xf32>
      %118 = arith.mulf %117, %66 : vector<16x64xf32>
      %119 = vector.extract_strided_slice %82 {offsets = [6, 0], sizes = [1, 64], strides = [1, 1]} : vector<8x64xf32> to vector<1x64xf32>
      %120 = vector.broadcast %119 : vector<1x64xf32> to vector<16x64xf32>
      %121 = arith.mulf %120, %66 : vector<16x64xf32>
      %122 = vector.extract_strided_slice %82 {offsets = [7, 0], sizes = [1, 64], strides = [1, 1]} : vector<8x64xf32> to vector<1x64xf32>
      %123 = vector.broadcast %122 : vector<1x64xf32> to vector<16x64xf32>
      %124 = arith.mulf %123, %66 : vector<16x64xf32>
      %125 = tpu.concatenate %103, %106, %109, %112, %115, %118, %121, %124 in 0 : vector<16x64xf32>, vector<16x64xf32>, vector<16x64xf32>, vector<16x64xf32>, vector<16x64xf32>, vector<16x64xf32>, vector<16x64xf32>, vector<16x64xf32> -> vector<128x64xf32>
      %126 = math.exp %125 : vector<128x64xf32>
      %127 = vector.extract_strided_slice %100 {offsets = [0, 0], sizes = [16, 1], strides = [1, 1]} : vector<32x8xf32> to vector<16x1xf32>
      %128 = vector.extract_strided_slice %97 {offsets = [0, 0], sizes = [1, 64], strides = [1, 1]} : vector<8x64xf32> to vector<1x64xf32>
      %129 = vector.broadcast %127 : vector<16x1xf32> to vector<16x64xf32>
      %130 = vector.broadcast %128 : vector<1x64xf32> to vector<16x64xf32>
      %131 = arith.mulf %129, %130 : vector<16x64xf32>
      %132 = vector.extract_strided_slice %126 {offsets = [0, 0], sizes = [16, 64], strides = [1, 1]} : vector<128x64xf32> to vector<16x64xf32>
      %133 = arith.mulf %arg21, %132 : vector<16x64xf32>
      %134 = arith.addf %133, %131 : vector<16x64xf32>
      %135 = vector.extract_strided_slice %100 {offsets = [16, 0], sizes = [16, 1], strides = [1, 1]} : vector<32x8xf32> to vector<16x1xf32>
      %136 = vector.broadcast %135 : vector<16x1xf32> to vector<16x64xf32>
      %137 = arith.mulf %136, %134 : vector<16x64xf32>
      %cst_69 = arith.constant dense<0.000000e+00> : vector<64xf32>
      %138 = vector.multi_reduction <add>, %137, %cst_69 [0] : vector<16x64xf32> to vector<64xf32>
      %139 = vector.shape_cast %138 : vector<64xf32> to vector<1x64xf32>
      %140 = vector.extract_strided_slice %96 {offsets = [0, 0], sizes = [1, 64], strides = [1, 1]} : vector<8x64xf32> to vector<1x64xf32>
      %141 = arith.addf %139, %140 : vector<1x64xf32>
      %142 = vector.extract_strided_slice %94 {offsets = [0, 0], sizes = [1, 64], strides = [1, 1]} : vector<8x64xf32> to vector<1x64xf32>
      %143 = arith.mulf %141, %142 : vector<1x64xf32>
      %c8_i32_70 = arith.constant 8 : i32
      %144 = arith.addi %c8_i32_70, %80 : i32
      %c0_i32_71 = arith.constant 0 : i32
      %145 = arith.addi %144, %c0_i32_71 : i32
      %146 = arith.index_cast %145 : i32 to index
      %c0_72 = arith.constant 0 : index
      %147 = vector.load %arg18[%146, %c0_72] : memref<24x64xf32, #tpu.memory_space<vmem>>, vector<1x64xf32>
      tpu.vector_store %arg18[%146, %c0_72], %143 {strides = array<i32>} : memref<24x64xf32, #tpu.memory_space<vmem>>, vector<1x64xf32>,
      %148 = vector.extract_strided_slice %100 {offsets = [0, 1], sizes = [16, 1], strides = [1, 1]} : vector<32x8xf32> to vector<16x1xf32>
      %149 = vector.extract_strided_slice %97 {offsets = [1, 0], sizes = [1, 64], strides = [1, 1]} : vector<8x64xf32> to vector<1x64xf32>
      %150 = vector.broadcast %148 : vector<16x1xf32> to vector<16x64xf32>
      %151 = vector.broadcast %149 : vector<1x64xf32> to vector<16x64xf32>
      %152 = arith.mulf %150, %151 : vector<16x64xf32>
      %153 = vector.extract_strided_slice %126 {offsets = [16, 0], sizes = [16, 64], strides = [1, 1]} : vector<128x64xf32> to vector<16x64xf32>
      %154 = arith.mulf %134, %153 : vector<16x64xf32>
      %155 = arith.addf %154, %152 : vector<16x64xf32>
      %156 = vector.extract_strided_slice %100 {offsets = [16, 1], sizes = [16, 1], strides = [1, 1]} : vector<32x8xf32> to vector<16x1xf32>
      %157 = vector.broadcast %156 : vector<16x1xf32> to vector<16x64xf32>
      %158 = arith.mulf %157, %155 : vector<16x64xf32>
      %cst_73 = arith.constant dense<0.000000e+00> : vector<64xf32>
      %159 = vector.multi_reduction <add>, %158, %cst_73 [0] : vector<16x64xf32> to vector<64xf32>
      %160 = vector.shape_cast %159 : vector<64xf32> to vector<1x64xf32>
      %161 = vector.extract_strided_slice %96 {offsets = [1, 0], sizes = [1, 64], strides = [1, 1]} : vector<8x64xf32> to vector<1x64xf32>
      %162 = arith.addf %160, %161 : vector<1x64xf32>
      %163 = vector.extract_strided_slice %94 {offsets = [1, 0], sizes = [1, 64], strides = [1, 1]} : vector<8x64xf32> to vector<1x64xf32>
      %164 = arith.mulf %162, %163 : vector<1x64xf32>
      %c8_i32_74 = arith.constant 8 : i32
      %165 = arith.addi %c8_i32_74, %80 : i32
      %c1_i32_75 = arith.constant 1 : i32
      %166 = arith.addi %165, %c1_i32_75 : i32
      %167 = arith.index_cast %166 : i32 to index
      %c0_76 = arith.constant 0 : index
      %168 = vector.load %arg18[%167, %c0_76] : memref<24x64xf32, #tpu.memory_space<vmem>>, vector<1x64xf32>
      tpu.vector_store %arg18[%167, %c0_76], %164 {strides = array<i32>} : memref<24x64xf32, #tpu.memory_space<vmem>>, vector<1x64xf32>,
      %169 = vector.extract_strided_slice %100 {offsets = [0, 2], sizes = [16, 1], strides = [1, 1]} : vector<32x8xf32> to vector<16x1xf32>
      %170 = vector.extract_strided_slice %97 {offsets = [2, 0], sizes = [1, 64], strides = [1, 1]} : vector<8x64xf32> to vector<1x64xf32>
      %171 = vector.broadcast %169 : vector<16x1xf32> to vector<16x64xf32>
      %172 = vector.broadcast %170 : vector<1x64xf32> to vector<16x64xf32>
      %173 = arith.mulf %171, %172 : vector<16x64xf32>
      %174 = vector.extract_strided_slice %126 {offsets = [32, 0], sizes = [16, 64], strides = [1, 1]} : vector<128x64xf32> to vector<16x64xf32>
      %175 = arith.mulf %155, %174 : vector<16x64xf32>
      %176 = arith.addf %175, %173 : vector<16x64xf32>
      %177 = vector.extract_strided_slice %100 {offsets = [16, 2], sizes = [16, 1], strides = [1, 1]} : vector<32x8xf32> to vector<16x1xf32>
      %178 = vector.broadcast %177 : vector<16x1xf32> to vector<16x64xf32>
      %179 = arith.mulf %178, %176 : vector<16x64xf32>
      %cst_77 = arith.constant dense<0.000000e+00> : vector<64xf32>
      %180 = vector.multi_reduction <add>, %179, %cst_77 [0] : vector<16x64xf32> to vector<64xf32>
      %181 = vector.shape_cast %180 : vector<64xf32> to vector<1x64xf32>
      %182 = vector.extract_strided_slice %96 {offsets = [2, 0], sizes = [1, 64], strides = [1, 1]} : vector<8x64xf32> to vector<1x64xf32>
      %183 = arith.addf %181, %182 : vector<1x64xf32>
      %184 = vector.extract_strided_slice %94 {offsets = [2, 0], sizes = [1, 64], strides = [1, 1]} : vector<8x64xf32> to vector<1x64xf32>
      %185 = arith.mulf %183, %184 : vector<1x64xf32>
      %c8_i32_78 = arith.constant 8 : i32
      %186 = arith.addi %c8_i32_78, %80 : i32
      %c2_i32_79 = arith.constant 2 : i32
      %187 = arith.addi %186, %c2_i32_79 : i32
      %188 = arith.index_cast %187 : i32 to index
      %c0_80 = arith.constant 0 : index
      %189 = vector.load %arg18[%188, %c0_80] : memref<24x64xf32, #tpu.memory_space<vmem>>, vector<1x64xf32>
      tpu.vector_store %arg18[%188, %c0_80], %185 {strides = array<i32>} : memref<24x64xf32, #tpu.memory_space<vmem>>, vector<1x64xf32>,
      %190 = vector.extract_strided_slice %100 {offsets = [0, 3], sizes = [16, 1], strides = [1, 1]} : vector<32x8xf32> to vector<16x1xf32>
      %191 = vector.extract_strided_slice %97 {offsets = [3, 0], sizes = [1, 64], strides = [1, 1]} : vector<8x64xf32> to vector<1x64xf32>
      %192 = vector.broadcast %190 : vector<16x1xf32> to vector<16x64xf32>
      %193 = vector.broadcast %191 : vector<1x64xf32> to vector<16x64xf32>
      %194 = arith.mulf %192, %193 : vector<16x64xf32>
      %195 = vector.extract_strided_slice %126 {offsets = [48, 0], sizes = [16, 64], strides = [1, 1]} : vector<128x64xf32> to vector<16x64xf32>
      %196 = arith.mulf %176, %195 : vector<16x64xf32>
      %197 = arith.addf %196, %194 : vector<16x64xf32>
      %198 = vector.extract_strided_slice %100 {offsets = [16, 3], sizes = [16, 1], strides = [1, 1]} : vector<32x8xf32> to vector<16x1xf32>
      %199 = vector.broadcast %198 : vector<16x1xf32> to vector<16x64xf32>
      %200 = arith.mulf %199, %197 : vector<16x64xf32>
      %cst_81 = arith.constant dense<0.000000e+00> : vector<64xf32>
      %201 = vector.multi_reduction <add>, %200, %cst_81 [0] : vector<16x64xf32> to vector<64xf32>
      %202 = vector.shape_cast %201 : vector<64xf32> to vector<1x64xf32>
      %203 = vector.extract_strided_slice %96 {offsets = [3, 0], sizes = [1, 64], strides = [1, 1]} : vector<8x64xf32> to vector<1x64xf32>
      %204 = arith.addf %202, %203 : vector<1x64xf32>
      %205 = vector.extract_strided_slice %94 {offsets = [3, 0], sizes = [1, 64], strides = [1, 1]} : vector<8x64xf32> to vector<1x64xf32>
      %206 = arith.mulf %204, %205 : vector<1x64xf32>
      %c8_i32_82 = arith.constant 8 : i32
      %207 = arith.addi %c8_i32_82, %80 : i32
      %c3_i32 = arith.constant 3 : i32
      %208 = arith.addi %207, %c3_i32 : i32
      %209 = arith.index_cast %208 : i32 to index
      %c0_83 = arith.constant 0 : index
      %210 = vector.load %arg18[%209, %c0_83] : memref<24x64xf32, #tpu.memory_space<vmem>>, vector<1x64xf32>
      tpu.vector_store %arg18[%209, %c0_83], %206 {strides = array<i32>} : memref<24x64xf32, #tpu.memory_space<vmem>>, vector<1x64xf32>,
      %211 = vector.extract_strided_slice %100 {offsets = [0, 4], sizes = [16, 1], strides = [1, 1]} : vector<32x8xf32> to vector<16x1xf32>
      %212 = vector.extract_strided_slice %97 {offsets = [4, 0], sizes = [1, 64], strides = [1, 1]} : vector<8x64xf32> to vector<1x64xf32>
      %213 = vector.broadcast %211 : vector<16x1xf32> to vector<16x64xf32>
      %214 = vector.broadcast %212 : vector<1x64xf32> to vector<16x64xf32>
      %215 = arith.mulf %213, %214 : vector<16x64xf32>
      %216 = vector.extract_strided_slice %126 {offsets = [64, 0], sizes = [16, 64], strides = [1, 1]} : vector<128x64xf32> to vector<16x64xf32>
      %217 = arith.mulf %197, %216 : vector<16x64xf32>
      %218 = arith.addf %217, %215 : vector<16x64xf32>
      %219 = vector.extract_strided_slice %100 {offsets = [16, 4], sizes = [16, 1], strides = [1, 1]} : vector<32x8xf32> to vector<16x1xf32>
      %220 = vector.broadcast %219 : vector<16x1xf32> to vector<16x64xf32>
      %221 = arith.mulf %220, %218 : vector<16x64xf32>
      %cst_84 = arith.constant dense<0.000000e+00> : vector<64xf32>
      %222 = vector.multi_reduction <add>, %221, %cst_84 [0] : vector<16x64xf32> to vector<64xf32>
      %223 = vector.shape_cast %222 : vector<64xf32> to vector<1x64xf32>
      %224 = vector.extract_strided_slice %96 {offsets = [4, 0], sizes = [1, 64], strides = [1, 1]} : vector<8x64xf32> to vector<1x64xf32>
      %225 = arith.addf %223, %224 : vector<1x64xf32>
      %226 = vector.extract_strided_slice %94 {offsets = [4, 0], sizes = [1, 64], strides = [1, 1]} : vector<8x64xf32> to vector<1x64xf32>
      %227 = arith.mulf %225, %226 : vector<1x64xf32>
      %c8_i32_85 = arith.constant 8 : i32
      %228 = arith.addi %c8_i32_85, %80 : i32
      %c4_i32 = arith.constant 4 : i32
      %229 = arith.addi %228, %c4_i32 : i32
      %230 = arith.index_cast %229 : i32 to index
      %c0_86 = arith.constant 0 : index
      %231 = vector.load %arg18[%230, %c0_86] : memref<24x64xf32, #tpu.memory_space<vmem>>, vector<1x64xf32>
      tpu.vector_store %arg18[%230, %c0_86], %227 {strides = array<i32>} : memref<24x64xf32, #tpu.memory_space<vmem>>, vector<1x64xf32>,
      %232 = vector.extract_strided_slice %100 {offsets = [0, 5], sizes = [16, 1], strides = [1, 1]} : vector<32x8xf32> to vector<16x1xf32>
      %233 = vector.extract_strided_slice %97 {offsets = [5, 0], sizes = [1, 64], strides = [1, 1]} : vector<8x64xf32> to vector<1x64xf32>
      %234 = vector.broadcast %232 : vector<16x1xf32> to vector<16x64xf32>
      %235 = vector.broadcast %233 : vector<1x64xf32> to vector<16x64xf32>
      %236 = arith.mulf %234, %235 : vector<16x64xf32>
      %237 = vector.extract_strided_slice %126 {offsets = [80, 0], sizes = [16, 64], strides = [1, 1]} : vector<128x64xf32> to vector<16x64xf32>
      %238 = arith.mulf %218, %237 : vector<16x64xf32>
      %239 = arith.addf %238, %236 : vector<16x64xf32>
      %240 = vector.extract_strided_slice %100 {offsets = [16, 5], sizes = [16, 1], strides = [1, 1]} : vector<32x8xf32> to vector<16x1xf32>
      %241 = vector.broadcast %240 : vector<16x1xf32> to vector<16x64xf32>
      %242 = arith.mulf %241, %239 : vector<16x64xf32>
      %cst_87 = arith.constant dense<0.000000e+00> : vector<64xf32>
      %243 = vector.multi_reduction <add>, %242, %cst_87 [0] : vector<16x64xf32> to vector<64xf32>
      %244 = vector.shape_cast %243 : vector<64xf32> to vector<1x64xf32>
      %245 = vector.extract_strided_slice %96 {offsets = [5, 0], sizes = [1, 64], strides = [1, 1]} : vector<8x64xf32> to vector<1x64xf32>
      %246 = arith.addf %244, %245 : vector<1x64xf32>
      %247 = vector.extract_strided_slice %94 {offsets = [5, 0], sizes = [1, 64], strides = [1, 1]} : vector<8x64xf32> to vector<1x64xf32>
      %248 = arith.mulf %246, %247 : vector<1x64xf32>
      %c8_i32_88 = arith.constant 8 : i32
      %249 = arith.addi %c8_i32_88, %80 : i32
      %c5_i32 = arith.constant 5 : i32
      %250 = arith.addi %249, %c5_i32 : i32
      %251 = arith.index_cast %250 : i32 to index
      %c0_89 = arith.constant 0 : index
      %252 = vector.load %arg18[%251, %c0_89] : memref<24x64xf32, #tpu.memory_space<vmem>>, vector<1x64xf32>
      tpu.vector_store %arg18[%251, %c0_89], %248 {strides = array<i32>} : memref<24x64xf32, #tpu.memory_space<vmem>>, vector<1x64xf32>,
      %253 = vector.extract_strided_slice %100 {offsets = [0, 6], sizes = [16, 1], strides = [1, 1]} : vector<32x8xf32> to vector<16x1xf32>
      %254 = vector.extract_strided_slice %97 {offsets = [6, 0], sizes = [1, 64], strides = [1, 1]} : vector<8x64xf32> to vector<1x64xf32>
      %255 = vector.broadcast %253 : vector<16x1xf32> to vector<16x64xf32>
      %256 = vector.broadcast %254 : vector<1x64xf32> to vector<16x64xf32>
      %257 = arith.mulf %255, %256 : vector<16x64xf32>
      %258 = vector.extract_strided_slice %126 {offsets = [96, 0], sizes = [16, 64], strides = [1, 1]} : vector<128x64xf32> to vector<16x64xf32>
      %259 = arith.mulf %239, %258 : vector<16x64xf32>
      %260 = arith.addf %259, %257 : vector<16x64xf32>
      %261 = vector.extract_strided_slice %100 {offsets = [16, 6], sizes = [16, 1], strides = [1, 1]} : vector<32x8xf32> to vector<16x1xf32>
      %262 = vector.broadcast %261 : vector<16x1xf32> to vector<16x64xf32>
      %263 = arith.mulf %262, %260 : vector<16x64xf32>
      %cst_90 = arith.constant dense<0.000000e+00> : vector<64xf32>
      %264 = vector.multi_reduction <add>, %263, %cst_90 [0] : vector<16x64xf32> to vector<64xf32>
      %265 = vector.shape_cast %264 : vector<64xf32> to vector<1x64xf32>
      %266 = vector.extract_strided_slice %96 {offsets = [6, 0], sizes = [1, 64], strides = [1, 1]} : vector<8x64xf32> to vector<1x64xf32>
      %267 = arith.addf %265, %266 : vector<1x64xf32>
      %268 = vector.extract_strided_slice %94 {offsets = [6, 0], sizes = [1, 64], strides = [1, 1]} : vector<8x64xf32> to vector<1x64xf32>
      %269 = arith.mulf %267, %268 : vector<1x64xf32>
      %c8_i32_91 = arith.constant 8 : i32
      %270 = arith.addi %c8_i32_91, %80 : i32
      %c6_i32 = arith.constant 6 : i32
      %271 = arith.addi %270, %c6_i32 : i32
      %272 = arith.index_cast %271 : i32 to index
      %c0_92 = arith.constant 0 : index
      %273 = vector.load %arg18[%272, %c0_92] : memref<24x64xf32, #tpu.memory_space<vmem>>, vector<1x64xf32>
      tpu.vector_store %arg18[%272, %c0_92], %269 {strides = array<i32>} : memref<24x64xf32, #tpu.memory_space<vmem>>, vector<1x64xf32>,
      %274 = vector.extract_strided_slice %100 {offsets = [0, 7], sizes = [16, 1], strides = [1, 1]} : vector<32x8xf32> to vector<16x1xf32>
      %275 = vector.extract_strided_slice %97 {offsets = [7, 0], sizes = [1, 64], strides = [1, 1]} : vector<8x64xf32> to vector<1x64xf32>
      %276 = vector.broadcast %274 : vector<16x1xf32> to vector<16x64xf32>
      %277 = vector.broadcast %275 : vector<1x64xf32> to vector<16x64xf32>
      %278 = arith.mulf %276, %277 : vector<16x64xf32>
      %279 = vector.extract_strided_slice %126 {offsets = [112, 0], sizes = [16, 64], strides = [1, 1]} : vector<128x64xf32> to vector<16x64xf32>
      %280 = arith.mulf %260, %279 : vector<16x64xf32>
      %281 = arith.addf %280, %278 : vector<16x64xf32>
      %282 = vector.extract_strided_slice %100 {offsets = [16, 7], sizes = [16, 1], strides = [1, 1]} : vector<32x8xf32> to vector<16x1xf32>
      %283 = vector.broadcast %282 : vector<16x1xf32> to vector<16x64xf32>
      %284 = arith.mulf %283, %281 : vector<16x64xf32>
      %cst_93 = arith.constant dense<0.000000e+00> : vector<64xf32>
      %285 = vector.multi_reduction <add>, %284, %cst_93 [0] : vector<16x64xf32> to vector<64xf32>
      %286 = vector.shape_cast %285 : vector<64xf32> to vector<1x64xf32>
      %287 = vector.extract_strided_slice %96 {offsets = [7, 0], sizes = [1, 64], strides = [1, 1]} : vector<8x64xf32> to vector<1x64xf32>
      %288 = arith.addf %286, %287 : vector<1x64xf32>
      %289 = vector.extract_strided_slice %94 {offsets = [7, 0], sizes = [1, 64], strides = [1, 1]} : vector<8x64xf32> to vector<1x64xf32>
      %290 = arith.mulf %288, %289 : vector<1x64xf32>
      %c8_i32_94 = arith.constant 8 : i32
      %291 = arith.addi %c8_i32_94, %80 : i32
      %c7_i32 = arith.constant 7 : i32
      %292 = arith.addi %291, %c7_i32 : i32
      %293 = arith.index_cast %292 : i32 to index
      %c0_95 = arith.constant 0 : index
      %294 = vector.load %arg18[%293, %c0_95] : memref<24x64xf32, #tpu.memory_space<vmem>>, vector<1x64xf32>
      tpu.vector_store %arg18[%293, %c0_95], %290 {strides = array<i32>} : memref<24x64xf32, #tpu.memory_space<vmem>>, vector<1x64xf32>,
      scf.yield %281 : vector<16x64xf32>
    }
    %c2_i32_52 = arith.constant 2 : i32
    %c0_53 = arith.constant 0 : index
    %c0_54 = arith.constant 0 : index
    %71 = vector.load %arg17[%c0_53, %c0_54] : memref<16x64xf32, #tpu.memory_space<vmem>>, vector<16x64xf32>
    tpu.vector_store %arg17[%c0_53, %c0_54], %70 {strides = array<i32>} : memref<16x64xf32, #tpu.memory_space<vmem>>, vector<16x64xf32>,
    %c8_55 = arith.constant 8 : index
    %c0_56 = arith.constant 0 : index
    %72 = vector.load %arg18[%c8_55, %c0_56] : memref<24x64xf32, #tpu.memory_space<vmem>>, vector<16x64xf32>
    %73 = arith.truncf %72 : vector<16x64xf32> to vector<16x64xbf16>
    %c0_57 = arith.constant 0 : index
    %c0_58 = arith.constant 0 : index
    %74 = vector.load %arg12[%c0_57, %c0_58] : memref<64x32xbf16, #tpu.memory_space<vmem>>, vector<64x32xbf16>
    %cst_59 = arith.constant dense<0.000000e+00> : vector<16x32xf32>
    %75 = tpu.matmul %73, %74, %cst_59 {dimension_numbers = #tpu.dot_dimension_numbers<[1], [0], [0], [1], [0, 0, 1, 1], [], []>} : vector<16x64xbf16>, vector<64x32xbf16>, vector<16x32xf32> -> vector<16x32xf32>
    %c0_60 = arith.constant 0 : index
    %c0_61 = arith.constant 0 : index
    %c0_62 = arith.constant 0 : index
    %76 = vector.load %arg13[%c0_60, %c0_61, %c0_62] : memref<1x16x32xf32, #tpu.memory_space<vmem>>, vector<1x16x32xf32>
    %77 = vector.shape_cast %76 : vector<1x16x32xf32> to vector<16x32xf32>
    %78 = vector.shape_cast %75 : vector<16x32xf32> to vector<1x16x32xf32>
    tpu.vector_store %arg13[%c0_60, %c0_61, %c0_62], %78 {strides = array<i32>} : memref<1x16x32xf32, #tpu.memory_space<vmem>>, vector<1x16x32xf32>,
    return
  }
  func.func @transform_0(%arg0: i32, %arg1: i32) -> (i32, i32, i32) {
    %c0_i32 = arith.constant 0 : i32
    %c0_i32_0 = arith.constant 0 : i32
    return %arg0, %arg1, %c0_i32 : i32, i32, i32
  }
  func.func @transform_1(%arg0: i32, %arg1: i32) -> (i32, i32) {
    %c0_i32 = arith.constant 0 : i32
    %c0_i32_0 = arith.constant 0 : i32
    %c0_i32_1 = arith.constant 0 : i32
    return %c0_i32, %c0_i32_0 : i32, i32
  }
  func.func @transform_2(%arg0: i32, %arg1: i32) -> (i32, i32) {
    %c0_i32 = arith.constant 0 : i32
    %c0_i32_0 = arith.constant 0 : i32
    %c0_i32_1 = arith.constant 0 : i32
    return %c0_i32, %c0_i32_0 : i32, i32
  }
  func.func @transform_3(%arg0: i32, %arg1: i32) -> (i32, i32) {
    %c0_i32 = arith.constant 0 : i32
    %c0_i32_0 = arith.constant 0 : i32
    %c0_i32_1 = arith.constant 0 : i32
    return %c0_i32, %c0_i32_0 : i32, i32
  }
  func.func @transform_4(%arg0: i32, %arg1: i32) -> (i32, i32) {
    %c0_i32 = arith.constant 0 : i32
    %c0_i32_0 = arith.constant 0 : i32
    %c0_i32_1 = arith.constant 0 : i32
    return %c0_i32, %c0_i32_0 : i32, i32
  }
  func.func @transform_5(%arg0: i32, %arg1: i32) -> (i32, i32) {
    %c0_i32 = arith.constant 0 : i32
    %c0_i32_0 = arith.constant 0 : i32
    %c0_i32_1 = arith.constant 0 : i32
    return %c0_i32, %c0_i32_0 : i32, i32
  }
  func.func @transform_6(%arg0: i32, %arg1: i32) -> (i32, i32) {
    %c0_i32 = arith.constant 0 : i32
    %c0_i32_0 = arith.constant 0 : i32
    %c0_i32_1 = arith.constant 0 : i32
    return %c0_i32, %c0_i32_0 : i32, i32
  }
  func.func @transform_7(%arg0: i32, %arg1: i32) -> (i32, i32) {
    %c0_i32 = arith.constant 0 : i32
    %c0_i32_0 = arith.constant 0 : i32
    %c0_i32_1 = arith.constant 0 : i32
    return %c0_i32, %c0_i32_0 : i32, i32
  }
  func.func @transform_8(%arg0: i32, %arg1: i32) -> (i32, i32) {
    %c0_i32 = arith.constant 0 : i32
    %c0_i32_0 = arith.constant 0 : i32
    %c0_i32_1 = arith.constant 0 : i32
    return %c0_i32, %c0_i32_0 : i32, i32
  }
  func.func @transform_9(%arg0: i32, %arg1: i32) -> (i32, i32) {
    %c0_i32 = arith.constant 0 : i32
    %c0_i32_0 = arith.constant 0 : i32
    %c0_i32_1 = arith.constant 0 : i32
    return %c0_i32, %c0_i32_0 : i32, i32
  }
  func.func @transform_10(%arg0: i32, %arg1: i32) -> (i32, i32) {
    %c0_i32 = arith.constant 0 : i32
    %c0_i32_0 = arith.constant 0 : i32
    %c0_i32_1 = arith.constant 0 : i32
    return %c0_i32, %c0_i32_0 : i32, i32
  }
  func.func @transform_11(%arg0: i32, %arg1: i32) -> (i32, i32, i32) {
    %c0_i32 = arith.constant 0 : i32
    %c0_i32_0 = arith.constant 0 : i32
    return %arg0, %arg1, %c0_i32 : i32, i32, i32
  }
}

module attributes {stable_mosaic.version = 11 : i64} {
  func.func @mamba_kernel(%arg0: i32, %arg1: i32, %arg2: memref<1x16x32xf32, #tpu.memory_space<vmem>>, %arg3: memref<32x64xbf16, #tpu.memory_space<vmem>>, %arg4: memref<32x64xbf16, #tpu.memory_space<vmem>>, %arg5: memref<4x64xf32, #tpu.memory_space<vmem>>, %arg6: memref<1x64xf32, #tpu.memory_space<vmem>>, %arg7: memref<64x128xbf16, #tpu.memory_space<vmem>>, %arg8: memref<128x64xbf16, #tpu.memory_space<vmem>>, %arg9: memref<1x64xf32, #tpu.memory_space<vmem>>, %arg10: memref<16x64xf32, #tpu.memory_space<vmem>>, %arg11: memref<1x64xf32, #tpu.memory_space<vmem>>, %arg12: memref<64x32xbf16, #tpu.memory_space<vmem>>, %arg13: memref<1x16x32xf32, #tpu.memory_space<vmem>>, %arg14: memref<16x64xbf16, #tpu.memory_space<vmem>>, %arg15: memref<16x64xf32, #tpu.memory_space<vmem>>, %arg16: memref<16x128xf32, #tpu.memory_space<vmem>>, %arg17: memref<16x64xf32, #tpu.memory_space<vmem>>, %arg18: memref<24x64xf32, #tpu.memory_space<vmem>>, %arg19: memref<8x64xf32, #tpu.memory_space<vmem>>) attributes {dimension_semantics = [#tpu.dimension_semantics<parallel>, #tpu.dimension_semantics<arbitrary>], iteration_bounds = array<i64: 2, 2>, scalar_prefetch = 0 : i64, scratch_operands = 6 : i64, tpu.core_type = #tpu.core_type<tc>, window_params = [{transform_indices = @transform_0, window_bounds = array<i64: 1, 16, 32>}, {pipeline_mode = #tpu.pipeline_mode<synchronous>, transform_indices = @transform_1, window_bounds = array<i64: 32, 64>}, {pipeline_mode = #tpu.pipeline_mode<synchronous>, transform_indices = @transform_2, window_bounds = array<i64: 32, 64>}, {pipeline_mode = #tpu.pipeline_mode<synchronous>, transform_indices = @transform_3, window_bounds = array<i64: 4, 64>}, {pipeline_mode = #tpu.pipeline_mode<synchronous>, transform_indices = @transform_4, window_bounds = array<i64: 1, 64>}, {pipeline_mode = #tpu.pipeline_mode<synchronous>, transform_indices = @transform_5, window_bounds = array<i64: 64, 128>}, {pipeline_mode = #tpu.pipeline_mode<synchronous>, transform_indices = @transform_6, window_bounds = array<i64: 128, 64>}, {pipeline_mode = #tpu.pipeline_mode<synchronous>, transform_indices = @transform_7, window_bounds = array<i64: 1, 64>}, {pipeline_mode = #tpu.pipeline_mode<synchronous>, transform_indices = @transform_8, window_bounds = array<i64: 16, 64>}, {pipeline_mode = #tpu.pipeline_mode<synchronous>, transform_indices = @transform_9, window_bounds = array<i64: 1, 64>}, {pipeline_mode = #tpu.pipeline_mode<synchronous>, transform_indices = @transform_10, window_bounds = array<i64: 64, 32>}, {transform_indices = @transform_11, window_bounds = array<i64: 1, 16, 32>}]} {
    %c0_i32 = arith.constant 0 : i32
    %0 = arith.cmpi eq, %arg1, %c0_i32 : i32
    %1 = arith.extui %0 : i1 to i32
    %c0_i32_0 = arith.constant 0 : i32
    %2 = arith.cmpi ne, %1, %c0_i32_0 : i32
    scf.if %2 {
      %cst_63 = arith.constant 0.000000e+00 : f32
      %79 = vector.broadcast %cst_63 : f32 to vector<16x64xf32>
      %c0_64 = arith.constant 0 : index
      %c0_65 = arith.constant 0 : index
      %80 = vector.load %arg17[%c0_64, %c0_65] : memref<16x64xf32, #tpu.memory_space<vmem>>, vector<16x64xf32>
      tpu.vector_store %arg17[%c0_64, %c0_65], %79 {strides = array<i32>} : memref<16x64xf32, #tpu.memory_space<vmem>>, vector<16x64xf32>,
      %cst_66 = arith.constant 0.000000e+00 : f32
      %81 = vector.broadcast %cst_66 : f32 to vector<8x64xf32>
      %c0_67 = arith.constant 0 : index
      %c0_68 = arith.constant 0 : index
      %82 = vector.load %arg18[%c0_67, %c0_68] : memref<24x64xf32, #tpu.memory_space<vmem>>, vector<8x64xf32>
      tpu.vector_store %arg18[%c0_67, %c0_68], %81 {strides = array<i32>} : memref<24x64xf32, #tpu.memory_space<vmem>>, vector<8x64xf32>,
    } else {
    }
    %c0_i32_1 = arith.constant 0 : i32
    %3 = arith.cmpi sgt, %arg1, %c0_i32_1 : i32
    %4 = arith.extui %3 : i1 to i32
    %c0_i32_2 = arith.constant 0 : i32
    %5 = arith.cmpi ne, %4, %c0_i32_2 : i32
    scf.if %5 {
      %c0_63 = arith.constant 0 : index
      %c0_64 = arith.constant 0 : index
      %79 = vector.load %arg19[%c0_63, %c0_64] : memref<8x64xf32, #tpu.memory_space<vmem>>, vector<3x64xf32>
      %c5_65 = arith.constant 5 : index
      %c0_66 = arith.constant 0 : index
      %80 = vector.load %arg18[%c5_65, %c0_66] : memref<24x64xf32, #tpu.memory_space<vmem>>, vector<3x64xf32>
      tpu.vector_store %arg18[%c5_65, %c0_66], %79 {strides = array<i32>} : memref<24x64xf32, #tpu.memory_space<vmem>>, vector<3x64xf32>,
    } else {
    }
    %c0 = arith.constant 0 : index
    %c0_3 = arith.constant 0 : index
    %c0_4 = arith.constant 0 : index
    %6 = vector.load %arg2[%c0, %c0_3, %c0_4] : memref<1x16x32xf32, #tpu.memory_space<vmem>>, vector<1x16x32xf32>
    %7 = vector.shape_cast %6 : vector<1x16x32xf32> to vector<16x32xf32>
    %8 = arith.truncf %7 : vector<16x32xf32> to vector<16x32xbf16>
    %c0_5 = arith.constant 0 : index
    %c0_6 = arith.constant 0 : index
    %9 = vector.load %arg3[%c0_5, %c0_6] : memref<32x64xbf16, #tpu.memory_space<vmem>>, vector<32x64xbf16>
    %cst = arith.constant dense<0.000000e+00> : vector<16x64xf32>
    %10 = tpu.matmul %8, %9, %cst {dimension_numbers = #tpu.dot_dimension_numbers<[1], [0], [0], [1], [0, 0, 1, 1], [], []>} : vector<16x32xbf16>, vector<32x64xbf16>, vector<16x64xf32> -> vector<16x64xf32>
    %c0_7 = arith.constant 0 : index
    %c0_8 = arith.constant 0 : index
    %11 = vector.load %arg4[%c0_7, %c0_8] : memref<32x64xbf16, #tpu.memory_space<vmem>>, vector<32x64xbf16>
    %cst_9 = arith.constant dense<0.000000e+00> : vector<16x64xf32>
    %12 = tpu.matmul %8, %11, %cst_9 {dimension_numbers = #tpu.dot_dimension_numbers<[1], [0], [0], [1], [0, 0, 1, 1], [], []>} : vector<16x32xbf16>, vector<32x64xbf16>, vector<16x64xf32> -> vector<16x64xf32>
    %13 = arith.truncf %12 : vector<16x64xf32> to vector<16x64xbf16>
    %c0_10 = arith.constant 0 : index
    %c0_11 = arith.constant 0 : index
    %14 = vector.load %arg14[%c0_10, %c0_11] : memref<16x64xbf16, #tpu.memory_space<vmem>>, vector<16x64xbf16>
    tpu.vector_store %arg14[%c0_10, %c0_11], %13 {strides = array<i32>} : memref<16x64xbf16, #tpu.memory_space<vmem>>, vector<16x64xbf16>,
    %c8 = arith.constant 8 : index
    %c0_12 = arith.constant 0 : index
    %15 = vector.load %arg18[%c8, %c0_12] : memref<24x64xf32, #tpu.memory_space<vmem>>, vector<16x64xf32>
    tpu.vector_store %arg18[%c8, %c0_12], %10 {strides = array<i32>} : memref<24x64xf32, #tpu.memory_space<vmem>>, vector<16x64xf32>,
    %c21 = arith.constant 21 : index
    %c0_13 = arith.constant 0 : index
    %16 = vector.load %arg18[%c21, %c0_13] : memref<24x64xf32, #tpu.memory_space<vmem>>, vector<3x64xf32>
    %c0_14 = arith.constant 0 : index
    %c0_15 = arith.constant 0 : index
    %17 = vector.load %arg19[%c0_14, %c0_15] : memref<8x64xf32, #tpu.memory_space<vmem>>, vector<3x64xf32>
    tpu.vector_store %arg19[%c0_14, %c0_15], %16 {strides = array<i32>} : memref<8x64xf32, #tpu.memory_space<vmem>>, vector<3x64xf32>,
    %c0_16 = arith.constant 0 : index
    %c0_17 = arith.constant 0 : index
    %18 = vector.load %arg6[%c0_16, %c0_17] : memref<1x64xf32, #tpu.memory_space<vmem>>, vector<1x64xf32>
    %c5 = arith.constant 5 : index
    %c0_18 = arith.constant 0 : index
    %19 = vector.load %arg18[%c5, %c0_18] : memref<24x64xf32, #tpu.memory_space<vmem>>, vector<16x64xf32>
    %c0_19 = arith.constant 0 : index
    %c0_20 = arith.constant 0 : index
    %20 = vector.load %arg5[%c0_19, %c0_20] : memref<4x64xf32, #tpu.memory_space<vmem>>, vector<1x64xf32>
    %21 = vector.broadcast %20 : vector<1x64xf32> to vector<16x64xf32>
    %22 = arith.mulf %19, %21 : vector<16x64xf32>
    %23 = vector.broadcast %18 : vector<1x64xf32> to vector<16x64xf32>
    %24 = arith.addf %23, %22 : vector<16x64xf32>
    %c6 = arith.constant 6 : index
    %c0_21 = arith.constant 0 : index
    %25 = vector.load %arg18[%c6, %c0_21] : memref<24x64xf32, #tpu.memory_space<vmem>>, vector<16x64xf32>
    %c1 = arith.constant 1 : index
    %c0_22 = arith.constant 0 : index
    %26 = vector.load %arg5[%c1, %c0_22] : memref<4x64xf32, #tpu.memory_space<vmem>>, vector<1x64xf32>
    %27 = vector.broadcast %26 : vector<1x64xf32> to vector<16x64xf32>
    %28 = arith.mulf %25, %27 : vector<16x64xf32>
    %29 = arith.addf %24, %28 : vector<16x64xf32>
    %c7 = arith.constant 7 : index
    %c0_23 = arith.constant 0 : index
    %30 = vector.load %arg18[%c7, %c0_23] : memref<24x64xf32, #tpu.memory_space<vmem>>, vector<16x64xf32>
    %c2 = arith.constant 2 : index
    %c0_24 = arith.constant 0 : index
    %31 = vector.load %arg5[%c2, %c0_24] : memref<4x64xf32, #tpu.memory_space<vmem>>, vector<1x64xf32>
    %32 = vector.broadcast %31 : vector<1x64xf32> to vector<16x64xf32>
    %33 = arith.mulf %30, %32 : vector<16x64xf32>
    %34 = arith.addf %29, %33 : vector<16x64xf32>
    %c8_25 = arith.constant 8 : index
    %c0_26 = arith.constant 0 : index
    %35 = vector.load %arg18[%c8_25, %c0_26] : memref<24x64xf32, #tpu.memory_space<vmem>>, vector<16x64xf32>
    %c3 = arith.constant 3 : index
    %c0_27 = arith.constant 0 : index
    %36 = vector.load %arg5[%c3, %c0_27] : memref<4x64xf32, #tpu.memory_space<vmem>>, vector<1x64xf32>
    %37 = vector.broadcast %36 : vector<1x64xf32> to vector<16x64xf32>
    %38 = arith.mulf %35, %37 : vector<16x64xf32>
    %39 = arith.addf %34, %38 : vector<16x64xf32>
    %40 = arith.negf %39 : vector<16x64xf32>
    %41 = math.exp %40 : vector<16x64xf32>
    %cst_28 = arith.constant 1.000000e+00 : f32
    %42 = vector.broadcast %cst_28 : f32 to vector<16x64xf32>
    %43 = arith.addf %42, %41 : vector<16x64xf32>
    %44 = arith.divf %42, %43 : vector<16x64xf32>
    %45 = arith.mulf %39, %44 : vector<16x64xf32>
    %c8_29 = arith.constant 8 : index
    %c0_30 = arith.constant 0 : index
    %46 = vector.load %arg18[%c8_29, %c0_30] : memref<24x64xf32, #tpu.memory_space<vmem>>, vector<16x64xf32>
    tpu.vector_store %arg18[%c8_29, %c0_30], %45 {strides = array<i32>} : memref<24x64xf32, #tpu.memory_space<vmem>>, vector<16x64xf32>,
    %47 = arith.truncf %45 : vector<16x64xf32> to vector<16x64xbf16>
    %c0_31 = arith.constant 0 : index
    %c0_32 = arith.constant 0 : index
    %48 = vector.load %arg7[%c0_31, %c0_32] : memref<64x128xbf16, #tpu.memory_space<vmem>>, vector<64x128xbf16>
    %cst_33 = arith.constant dense<0.000000e+00> : vector<16x128xf32>
    %49 = tpu.matmul %47, %48, %cst_33 {dimension_numbers = #tpu.dot_dimension_numbers<[1], [0], [0], [1], [0, 0, 1, 1], [], []>} : vector<16x64xbf16>, vector<64x128xbf16>, vector<16x128xf32> -> vector<16x128xf32>
    %c0_34 = arith.constant 0 : index
    %c0_35 = arith.constant 0 : index
    %50 = vector.load %arg16[%c0_34, %c0_35] : memref<16x128xf32, #tpu.memory_space<vmem>>, vector<16x128xf32>
    tpu.vector_store %arg16[%c0_34, %c0_35], %49 {strides = array<i32>} : memref<16x128xf32, #tpu.memory_space<vmem>>, vector<16x128xf32>,
    %51 = arith.truncf %49 : vector<16x128xf32> to vector<16x128xbf16>
    %c0_36 = arith.constant 0 : index
    %c0_37 = arith.constant 0 : index
    %52 = vector.load %arg8[%c0_36, %c0_37] : memref<128x64xbf16, #tpu.memory_space<vmem>>, vector<128x64xbf16>
    %cst_38 = arith.constant dense<0.000000e+00> : vector<16x64xf32>
    %53 = tpu.matmul %51, %52, %cst_38 {dimension_numbers = #tpu.dot_dimension_numbers<[1], [0], [0], [1], [0, 0, 1, 1], [], []>} : vector<16x128xbf16>, vector<128x64xbf16>, vector<16x64xf32> -> vector<16x64xf32>
    %c0_39 = arith.constant 0 : index
    %c0_40 = arith.constant 0 : index
    %54 = vector.load %arg9[%c0_39, %c0_40] : memref<1x64xf32, #tpu.memory_space<vmem>>, vector<1x64xf32>
    %55 = vector.broadcast %54 : vector<1x64xf32> to vector<16x64xf32>
    %56 = arith.addf %53, %55 : vector<16x64xf32>
    %57 = math.absf %56 : vector<16x64xf32>
    %cst_41 = arith.constant 0.000000e+00 : f32
    %58 = vector.broadcast %cst_41 : f32 to vector<16x64xf32>
    %59 = arith.subf %58, %57 : vector<16x64xf32>
    %60 = math.exp %59 : vector<16x64xf32>
    %61 = math.log1p %60 : vector<16x64xf32>
    %cst_42 = arith.constant 0.000000e+00 : f32
    %62 = vector.broadcast %cst_42 : f32 to vector<16x64xf32>
    %63 = arith.maximumf %56, %62 : vector<16x64xf32>
    %64 = arith.addf %61, %63 : vector<16x64xf32>
    %c0_43 = arith.constant 0 : index
    %c0_44 = arith.constant 0 : index
    %65 = vector.load %arg15[%c0_43, %c0_44] : memref<16x64xf32, #tpu.memory_space<vmem>>, vector<16x64xf32>
    tpu.vector_store %arg15[%c0_43, %c0_44], %64 {strides = array<i32>} : memref<16x64xf32, #tpu.memory_space<vmem>>, vector<16x64xf32>,
    %c0_45 = arith.constant 0 : index
    %c0_46 = arith.constant 0 : index
    %66 = vector.load %arg10[%c0_45, %c0_46] : memref<16x64xf32, #tpu.memory_space<vmem>>, vector<16x64xf32>
    %c0_47 = arith.constant 0 : index
    %c0_48 = arith.constant 0 : index
    %67 = vector.load %arg11[%c0_47, %c0_48] : memref<1x64xf32, #tpu.memory_space<vmem>>, vector<1x64xf32>
    %c0_49 = arith.constant 0 : index
    %c0_50 = arith.constant 0 : index
    %68 = vector.load %arg17[%c0_49, %c0_50] : memref<16x64xf32, #tpu.memory_space<vmem>>, vector<16x64xf32>
    %c0_i32_51 = arith.constant 0 : i32
    %c2_i32 = arith.constant 2 : i32
    %69 = arith.addi %c0_i32_51, %c2_i32 : i32
    %c1_i32 = arith.constant 1 : i32
    %70 = scf.for %arg20 = %c0_i32_51 to %69 step %c1_i32 iter_args(%arg21 = %68) -> (vector<16x64xf32>)  : i32 {
      %c8_i32 = arith.constant 8 : i32
      %79 = arith.muli %arg20, %c8_i32 : i32
      %80 = tpu.assume_multiple %79, 8 : i32
      %81 = arith.index_cast %80 : i32 to index
      %c0_63 = arith.constant 0 : index
      %82 = vector.load %arg15[%81, %c0_63] : memref<16x64xf32, #tpu.memory_space<vmem>>, vector<8x64xf32>
      %c8_i32_64 = arith.constant 8 : i32
      %83 = arith.addi %c8_i32_64, %80 : i32
      %84 = arith.index_cast %83 : i32 to index
      %c0_65 = arith.constant 0 : index
      %85 = vector.load %arg18[%84, %c0_65] : memref<24x64xf32, #tpu.memory_space<vmem>>, vector<8x64xf32>
      %86 = arith.index_cast %80 : i32 to index
      %c0_66 = arith.constant 0 : index
      %87 = vector.load %arg14[%86, %c0_66] : memref<16x64xbf16, #tpu.memory_space<vmem>>, vector<8x64xbf16>
      %88 = arith.extf %87 : vector<8x64xbf16> to vector<8x64xf32>
      %89 = arith.negf %88 : vector<8x64xf32>
      %90 = math.exp %89 : vector<8x64xf32>
      %cst_67 = arith.constant 1.000000e+00 : f32
      %91 = vector.broadcast %cst_67 : f32 to vector<8x64xf32>
      %92 = arith.addf %91, %90 : vector<8x64xf32>
      %93 = arith.divf %91, %92 : vector<8x64xf32>
      %94 = arith.mulf %88, %93 : vector<8x64xf32>
      %95 = vector.broadcast %67 : vector<1x64xf32> to vector<8x64xf32>
      %96 = arith.mulf %85, %95 : vector<8x64xf32>
      %97 = arith.mulf %82, %85 : vector<8x64xf32>
      %98 = arith.index_cast %80 : i32 to index
      %c0_68 = arith.constant 0 : index
      %99 = vector.load %arg16[%98, %c0_68] : memref<16x128xf32, #tpu.memory_space<vmem>>, vector<8x32xf32>
      %100 = tpu.transpose %99, [1, 0] : vector<8x32xf32> -> vector<32x8xf32>
      %101 = vector.extract_strided_slice %82 {offsets = [0, 0], sizes = [1, 64], strides = [1, 1]} : vector<8x64xf32> to vector<1x64xf32>
      %102 = vector.broadcast %101 : vector<1x64xf32> to vector<16x64xf32>
      %103 = arith.mulf %102, %66 : vector<16x64xf32>
      %104 = vector.extract_strided_slice %82 {offsets = [1, 0], sizes = [1, 64], strides = [1, 1]} : vector<8x64xf32> to vector<1x64xf32>
      %105 = vector.broadcast %104 : vector<1x64xf32> to vector<16x64xf32>
      %106 = arith.mulf %105, %66 : vector<16x64xf32>
      %107 = vector.extract_strided_slice %82 {offsets = [2, 0], sizes = [1, 64], strides = [1, 1]} : vector<8x64xf32> to vector<1x64xf32>
      %108 = vector.broadcast %107 : vector<1x64xf32> to vector<16x64xf32>
      %109 = arith.mulf %108, %66 : vector<16x64xf32>
      %110 = vector.extract_strided_slice %82 {offsets = [3, 0], sizes = [1, 64], strides = [1, 1]} : vector<8x64xf32> to vector<1x64xf32>
      %111 = vector.broadcast %110 : vector<1x64xf32> to vector<16x64xf32>
      %112 = arith.mulf %111, %66 : vector<16x64xf32>
      %113 = vector.extract_strided_slice %82 {offsets = [4, 0], sizes = [1, 64], strides = [1, 1]} : vector<8x64xf32> to vector<1x64xf32>
      %114 = vector.broadcast %113 : vector<1x64xf32> to vector<16x64xf32>
      %115 = arith.mulf %114, %66 : vector<16x64xf32>
      %116 = vector.extract_strided_slice %82 {offsets = [5, 0], sizes = [1, 64], strides = [1, 1]} : vector<8x64xf32> to vector<1x64xf32>
      %117 = vector.broadcast %116 : vector<1x64xf32> to vector<16x64xf32>
      %118 = arith.mulf %117, %66 : vector<16x64xf32>
      %119 = vector.extract_strided_slice %82 {offsets = [6, 0], sizes = [1, 64], strides = [1, 1]} : vector<8x64xf32> to vector<1x64xf32>
      %120 = vector.broadcast %119 : vector<1x64xf32> to vector<16x64xf32>
      %121 = arith.mulf %120, %66 : vector<16x64xf32>
      %122 = vector.extract_strided_slice %82 {offsets = [7, 0], sizes = [1, 64], strides = [1, 1]} : vector<8x64xf32> to vector<1x64xf32>
      %123 = vector.broadcast %122 : vector<1x64xf32> to vector<16x64xf32>
      %124 = arith.mulf %123, %66 : vector<16x64xf32>
      %125 = tpu.concatenate %103, %106, %109, %112, %115, %118, %121, %124 in 0 : vector<16x64xf32>, vector<16x64xf32>, vector<16x64xf32>, vector<16x64xf32>, vector<16x64xf32>, vector<16x64xf32>, vector<16x64xf32>, vector<16x64xf32> -> vector<128x64xf32>
      %126 = math.exp %125 : vector<128x64xf32>
      %127 = vector.extract_strided_slice %100 {offsets = [0, 0], sizes = [16, 1], strides = [1, 1]} : vector<32x8xf32> to vector<16x1xf32>
      %128 = vector.extract_strided_slice %97 {offsets = [0, 0], sizes = [1, 64], strides = [1, 1]} : vector<8x64xf32> to vector<1x64xf32>
      %129 = vector.broadcast %127 : vector<16x1xf32> to vector<16x64xf32>
      %130 = vector.broadcast %128 : vector<1x64xf32> to vector<16x64xf32>
      %131 = arith.mulf %129, %130 : vector<16x64xf32>
      %132 = vector.extract_strided_slice %126 {offsets = [0, 0], sizes = [16, 64], strides = [1, 1]} : vector<128x64xf32> to vector<16x64xf32>
      %133 = arith.mulf %arg21, %132 : vector<16x64xf32>
      %134 = arith.addf %133, %131 : vector<16x64xf32>
      %135 = vector.extract_strided_slice %100 {offsets = [16, 0], sizes = [16, 1], strides = [1, 1]} : vector<32x8xf32> to vector<16x1xf32>
      %136 = vector.broadcast %135 : vector<16x1xf32> to vector<16x64xf32>
      %137 = arith.mulf %136, %134 : vector<16x64xf32>
      %cst_69 = arith.constant dense<0.000000e+00> : vector<64xf32>
      %138 = vector.multi_reduction <add>, %137, %cst_69 [0] : vector<16x64xf32> to vector<64xf32>
      %139 = vector.shape_cast %138 : vector<64xf32> to vector<1x64xf32>
      %140 = vector.extract_strided_slice %96 {offsets = [0, 0], sizes = [1, 64], strides = [1, 1]} : vector<8x64xf32> to vector<1x64xf32>
      %141 = arith.addf %139, %140 : vector<1x64xf32>
      %142 = vector.extract_strided_slice %94 {offsets = [0, 0], sizes = [1, 64], strides = [1, 1]} : vector<8x64xf32> to vector<1x64xf32>
      %143 = arith.mulf %141, %142 : vector<1x64xf32>
      %c8_i32_70 = arith.constant 8 : i32
      %144 = arith.addi %c8_i32_70, %80 : i32
      %c0_i32_71 = arith.constant 0 : i32
      %145 = arith.addi %144, %c0_i32_71 : i32
      %146 = arith.index_cast %145 : i32 to index
      %c0_72 = arith.constant 0 : index
      %147 = vector.load %arg18[%146, %c0_72] : memref<24x64xf32, #tpu.memory_space<vmem>>, vector<1x64xf32>
      tpu.vector_store %arg18[%146, %c0_72], %143 {strides = array<i32>} : memref<24x64xf32, #tpu.memory_space<vmem>>, vector<1x64xf32>,
      %148 = vector.extract_strided_slice %100 {offsets = [0, 1], sizes = [16, 1], strides = [1, 1]} : vector<32x8xf32> to vector<16x1xf32>
      %149 = vector.extract_strided_slice %97 {offsets = [1, 0], sizes = [1, 64], strides = [1, 1]} : vector<8x64xf32> to vector<1x64xf32>
      %150 = vector.broadcast %148 : vector<16x1xf32> to vector<16x64xf32>
      %151 = vector.broadcast %149 : vector<1x64xf32> to vector<16x64xf32>
      %152 = arith.mulf %150, %151 : vector<16x64xf32>
      %153 = vector.extract_strided_slice %126 {offsets = [16, 0], sizes = [16, 64], strides = [1, 1]} : vector<128x64xf32> to vector<16x64xf32>
      %154 = arith.mulf %134, %153 : vector<16x64xf32>
      %155 = arith.addf %154, %152 : vector<16x64xf32>
      %156 = vector.extract_strided_slice %100 {offsets = [16, 1], sizes = [16, 1], strides = [1, 1]} : vector<32x8xf32> to vector<16x1xf32>
      %157 = vector.broadcast %156 : vector<16x1xf32> to vector<16x64xf32>
      %158 = arith.mulf %157, %155 : vector<16x64xf32>
      %cst_73 = arith.constant dense<0.000000e+00> : vector<64xf32>
      %159 = vector.multi_reduction <add>, %158, %cst_73 [0] : vector<16x64xf32> to vector<64xf32>
      %160 = vector.shape_cast %159 : vector<64xf32> to vector<1x64xf32>
      %161 = vector.extract_strided_slice %96 {offsets = [1, 0], sizes = [1, 64], strides = [1, 1]} : vector<8x64xf32> to vector<1x64xf32>
      %162 = arith.addf %160, %161 : vector<1x64xf32>
      %163 = vector.extract_strided_slice %94 {offsets = [1, 0], sizes = [1, 64], strides = [1, 1]} : vector<8x64xf32> to vector<1x64xf32>
      %164 = arith.mulf %162, %163 : vector<1x64xf32>
      %c8_i32_74 = arith.constant 8 : i32
      %165 = arith.addi %c8_i32_74, %80 : i32
      %c1_i32_75 = arith.constant 1 : i32
      %166 = arith.addi %165, %c1_i32_75 : i32
      %167 = arith.index_cast %166 : i32 to index
      %c0_76 = arith.constant 0 : index
      %168 = vector.load %arg18[%167, %c0_76] : memref<24x64xf32, #tpu.memory_space<vmem>>, vector<1x64xf32>
      tpu.vector_store %arg18[%167, %c0_76], %164 {strides = array<i32>} : memref<24x64xf32, #tpu.memory_space<vmem>>, vector<1x64xf32>,
      %169 = vector.extract_strided_slice %100 {offsets = [0, 2], sizes = [16, 1], strides = [1, 1]} : vector<32x8xf32> to vector<16x1xf32>
      %170 = vector.extract_strided_slice %97 {offsets = [2, 0], sizes = [1, 64], strides = [1, 1]} : vector<8x64xf32> to vector<1x64xf32>
      %171 = vector.broadcast %169 : vector<16x1xf32> to vector<16x64xf32>
      %172 = vector.broadcast %170 : vector<1x64xf32> to vector<16x64xf32>
      %173 = arith.mulf %171, %172 : vector<16x64xf32>
      %174 = vector.extract_strided_slice %126 {offsets = [32, 0], sizes = [16, 64], strides = [1, 1]} : vector<128x64xf32> to vector<16x64xf32>
      %175 = arith.mulf %155, %174 : vector<16x64xf32>
      %176 = arith.addf %175, %173 : vector<16x64xf32>
      %177 = vector.extract_strided_slice %100 {offsets = [16, 2], sizes = [16, 1], strides = [1, 1]} : vector<32x8xf32> to vector<16x1xf32>
      %178 = vector.broadcast %177 : vector<16x1xf32> to vector<16x64xf32>
      %179 = arith.mulf %178, %176 : vector<16x64xf32>
      %cst_77 = arith.constant dense<0.000000e+00> : vector<64xf32>
      %180 = vector.multi_reduction <add>, %179, %cst_77 [0] : vector<16x64xf32> to vector<64xf32>
      %181 = vector.shape_cast %180 : vector<64xf32> to vector<1x64xf32>
      %182 = vector.extract_strided_slice %96 {offsets = [2, 0], sizes = [1, 64], strides = [1, 1]} : vector<8x64xf32> to vector<1x64xf32>
      %183 = arith.addf %181, %182 : vector<1x64xf32>
      %184 = vector.extract_strided_slice %94 {offsets = [2, 0], sizes = [1, 64], strides = [1, 1]} : vector<8x64xf32> to vector<1x64xf32>
      %185 = arith.mulf %183, %184 : vector<1x64xf32>
      %c8_i32_78 = arith.constant 8 : i32
      %186 = arith.addi %c8_i32_78, %80 : i32
      %c2_i32_79 = arith.constant 2 : i32
      %187 = arith.addi %186, %c2_i32_79 : i32
      %188 = arith.index_cast %187 : i32 to index
      %c0_80 = arith.constant 0 : index
      %189 = vector.load %arg18[%188, %c0_80] : memref<24x64xf32, #tpu.memory_space<vmem>>, vector<1x64xf32>
      tpu.vector_store %arg18[%188, %c0_80], %185 {strides = array<i32>} : memref<24x64xf32, #tpu.memory_space<vmem>>, vector<1x64xf32>,
      %190 = vector.extract_strided_slice %100 {offsets = [0, 3], sizes = [16, 1], strides = [1, 1]} : vector<32x8xf32> to vector<16x1xf32>
      %191 = vector.extract_strided_slice %97 {offsets = [3, 0], sizes = [1, 64], strides = [1, 1]} : vector<8x64xf32> to vector<1x64xf32>
      %192 = vector.broadcast %190 : vector<16x1xf32> to vector<16x64xf32>
      %193 = vector.broadcast %191 : vector<1x64xf32> to vector<16x64xf32>
      %194 = arith.mulf %192, %193 : vector<16x64xf32>
      %195 = vector.extract_strided_slice %126 {offsets = [48, 0], sizes = [16, 64], strides = [1, 1]} : vector<128x64xf32> to vector<16x64xf32>
      %196 = arith.mulf %176, %195 : vector<16x64xf32>
      %197 = arith.addf %196, %194 : vector<16x64xf32>
      %198 = vector.extract_strided_slice %100 {offsets = [16, 3], sizes = [16, 1], strides = [1, 1]} : vector<32x8xf32> to vector<16x1xf32>
      %199 = vector.broadcast %198 : vector<16x1xf32> to vector<16x64xf32>
      %200 = arith.mulf %199, %197 : vector<16x64xf32>
      %cst_81 = arith.constant dense<0.000000e+00> : vector<64xf32>
      %201 = vector.multi_reduction <add>, %200, %cst_81 [0] : vector<16x64xf32> to vector<64xf32>
      %202 = vector.shape_cast %201 : vector<64xf32> to vector<1x64xf32>
      %203 = vector.extract_strided_slice %96 {offsets = [3, 0], sizes = [1, 64], strides = [1, 1]} : vector<8x64xf32> to vector<1x64xf32>
      %204 = arith.addf %202, %203 : vector<1x64xf32>
      %205 = vector.extract_strided_slice %94 {offsets = [3, 0], sizes = [1, 64], strides = [1, 1]} : vector<8x64xf32> to vector<1x64xf32>
      %206 = arith.mulf %204, %205 : vector<1x64xf32>
      %c8_i32_82 = arith.constant 8 : i32
      %207 = arith.addi %c8_i32_82, %80 : i32
      %c3_i32 = arith.constant 3 : i32
      %208 = arith.addi %207, %c3_i32 : i32
      %209 = arith.index_cast %208 : i32 to index
      %c0_83 = arith.constant 0 : index
      %210 = vector.load %arg18[%209, %c0_83] : memref<24x64xf32, #tpu.memory_space<vmem>>, vector<1x64xf32>
      tpu.vector_store %arg18[%209, %c0_83], %206 {strides = array<i32>} : memref<24x64xf32, #tpu.memory_space<vmem>>, vector<1x64xf32>,
      %211 = vector.extract_strided_slice %100 {offsets = [0, 4], sizes = [16, 1], strides = [1, 1]} : vector<32x8xf32> to vector<16x1xf32>
      %212 = vector.extract_strided_slice %97 {offsets = [4, 0], sizes = [1, 64], strides = [1, 1]} : vector<8x64xf32> to vector<1x64xf32>
      %213 = vector.broadcast %211 : vector<16x1xf32> to vector<16x64xf32>
      %214 = vector.broadcast %212 : vector<1x64xf32> to vector<16x64xf32>
      %215 = arith.mulf %213, %214 : vector<16x64xf32>
      %216 = vector.extract_strided_slice %126 {offsets = [64, 0], sizes = [16, 64], strides = [1, 1]} : vector<128x64xf32> to vector<16x64xf32>
      %217 = arith.mulf %197, %216 : vector<16x64xf32>
      %218 = arith.addf %217, %215 : vector<16x64xf32>
      %219 = vector.extract_strided_slice %100 {offsets = [16, 4], sizes = [16, 1], strides = [1, 1]} : vector<32x8xf32> to vector<16x1xf32>
      %220 = vector.broadcast %219 : vector<16x1xf32> to vector<16x64xf32>
      %221 = arith.mulf %220, %218 : vector<16x64xf32>
      %cst_84 = arith.constant dense<0.000000e+00> : vector<64xf32>
      %222 = vector.multi_reduction <add>, %221, %cst_84 [0] : vector<16x64xf32> to vector<64xf32>
      %223 = vector.shape_cast %222 : vector<64xf32> to vector<1x64xf32>
      %224 = vector.extract_strided_slice %96 {offsets = [4, 0], sizes = [1, 64], strides = [1, 1]} : vector<8x64xf32> to vector<1x64xf32>
      %225 = arith.addf %223, %224 : vector<1x64xf32>
      %226 = vector.extract_strided_slice %94 {offsets = [4, 0], sizes = [1, 64], strides = [1, 1]} : vector<8x64xf32> to vector<1x64xf32>
      %227 = arith.mulf %225, %226 : vector<1x64xf32>
      %c8_i32_85 = arith.constant 8 : i32
      %228 = arith.addi %c8_i32_85, %80 : i32
      %c4_i32 = arith.constant 4 : i32
      %229 = arith.addi %228, %c4_i32 : i32
      %230 = arith.index_cast %229 : i32 to index
      %c0_86 = arith.constant 0 : index
      %231 = vector.load %arg18[%230, %c0_86] : memref<24x64xf32, #tpu.memory_space<vmem>>, vector<1x64xf32>
      tpu.vector_store %arg18[%230, %c0_86], %227 {strides = array<i32>} : memref<24x64xf32, #tpu.memory_space<vmem>>, vector<1x64xf32>,
      %232 = vector.extract_strided_slice %100 {offsets = [0, 5], sizes = [16, 1], strides = [1, 1]} : vector<32x8xf32> to vector<16x1xf32>
      %233 = vector.extract_strided_slice %97 {offsets = [5, 0], sizes = [1, 64], strides = [1, 1]} : vector<8x64xf32> to vector<1x64xf32>
      %234 = vector.broadcast %232 : vector<16x1xf32> to vector<16x64xf32>
      %235 = vector.broadcast %233 : vector<1x64xf32> to vector<16x64xf32>
      %236 = arith.mulf %234, %235 : vector<16x64xf32>
      %237 = vector.extract_strided_slice %126 {offsets = [80, 0], sizes = [16, 64], strides = [1, 1]} : vector<128x64xf32> to vector<16x64xf32>
      %238 = arith.mulf %218, %237 : vector<16x64xf32>
      %239 = arith.addf %238, %236 : vector<16x64xf32>
      %240 = vector.extract_strided_slice %100 {offsets = [16, 5], sizes = [16, 1], strides = [1, 1]} : vector<32x8xf32> to vector<16x1xf32>
      %241 = vector.broadcast %240 : vector<16x1xf32> to vector<16x64xf32>
      %242 = arith.mulf %241, %239 : vector<16x64xf32>
      %cst_87 = arith.constant dense<0.000000e+00> : vector<64xf32>
      %243 = vector.multi_reduction <add>, %242, %cst_87 [0] : vector<16x64xf32> to vector<64xf32>
      %244 = vector.shape_cast %243 : vector<64xf32> to vector<1x64xf32>
      %245 = vector.extract_strided_slice %96 {offsets = [5, 0], sizes = [1, 64], strides = [1, 1]} : vector<8x64xf32> to vector<1x64xf32>
      %246 = arith.addf %244, %245 : vector<1x64xf32>
      %247 = vector.extract_strided_slice %94 {offsets = [5, 0], sizes = [1, 64], strides = [1, 1]} : vector<8x64xf32> to vector<1x64xf32>
      %248 = arith.mulf %246, %247 : vector<1x64xf32>
      %c8_i32_88 = arith.constant 8 : i32
      %249 = arith.addi %c8_i32_88, %80 : i32
      %c5_i32 = arith.constant 5 : i32
      %250 = arith.addi %249, %c5_i32 : i32
      %251 = arith.index_cast %250 : i32 to index
      %c0_89 = arith.constant 0 : index
      %252 = vector.load %arg18[%251, %c0_89] : memref<24x64xf32, #tpu.memory_space<vmem>>, vector<1x64xf32>
      tpu.vector_store %arg18[%251, %c0_89], %248 {strides = array<i32>} : memref<24x64xf32, #tpu.memory_space<vmem>>, vector<1x64xf32>,
      %253 = vector.extract_strided_slice %100 {offsets = [0, 6], sizes = [16, 1], strides = [1, 1]} : vector<32x8xf32> to vector<16x1xf32>
      %254 = vector.extract_strided_slice %97 {offsets = [6, 0], sizes = [1, 64], strides = [1, 1]} : vector<8x64xf32> to vector<1x64xf32>
      %255 = vector.broadcast %253 : vector<16x1xf32> to vector<16x64xf32>
      %256 = vector.broadcast %254 : vector<1x64xf32> to vector<16x64xf32>
      %257 = arith.mulf %255, %256 : vector<16x64xf32>
      %258 = vector.extract_strided_slice %126 {offsets = [96, 0], sizes = [16, 64], strides = [1, 1]} : vector<128x64xf32> to vector<16x64xf32>
      %259 = arith.mulf %239, %258 : vector<16x64xf32>
      %260 = arith.addf %259, %257 : vector<16x64xf32>
      %261 = vector.extract_strided_slice %100 {offsets = [16, 6], sizes = [16, 1], strides = [1, 1]} : vector<32x8xf32> to vector<16x1xf32>
      %262 = vector.broadcast %261 : vector<16x1xf32> to vector<16x64xf32>
      %263 = arith.mulf %262, %260 : vector<16x64xf32>
      %cst_90 = arith.constant dense<0.000000e+00> : vector<64xf32>
      %264 = vector.multi_reduction <add>, %263, %cst_90 [0] : vector<16x64xf32> to vector<64xf32>
      %265 = vector.shape_cast %264 : vector<64xf32> to vector<1x64xf32>
      %266 = vector.extract_strided_slice %96 {offsets = [6, 0], sizes = [1, 64], strides = [1, 1]} : vector<8x64xf32> to vector<1x64xf32>
      %267 = arith.addf %265, %266 : vector<1x64xf32>
      %268 = vector.extract_strided_slice %94 {offsets = [6, 0], sizes = [1, 64], strides = [1, 1]} : vector<8x64xf32> to vector<1x64xf32>
      %269 = arith.mulf %267, %268 : vector<1x64xf32>
      %c8_i32_91 = arith.constant 8 : i32
      %270 = arith.addi %c8_i32_91, %80 : i32
      %c6_i32 = arith.constant 6 : i32
      %271 = arith.addi %270, %c6_i32 : i32
      %272 = arith.index_cast %271 : i32 to index
      %c0_92 = arith.constant 0 : index
      %273 = vector.load %arg18[%272, %c0_92] : memref<24x64xf32, #tpu.memory_space<vmem>>, vector<1x64xf32>
      tpu.vector_store %arg18[%272, %c0_92], %269 {strides = array<i32>} : memref<24x64xf32, #tpu.memory_space<vmem>>, vector<1x64xf32>,
      %274 = vector.extract_strided_slice %100 {offsets = [0, 7], sizes = [16, 1], strides = [1, 1]} : vector<32x8xf32> to vector<16x1xf32>
      %275 = vector.extract_strided_slice %97 {offsets = [7, 0], sizes = [1, 64], strides = [1, 1]} : vector<8x64xf32> to vector<1x64xf32>
      %276 = vector.broadcast %274 : vector<16x1xf32> to vector<16x64xf32>
      %277 = vector.broadcast %275 : vector<1x64xf32> to vector<16x64xf32>
      %278 = arith.mulf %276, %277 : vector<16x64xf32>
      %279 = vector.extract_strided_slice %126 {offsets = [112, 0], sizes = [16, 64], strides = [1, 1]} : vector<128x64xf32> to vector<16x64xf32>
      %280 = arith.mulf %260, %279 : vector<16x64xf32>
      %281 = arith.addf %280, %278 : vector<16x64xf32>
      %282 = vector.extract_strided_slice %100 {offsets = [16, 7], sizes = [16, 1], strides = [1, 1]} : vector<32x8xf32> to vector<16x1xf32>
      %283 = vector.broadcast %282 : vector<16x1xf32> to vector<16x64xf32>
      %284 = arith.mulf %283, %281 : vector<16x64xf32>
      %cst_93 = arith.constant dense<0.000000e+00> : vector<64xf32>
      %285 = vector.multi_reduction <add>, %284, %cst_93 [0] : vector<16x64xf32> to vector<64xf32>
      %286 = vector.shape_cast %285 : vector<64xf32> to vector<1x64xf32>
      %287 = vector.extract_strided_slice %96 {offsets = [7, 0], sizes = [1, 64], strides = [1, 1]} : vector<8x64xf32> to vector<1x64xf32>
      %288 = arith.addf %286, %287 : vector<1x64xf32>
      %289 = vector.extract_strided_slice %94 {offsets = [7, 0], sizes = [1, 64], strides = [1, 1]} : vector<8x64xf32> to vector<1x64xf32>
      %290 = arith.mulf %288, %289 : vector<1x64xf32>
      %c8_i32_94 = arith.constant 8 : i32
      %291 = arith.addi %c8_i32_94, %80 : i32
      %c7_i32 = arith.constant 7 : i32
      %292 = arith.addi %291, %c7_i32 : i32
      %293 = arith.index_cast %292 : i32 to index
      %c0_95 = arith.constant 0 : index
      %294 = vector.load %arg18[%293, %c0_95] : memref<24x64xf32, #tpu.memory_space<vmem>>, vector<1x64xf32>
      tpu.vector_store %arg18[%293, %c0_95], %290 {strides = array<i32>} : memref<24x64xf32, #tpu.memory_space<vmem>>, vector<1x64xf32>,
      scf.yield %281 : vector<16x64xf32>
    }
    %c2_i32_52 = arith.constant 2 : i32
    %c0_53 = arith.constant 0 : index
    %c0_54 = arith.constant 0 : index
    %71 = vector.load %arg17[%c0_53, %c0_54] : memref<16x64xf32, #tpu.memory_space<vmem>>, vector<16x64xf32>
    tpu.vector_store %arg17[%c0_53, %c0_54], %70 {strides = array<i32>} : memref<16x64xf32, #tpu.memory_space<vmem>>, vector<16x64xf32>,
    %c8_55 = arith.constant 8 : index
    %c0_56 = arith.constant 0 : index
    %72 = vector.load %arg18[%c8_55, %c0_56] : memref<24x64xf32, #tpu.memory_space<vmem>>, vector<16x64xf32>
    %73 = arith.truncf %72 : vector<16x64xf32> to vector<16x64xbf16>
    %c0_57 = arith.constant 0 : index
    %c0_58 = arith.constant 0 : index
    %74 = vector.load %arg12[%c0_57, %c0_58] : memref<64x32xbf16, #tpu.memory_space<vmem>>, vector<64x32xbf16>
    %cst_59 = arith.constant dense<0.000000e+00> : vector<16x32xf32>
    %75 = tpu.matmul %73, %74, %cst_59 {dimension_numbers = #tpu.dot_dimension_numbers<[1], [0], [0], [1], [0, 0, 1, 1], [], []>} : vector<16x64xbf16>, vector<64x32xbf16>, vector<16x32xf32> -> vector<16x32xf32>
    %c0_60 = arith.constant 0 : index
    %c0_61 = arith.constant 0 : index
    %c0_62 = arith.constant 0 : index
    %76 = vector.load %arg13[%c0_60, %c0_61, %c0_62] : memref<1x16x32xf32, #tpu.memory_space<vmem>>, vector<1x16x32xf32>
    %77 = vector.shape_cast %76 : vector<1x16x32xf32> to vector<16x32xf32>
    %78 = vector.shape_cast %75 : vector<16x32xf32> to vector<1x16x32xf32>
    tpu.vector_store %arg13[%c0_60, %c0_61, %c0_62], %78 {strides = array<i32>} : memref<1x16x32xf32, #tpu.memory_space<vmem>>, vector<1x16x32xf32>,
    return
  }
  func.func @transform_0(%arg0: i32, %arg1: i32) -> (i32, i32, i32) {
    %c0_i32 = arith.constant 0 : i32
    %c0_i32_0 = arith.constant 0 : i32
    return %arg0, %arg1, %c0_i32 : i32, i32, i32
  }
  func.func @transform_1(%arg0: i32, %arg1: i32) -> (i32, i32) {
    %c0_i32 = arith.constant 0 : i32
    %c0_i32_0 = arith.constant 0 : i32
    %c0_i32_1 = arith.constant 0 : i32
    return %c0_i32, %c0_i32_0 : i32, i32
  }
  func.func @transform_2(%arg0: i32, %arg1: i32) -> (i32, i32) {
    %c0_i32 = arith.constant 0 : i32
    %c0_i32_0 = arith.constant 0 : i32
    %c0_i32_1 = arith.constant 0 : i32
    return %c0_i32, %c0_i32_0 : i32, i32
  }
  func.func @transform_3(%arg0: i32, %arg1: i32) -> (i32, i32) {
    %c0_i32 = arith.constant 0 : i32
    %c0_i32_0 = arith.constant 0 : i32
    %c0_i32_1 = arith.constant 0 : i32
    return %c0_i32, %c0_i32_0 : i32, i32
  }
  func.func @transform_4(%arg0: i32, %arg1: i32) -> (i32, i32) {
    %c0_i32 = arith.constant 0 : i32
    %c0_i32_0 = arith.constant 0 : i32
    %c0_i32_1 = arith.constant 0 : i32
    return %c0_i32, %c0_i32_0 : i32, i32
  }
  func.func @transform_5(%arg0: i32, %arg1: i32) -> (i32, i32) {
    %c0_i32 = arith.constant 0 : i32
    %c0_i32_0 = arith.constant 0 : i32
    %c0_i32_1 = arith.constant 0 : i32
    return %c0_i32, %c0_i32_0 : i32, i32
  }
  func.func @transform_6(%arg0: i32, %arg1: i32) -> (i32, i32) {
    %c0_i32 = arith.constant 0 : i32
    %c0_i32_0 = arith.constant 0 : i32
    %c0_i32_1 = arith.constant 0 : i32
    return %c0_i32, %c0_i32_0 : i32, i32
  }
  func.func @transform_7(%arg0: i32, %arg1: i32) -> (i32, i32) {
    %c0_i32 = arith.constant 0 : i32
    %c0_i32_0 = arith.constant 0 : i32
    %c0_i32_1 = arith.constant 0 : i32
    return %c0_i32, %c0_i32_0 : i32, i32
  }
  func.func @transform_8(%arg0: i32, %arg1: i32) -> (i32, i32) {
    %c0_i32 = arith.constant 0 : i32
    %c0_i32_0 = arith.constant 0 : i32
    %c0_i32_1 = arith.constant 0 : i32
    return %c0_i32, %c0_i32_0 : i32, i32
  }
  func.func @transform_9(%arg0: i32, %arg1: i32) -> (i32, i32) {
    %c0_i32 = arith.constant 0 : i32
    %c0_i32_0 = arith.constant 0 : i32
    %c0_i32_1 = arith.constant 0 : i32
    return %c0_i32, %c0_i32_0 : i32, i32
  }
  func.func @transform_10(%arg0: i32, %arg1: i32) -> (i32, i32) {
    %c0_i32 = arith.constant 0 : i32
    %c0_i32_0 = arith.constant 0 : i32
    %c0_i32_1 = arith.constant 0 : i32
    return %c0_i32, %c0_i32_0 : i32, i32
  }
  func.func @transform_11(%arg0: i32, %arg1: i32) -> (i32, i32, i32) {
    %c0_i32 = arith.constant 0 : i32
    %c0_i32_0 = arith.constant 0 : i32
    return %arg0, %arg1, %c0_i32 : i32, i32, i32
  }
}

</mosaic_0001>

<bundles_post_ra>
// kernel: tpu_custom_call.1
= control target key start
LH: loop header
LB: loop body
LE: loop exit
PB: predicated region body
PF: predicated region fallthrough
CT: control target
= control target key end

     0   :  { %s3029_s0 = inlined_call_operand.vmem [shape: f32[2,32,32], index: 0, kind: input, shape index: {}]   ;;  %s3030_s1 = inlined_call_operand.vmem [shape: bf16[32,64], index: 1, kind: input, shape index: {}]   ;;  %s3031_s2 = inlined_call_operand.hbm [shape: bf16[32,64], index: 2, kind: input, shape index: {}]   ;;  %s3032_s3 = inlined_call_operand.hbm [shape: f32[4,64], index: 3, kind: input, shape index: {}]   ;;  %s3033_s4 = inlined_call_operand.vmem [shape: f32[1,64], index: 4, kind: input, shape index: {}]   ;;  %s3034_s5 = inlined_call_operand.vmem [shape: bf16[64,128], index: 5, kind: input, shape index: {}]   ;;  %s3035_s6 = inlined_call_operand.vmem [shape: bf16[128,64], index: 6, kind: input, shape index: {}]   ;;  %s3036_s7 = inlined_call_operand.vmem [shape: f32[1,64], index: 7, kind: input, shape index: {}]   ;;  %s3037_s8 = inlined_call_operand.hbm [shape: f32[16,64], index: 8, kind: input, shape index: {}]   ;;  %s3038_s9 = inlined_call_operand.hbm [shape: f32[1,64], index: 9, kind: input, shape index: {}]   ;;  %s3039_s10 = inlined_call_operand.vmem [shape: bf16[64,32], index: 10, kind: input, shape index: {}]   ;;  %s3040_s11 = inlined_call_operand.hbm [shape: f32[2,32,32], index: 11, kind: output, shape index: {}]  }
   0x1   :  { %3046 = sst [smem:[#allocation27_spill]] %s3032_s3 }
   0x2   :  { %16 = vsyncpa [#allocation9], 0 }
   0x3   :  { %17 = vsyncpa [#allocation12], 0 }
   0x4   :  { %18 = vsyncpa [#allocation15], 0 }
   0x5   :  { %19 = vsyncpa [#allocation10], 0 }
   0x6   :  { %21 = vsyncpa [#allocation10 + $0x1], 0  ;;  %s2418_s17 = smov 0   ;;  %s2420_s18 = smov 0  }
   0x7   :  { %s2422_s19 = smov 0   ;;  %s2424_s20 = smov 0  }
   0x8   :  { %s2426_s21 = smov 0   ;;  %s2428_s22 = smov 0  }
   0x9   :  { %s2430_s23 = smov 0   ;;  %s2432_s24 = smov 0  }
   0xa LB: > { %3047 = sst [smem:[#allocation21_spill]] %s2302_s19  ;;  %s1679_s25 = sadd.s32 4294967295, %s2322_s24   ;;  %s2322_s24 = sphi %s2432_s24, %s27_s24   ;;  %s2318_s23 = sphi %s2430_s23, %s3068_s23   ;;  %s2314_s22 = sphi %s2428_s22, %s3067_s22   ;;  %s2310_s21 = sphi %s2426_s21, %s3066_s21   ;;  %s2306_s20 = sphi %s2424_s20, %s3065_s20   ;;  %s2302_s19 = sphi %s2422_s19, %s3064_s19   ;;  %s2298_s18 = sphi %s2420_s18, %s3070_s18   ;;  %s2294_s17 = sphi %s2418_s17, %s3069_s17  }
   0xb   : > { %3048 = sst [smem:[#allocation22_spill]] %s2314_s22  ;;  %s1680_s26 = sadd.s32 4294967294, %s2322_s24  }
   0xc   : > { %3049 = sst [smem:[#allocation23_spill]] %s2318_s23  ;;  %s36_s27 = sadd.s32 1, %s2314_s22 }
   0xd   : > { %s39_s28 = sadd.s32 1, %s2318_s23  ;;  %p37_p0 = scmp.ge.s32.totalorder %s36_s27, 2 }
   0xe   : > { %s286_s29 = sadd.s32 1, %s2302_s19  ;;  %p296_p1 = scmp.ne.s32.totalorder %s2302_s19, %s2298_s18 }
   0xf   : > { %p297_p2 = scmp.eq.s32.totalorder %s1679_s25, 3  ;;  %s3072_s27 = smov (%p37_p0, %s36_s27), 0 }
  0x10   : > { %3050 = sst [smem:[#allocation24_spill]] %s3072_s27  ;;  %s3074_s28 = smov (!%p37_p0, %s39_s28), %s2318_s23 }
  0x11   : > { %s282_s30 = ssub.s32 %s2314_s22, %s3072_s27  ;;  %p2470_p3 = por %p297_p2, %p296_p1 }
  0x12   : > { %p41_p4 = scmp.ge.s32.totalorder %s3074_s28, 2  ;;  %p302_p5 = scmp.ne.s32.totalorder %s2298_s18, %s2294_s17 }
  0x13   : > { %p303_p6 = scmp.eq.s32.totalorder %s1680_s26, 3  ;;  %p1681_p7 = scmp.ge.s32.totalorder %s2322_s24, 1 }
  0x14   : > { %s3076_s28 = smov (%p41_p4, %s3074_s28), 0  ;;  %p310_p9 = scmp.lt.s32.totalorder %s2322_s24, 5 }
  0x15   : > { %3052 = sst [smem:[#allocation25_spill]] %s3076_s28  ;;  %p2479_p8 = por %p303_p6, %p302_p5 }
  0x16   : > { %s281_s14 = ssub.s32 %s2318_s23, %s3076_s28  ;;  %p2486_p10 = pnand %p1681_p7, %p310_p9 }
  0x17   : > { %s3053_s13 = scalar_select %p2479_p8, 1, 0 }
  0x18   : > { %s283_s15 = sor.u32 %s282_s30, %s281_s14  ;;  %p2490_p12 = scmp.eq.s32.totalorder %s1679_s25, 0 }
  0x19   : > { %p284_p11 = scmp.eq.s32.totalorder %s283_s15, 0  ;;  %p1864_p13 = pneg %p2486_p10 }
  0x1a   : > { %s2336_s30 = smov [#allocation11]  }
  0x1b   : > { %s2497_s26 = scalar_select %p284_p11, %s2302_s19, %s286_s29  }
  0x1c   : > { %p2501_p0 = pnand %p2490_p12, %p1864_p13  ;;  %s339_s14 = sshll.u32 %s2336_s30, 4  ;;  %s340_s14 = int_to_ptr.vmem [resolvable:$true] %s339_s14 }
  0x1d   : > { %3056 = sst [smem:[#allocation26_spill]] %s2497_s26  ;;  %s2113_s25 = scalar_lea.vmem %s340_s14, 64 }
  0x1e   : > { %p2104_p1 = pneg %p2501_p0  ;;  %p2114_p2 = scmp.ne.s32.totalorder %s340_s14, %s2113_s25 }
  0x1f   : > { %p2121_p6 = scmp.lt.s32.totalorder %s340_s14, %s340_s14  ;;  %p2122_p7 = scmp.lt.s32.totalorder %s2113_s25, %s2113_s25 }
  0x20   : > { %p2116_p4 = pnand %p2114_p2, %p2104_p1 }
  0x21   : > { %p2123_p9 = por %p2122_p7, %p2121_p6 }
  0x22   : > { %p2117_p5 = pneg %p2116_p4 }
  0x24   : > { %p2124_p11 = pnand %p2123_p9, %p2117_p5 }
  0x26   : > { %2127 = shalt.err (!%p2124_p11)
}
  0x27   : > { %s3058_s3 = sld [smem:[#allocation27_spill]]  ;;  %s2337_s30 = smov [#allocation8]  }
  0x28   : > { %s325_s28 = sshll.u32 %s2337_s30, 4  ;;  %s326_s28 = int_to_ptr.vmem [resolvable:$true] %s325_s28 }
  0x29   : > { %s2139_s23 = scalar_lea.vmem %s326_s28, 256  ;;  %p2147_p8 = scmp.lt.s32.totalorder %s326_s28, %s326_s28 }
  0x2a   : > { %p2140_p13 = scmp.ne.s32.totalorder %s326_s28, %s2139_s23  ;;  %p2148_p6 = scmp.lt.s32.totalorder %s2139_s23, %s2139_s23 }
  0x2c   : > { %p2142_p2 = pnand %p2140_p13, %p2104_p1  ;;  %p2149_p5 = por %p2148_p6, %p2147_p8 }
  0x2d   : > { %1870 = dma.hbm_to_vmem [thread:$0]  (!%p2501_p0), %s3058_s3, 64, %s340_s14, [#allocation12]  }
  0x2e   : > { %p2143_p4 = pneg %p2142_p2 }
  0x30   : > { %p2150_p7 = pnand %p2149_p5, %p2143_p4 }
  0x32   : > { %2153 = shalt.err (!%p2150_p7)
}
  0x33   : > { %s2338_s25 = smov 64   ;;  %s2339_s29 = smov 4  }
  0x34   : > { %1867 = dma.hbm_to_vmem [thread:$0]  (!%p2501_p0), %s3031_s2, 256, %s326_s28, [#allocation9], %s2338_s25, %s2338_s25, %s2339_s29  }
  0x35   : > { %s2340_s30 = smov [#allocation13]  }
  0x36   : > { %s361_s3 = sshll.u32 %s2340_s30, 4  ;;  %s362_s3 = int_to_ptr.vmem [resolvable:$true] %s361_s3 }
  0x37   : > { %s2165_s26 = scalar_lea.vmem %s362_s3, 256  ;;  %p2173_p13 = scmp.lt.s32.totalorder %s362_s3, %s362_s3 }
  0x38   : > { %p2166_p9 = scmp.ne.s32.totalorder %s362_s3, %s2165_s26  ;;  %p2174_p2 = scmp.lt.s32.totalorder %s2165_s26, %s2165_s26 }
  0x3a   : > { %p2168_p11 = pnand %p2166_p9, %p2104_p1  ;;  %p2175_p4 = por %p2174_p2, %p2173_p13 }
  0x3c   : > { %p2169_p8 = pneg %p2168_p11 }
  0x3e   : > { %p2176_p6 = pnand %p2175_p4, %p2169_p8 }
  0x40   : > { %2179 = shalt.err (!%p2176_p6)
}
  0x41   : > { %s2341_s23 = smov 128   ;;  %s2342_s19 = smov 8  }
  0x42   : > { %1873 = dma.hbm_to_vmem [thread:$0]  (!%p2501_p0), %s3037_s8, 256, %s362_s3, [#allocation12], %s2341_s23, %s2341_s23, %s2342_s19  }
  0x43   : > { %s2343_s29 = smov [#allocation14]  }
  0x44   : > { %s375_s14 = sshll.u32 %s2343_s29, 4  ;;  %s376_s14 = int_to_ptr.vmem [resolvable:$true] %s375_s14 }
  0x45   : > { %s2191_s15 = scalar_lea.vmem %s376_s14, 16  ;;  %s2198_s26 = scalar_lea.vmem %s376_s14, 32 }
  0x46   : > { %p2192_p5 = scmp.ne.s32.totalorder %s376_s14, %s2191_s15  ;;  %p2199_p11 = scmp.lt.s32.totalorder %s376_s14, %s376_s14 }
  0x47   : > { %p2200_p8 = scmp.lt.s32.totalorder %s2198_s26, %s2191_s15 }
  0x48   : > { %p2194_p7 = pnand %p2192_p5, %p2104_p1 }
  0x49   : > { %p2201_p13 = por %p2200_p8, %p2199_p11 }
  0x4a   : > { %p2195_p9 = pneg %p2194_p7 }
  0x4c   : > { %p2202_p2 = pnand %p2201_p13, %p2195_p9 }
  0x4e   : > { %2205 = shalt.err (!%p2202_p2)
}
  0x4f   : > { %1876 = dma.hbm_to_vmem [thread:$0]  (!%p2501_p0), %s3038_s9, 16, %s376_s14, [#allocation15]  }
  0x50   : > { %404 = sbr.rel (%p2486_p10) target bundleno = 1430 (0x596), region = 64 }
  0x55   : > { %2277 = dma.done.wait (%p2490_p12), [#allocation9], 256  }
  0x56   : > { %2279 = vsyncadd (%p2490_p12), [#allocation9], 4294967040 }
  0x57   : > { %2281 = dma.done.wait (%p2490_p12), [#allocation12], 320  }
  0x58   : > { %2283 = vsyncadd (%p2490_p12), [#allocation12], 4294966976 }
  0x59   : > { %2285 = dma.done.wait (%p2490_p12), [#allocation15], 16  }
  0x5a   : > { %2287 = vsyncadd (%p2490_p12), [#allocation15], 4294967280  ;;  %s457_s3 = sand.u32 1, %s2298_s18   ;;  %s2555_s19 = sshll.u32 %s2306_s20, 1 }
  0x5b   : > { %s1692_s22 = sshll.u32 %s457_s3, 4  ;;  %p461_p10 = scmp.lt.s32.totalorder %s2310_s21, 1 }
  0x5c   : > { %p463_p0 = scmp.lt.s32.totalorder %s2555_s19, 3  ;;  %s2566_s30 = scalar_lea.vmem [#allocation16], %s1692_s22 }
  0x5d   : > { %s462_s16 = scalar_select %p461_p10, %s2310_s21, 1 }
  0x5e   : > { %s464_s23 = scalar_select %p463_p0, %s2555_s19, 3 }
  0x5f   : > { %s1694_s25 = sshll.u32 %s462_s16, 2  ;;  %p1696_p12 = scmp.ne.s32.totalorder %s2306_s20, 0 }
  0x60   : > { %s466_s29 = sadd.s32 %s1694_s25, %s464_s23 }
  0x61   : > { %s1695_s27 = sshll.u32 %s466_s29, 3  ;;  %475 = sbr.rel (%p1696_p12) target bundleno = 105 (0x69), region = 84 }
  0x62   : > { %s468_s26 = scalar_lea.vmem %s3029_s0, %s1695_s27 }
  0x66   : > { %vm476_vm0 = vcmask 523264   ;;  %v2344_v0 = vmov 0.0  }
  0x67   : > { %477 = vst.msk [vmem:[#allocation5] sm:$0xff] %vm476_vm0, %v2344_v0  ;;  %478 = vst.msk [vmem:[#allocation5 + $0x8] sm:$0xff] %vm476_vm0, %v2344_v0 }
  0x68   : > { %479 = vst.msk [vmem:[#allocation6] sm:$0xff] %vm476_vm0, %v2344_v0 }
  0x69 PF: > { %p1697_p1 = scmp.le.s32.totalorder %s2306_s20, 0 }
  0x6b   : > { %483 = sbr.rel (%p1697_p1) target bundleno = 114 (0x72), region = 88 }
  0x70   : > { %v484_v1 = vld [vmem:[#allocation7] sm:$0x7]  ;;  %vm485_vm1 = vcmask 518144  }
  0x71   : > { %486 = vst.msk [vmem:[#allocation6 + $0x5] sm:$0x7] %vm485_vm1, %v484_v1 }
  0x72 PF: > { %v2000_v2 = vld [vmem:[%s3030_s1 + $0x8] sm:$0xff]   ;;  %v2345_v3 = vmov 0.0   ;;  %v2001_v4 = vld [vmem:[%s3030_s1] sm:$0xff]   ;;  %vm2346_vm2 = vmmov 0   ;;  %vm506_vm3 = vcmask 261120   ;;  %v2002_v8 = vld [vmem:[%s3034_s5 + $0x18] sm:$0xff]  }
  0x73   : > { %1786 = vmatprep.subr.bf16.mxu0 %v2345_v3  ;;  %1794 = vmatprep.subr.bf16.mxu1 %v2345_v3  ;;  %v487_v5 = vld [vmem:[%s468_s26] sm:$0xff]  ;;  %v488_v6 = vld [vmem:[%s468_s26 + $0x8] sm:$0xff]  ;;  %v2003_v9 = vld [vmem:[%s3034_s5 + $0x10] sm:$0xff]   ;;  %vm619_vm4 = vcmask 523264   ;;  %vm623_vm5 = vcmask 518144   ;;  %vm616_vm6 = vcmask 519168  }
  0x74   : > { %1787 = vmatpush3.bf16.msra.mxu0 %v2000_v2  ;;  %1790 = vmatprep.mubr.msk.bf16.mxu0 %vm2346_vm2, %v2345_v3  ;;  %v489_v7 = vpack.c.bf16 %v488_v6, %v487_v5  ;;  %v2004_v10 = vld [vmem:[%s3034_s5 + $0x8] sm:$0xff]   ;;  %v2005_v11 = vld [vmem:[%s3034_s5] sm:$0xff]   ;;  %v2007_v13 = vld [vmem:[#allocation8] sm:$0xff]   ;;  %s2661_s26 = smov 0  }
  0x75   : > { %1788 = vmatprep.subr.bf16.mxu0 %v2345_v3  ;;  %1798 = vmatprep.mubr.msk.bf16.mxu1 %vm2346_vm2, %v2345_v3  ;;  %v2006_v12 = vld [vmem:[#allocation8 + $0x8] sm:$0xff]   ;;  %v2008_v14 = vld [vmem:[%s3035_s6 + $0x38] sm:$0xff]   ;;  %v2009_v15 = vld [vmem:[%s3035_s6 + $0x30] sm:$0xff]  }
  0x76   : > { %1795 = vmatpush3.bf16.msra.mxu1 %v2006_v12  ;;  %v2010_v16 = vld [vmem:[%s3035_s6 + $0x28] sm:$0xff]   ;;  %v2011_v17 = vld [vmem:[%s3035_s6 + $0x20] sm:$0xff]   ;;  %v2012_v18 = vld [vmem:[%s3035_s6 + $0x18] sm:$0xff]  }
  0x77   : > { %1796 = vmatprep.subr.bf16.mxu1 %v2345_v3  ;;  %v2013_v19 = vld [vmem:[%s3035_s6 + $0x10] sm:$0xff]   ;;  %v1706_v24 = vld [vmem:[#allocation11] ss:$0 sm:$0xff]  ;;  %v1708_v25 = vld [vmem:[#allocation11 + $0x1] ss:$0 sm:$0xff] }
  0x78   : > { %1789 = vmatpush3.bf16.msra.mxu0 %v2001_v4  ;;  %v1707_v26 = vld [vmem:[%s3033_s4] ss:$0 sm:$0xff]  ;;  %v1709_v31 = vld [vmem:[#allocation11 + $0x2] ss:$0 sm:$0xff]  ;;  %v1710_v35 = vld [vmem:[#allocation11 + $0x3] ss:$0 sm:$0xff] }
  0x79   : > { %1802 = vmatprep.subr.bf16.mxu0 %v2345_v3  ;;  %v2014_v1 = vld [vmem:[%s3035_s6 + $0x8] sm:$0xff]   ;;  %v2015_v2 = vld [vmem:[%s3035_s6] sm:$0xff]  }
  0x7a   : > { %1797 = vmatpush3.bf16.msra.mxu1 %v2007_v13 }
  0x7b   : > { %1791 = vmatmul.mubr.msk.bf16.vlgmr.msra.gmra.mxu0 %vm506_vm3, %v489_v7  ;;  %1814 = vmatprep.subr.bf16.mxu1 %v2345_v3 }
  0x7c   : > { %1810 = vmatprep.mubr.msk.bf16.mxu0 %vm2346_vm2, %v2345_v3  ;;  %1803 = vmatpush3.bf16.msra.mxu0 %v2002_v8 }
  0x7d   : > { %1804 = vmatprep.subr.bf16.mxu0 %v2345_v3  ;;  %1799 = vmatmul.mubr.msk.bf16.vlgmr.msra.gmra.mxu1 %vm506_vm3, %v489_v7 }
  0x7e   : > { %1815 = vmatpush3.bf16.msra.mxu1 %v2008_v14  ;;  %1830 = vmatprep.mubr.msk.bf16.mxu1 %vm2346_vm2, %v2345_v3 }
  0x7f   : > { %1816 = vmatprep.subr.bf16.mxu1 %v2345_v3 }
  0x80   : > { %1805 = vmatpush3.bf16.msra.mxu0 %v2003_v9 }
  0x81   : > { %1806 = vmatprep.subr.bf16.mxu0 %v2345_v3 }
  0x82   : > { %1817 = vmatpush3.bf16.msra.mxu1 %v2009_v15  ;;  %v2646_v15 = vld [vmem:[#allocation13] sm:$0xff] }
  0x83   : > { %1818 = vmatprep.subr.bf16.mxu1 %v2345_v3 }
  0x84   : > { %1807 = vmatpush3.bf16.msra.mxu0 %v2004_v10 }
  0x85   : > { %1808 = vmatprep.subr.bf16.mxu0 %v2345_v3 }
  0x86   : > { %1819 = vmatpush3.bf16.msra.mxu1 %v2010_v16  ;;  %v2648_v16 = vld [vmem:[#allocation13 + $0x8] sm:$0xff] }
  0x87   : > { %1820 = vmatprep.subr.bf16.mxu1 %v2345_v3 }
  0x88   : > { %1809 = vmatpush3.bf16.msra.mxu0 %v2005_v11 }
  0x8a   : > { %1821 = vmatpush3.bf16.msra.mxu1 %v2011_v17  ;;  %v2650_v17 = vld [vmem:[#allocation14] ss:$0 sm:$0xff] }
  0x8b   : > { %1822 = vmatprep.subr.bf16.mxu1 %v2345_v3 }
  0x8e   : > { %1823 = vmatpush3.bf16.msra.mxu1 %v2012_v18  ;;  %v919_v18 = vld [vmem:[#allocation5] sm:$0xff]  }
  0x8f   : > { %1824 = vmatprep.subr.bf16.mxu1 %v2345_v3 }
  0x92   : > { %1825 = vmatpush3.bf16.msra.mxu1 %v2013_v19  ;;  %v920_v19 = vld [vmem:[#allocation5 + $0x8] sm:$0xff]  }
  0x93   : > { %1826 = vmatprep.subr.bf16.mxu1 %v2345_v3 }
  0x96   : > { %1827 = vmatpush3.bf16.msra.mxu1 %v2014_v1 }
  0x97   : > { %1828 = vmatprep.subr.bf16.mxu1 %v2345_v3 }
  0x9a   : > { %1829 = vmatpush3.bf16.msra.mxu1 %v2015_v2 }
 0x13b   : > { %v544_v20 = vpop.f32.mrf.mxu0 }
 0x13c   : > { %620 = vst.msk [vmem:[#allocation6 + $0x8] sm:$0xff] %vm619_vm4, %v544_v20  ;;  %v1718_v20 = vld [vmem:[%s3036_s7] ss:$0 sm:$0xff] }
 0x13d   : > { %v1792_v21 = vpop.f32.mrf.mxu0  ;;  %v601_v4 = vpop.f32.mrf.mxu1 }
 0x13e   : > { %v1759_v5 = vpack.c.bf16 %v601_v4, %v601_v4 }
 0x13f   : > { %v547_v22 = vpop.f32.mrf.mxu0  ;;  %v1800_v6 = vpop.f32.mrf.mxu1 }
 0x140   : > { %621 = vst.msk [vmem:[#allocation6 + $0x10] sm:$0xff] %vm619_vm4, %v547_v22 }
 0x141   : > { %v1793_v23 = vpop.f32.mrf.mxu0  ;;  %617 = vst.msk [vmem:[#allocation2] sm:$0xf] %vm616_vm6, %v1759_v5  ;;  %v604_v7 = vpop.f32.mrf.mxu1 }
 0x142   : > { %v1760_v8 = vpack.c.bf16 %v604_v7, %v604_v7 }
 0x143   : > { %v626_v27 = vld [vmem:[#allocation6 + $0x5] sm:$0xff]  ;;  %v1801_v9 = vpop.f32.mrf.mxu1 }
 0x144   : > { %v643_v28 = vld [vmem:[#allocation6 + $0x6] sm:$0xff]  ;;  %v633_v29 = vmul.f32 %v1706_v24, %v626_v27  ;;  %618 = vst.msk [vmem:[#allocation2 + $0x4] sm:$0xf] %vm616_vm6, %v1760_v8 }
 0x145   : > { %v654_v30 = vld [vmem:[#allocation6 + $0x7] sm:$0xff]  ;;  %v650_v33 = vmul.f32 %v1708_v25, %v643_v28 }
 0x146   : > { %v641_v32 = vadd.f32 %v1707_v26, %v633_v29  ;;  %v665_v34 = vld [vmem:[#allocation6 + $0x8] sm:$0xff]  ;;  %v661_v41 = vmul.f32 %v1709_v31, %v654_v30 }
 0x147   : > { %v622_v36 = vld [vmem:[#allocation6 + $0x15] sm:$0x7]  ;;  %v627_v37 = vld [vmem:[#allocation6 + $0xd] sm:$0xff]  ;;  %v672_v46 = vmul.f32 %v1710_v35, %v665_v34 }
 0x148   : > { %v644_v38 = vld [vmem:[#allocation6 + $0xe] sm:$0xff]  ;;  %624 = vst.msk [vmem:[#allocation7] sm:$0x7] %vm623_vm5, %v622_v36  ;;  %v634_v39 = vmul.f32 %v1706_v24, %v627_v37  ;;  %v652_v40 = vadd.f32 %v650_v33, %v641_v32 }
 0x149   : > { %v655_v42 = vld [vmem:[#allocation6 + $0xf] sm:$0xff]  ;;  %v651_v44 = vmul.f32 %v1708_v25, %v644_v38 }
 0x14a   : > { %v642_v43 = vadd.f32 %v1707_v26, %v634_v39  ;;  %v663_v45 = vadd.f32 %v661_v41, %v652_v40  ;;  %v666_v47 = vld [vmem:[#allocation6 + $0x10] sm:$0xff]  ;;  %v662_v49 = vmul.f32 %v1709_v31, %v655_v42 }
 0x14b   : > { %v673_v52 = vmul.f32 %v1710_v35, %v666_v47 }
 0x14c   : > { %v653_v48 = vadd.f32 %v651_v44, %v642_v43  ;;  %v674_v50 = vadd.f32 %v672_v46, %v663_v45 }
 0x14e   : > { %v664_v51 = vadd.f32 %v662_v49, %v653_v48  ;;  %v1711_v53 = vmul.f32 -1.442695, %v674_v50 }
 0x150   : > { %v675_v54 = vadd.f32 %v673_v52, %v664_v51  ;;  %2016 = vpow2.f32 %v1711_v53 }
 0x152   : > { %v1712_v55 = vmul.f32 -1.442695, %v675_v54 }
 0x154   : > { %2018 = vpow2.f32 %v1712_v55 }
 0x15d   : > { %v2017_v56 = vpop.eup %2016 }
 0x15e   : > { %v682_v57 = vadd.f32 1.0, %v2017_v56 }
 0x160   : > { %2020 = vrcp.f32 %v682_v57 }
 0x161   : > { %v2019_v58 = vpop.eup %2018 }
 0x162   : > { %v683_v59 = vadd.f32 1.0, %v2019_v58 }
 0x164   : > { %2022 = vrcp.f32 %v683_v59 }
 0x16d   : > { %v2021_v60 = vpop.eup %2020 }
 0x16e   : > { %v688_v61 = vmul.f32 %v2021_v60, %v674_v50 }
 0x170   : > { %690 = vst.msk [vmem:[#allocation6 + $0x8] sm:$0xff] %vm619_vm4, %v688_v61 }
 0x171   : > { %v2023_v62 = vpop.eup %2022 }
 0x172   : > { %v689_v63 = vmul.f32 %v2023_v62, %v675_v54 }
 0x174   : > { %691 = vst.msk [vmem:[#allocation6 + $0x10] sm:$0xff] %vm619_vm4, %v689_v63  ;;  %v692_v0 = vpack.c.bf16 %v689_v63, %v688_v61 }
 0x176   : > { %1811 = vmatmul.mubr.msk.bf16.vlgmr.msra.gmra.mxu0 %vm619_vm4, %v692_v0 }
 0x236   : > { %v762_v10 = vpop.f32.mrf.mxu0 }
 0x237   : > { %769 = vst [vmem:[#allocation4] sm:$0xff] %v762_v10 }
 0x238   : > { %v1812_v11 = vpop.f32.mrf.mxu0 }
 0x23a   : > { %v765_v12 = vpop.f32.mrf.mxu0 }
 0x23b   : > { %770 = vst [vmem:[#allocation4 + $0x8] sm:$0xff] %v765_v12  ;;  %v771_v13 = vpack.c.bf16 %v765_v12, %v762_v10 }
 0x23c   : > { %v1813_v14 = vpop.f32.mrf.mxu0 }
 0x23d   : > { %1831 = vmatmul.mubr.bf16.vlgmr.msra.gmra.mxu1 %v771_v13 }
 0x2fd   : > { %v877_v21 = vpop.f32.mrf.mxu1 }
 0x2fe   : > { %v878_v22 = vadd.f32 %v1718_v20, %v877_v21 }
 0x2ff   : > { %v1832_v23 = vpop.f32.mrf.mxu1 }
 0x300   : > { %v884_v24 = vand.u32 2147483647, %v878_v22  ;;  %v910_v45 = vmax.f32 %v878_v22, 0.0 }
 0x301   : > { %v880_v25 = vpop.f32.mrf.mxu1 }
 0x302   : > { %v886_v26 = vsub.f32 0.0, %v884_v24  ;;  %v881_v27 = vadd.f32 %v1718_v20, %v880_v25 }
 0x303   : > { %v1833_v28 = vpop.f32.mrf.mxu1 }
 0x304   : > { %v888_v29 = vmul.f32 1.442695, %v886_v26  ;;  %v885_v30 = vand.u32 2147483647, %v881_v27  ;;  %v911_v52 = vmax.f32 %v881_v27, 0.0 }
 0x306   : > { %2024 = vpow2.f32 %v888_v29  ;;  %v887_v31 = vsub.f32 0.0, %v885_v30 }
 0x308   : > { %v890_v32 = vmul.f32 1.442695, %v887_v31 }
 0x30a   : > { %2026 = vpow2.f32 %v890_v32 }
 0x313   : > { %v2025_v33 = vpop.eup %2024 }
 0x314   : > { %v892_v34 = vadd.f32 1.0, %v2025_v33  ;;  %v895_v37 = vmul.f32 -0.5, %v2025_v33  ;;  %v898_v40 = vand.u32 2147483647, %v2025_v33 }
 0x316   : > { %2028 = vlog2.f32 %v892_v34  ;;  %v896_v38 = vadd.f32 1.0, %v895_v37  ;;  %vm899_vm7 = vcmp.lt.f32.partialorder %v898_v40, 0.0004427343 }
 0x317   : > { %v2027_v35 = vpop.eup %2026 }
 0x318   : > { %v901_v36 = vadd.f32 1.0, %v2027_v35  ;;  %v904_v39 = vmul.f32 -0.5, %v2027_v35  ;;  %v897_v43 = vmul.f32 %v2025_v33, %v896_v38  ;;  %v907_v46 = vand.u32 2147483647, %v2027_v35 }
 0x31a   : > { %2030 = vlog2.f32 %v901_v36  ;;  %v905_v44 = vadd.f32 1.0, %v904_v39  ;;  %vm908_vm8 = vcmp.lt.f32.partialorder %v907_v46, 0.0004427343 }
 0x31c   : > { %v906_v51 = vmul.f32 %v2027_v35, %v905_v44 }
 0x323   : > { %v2029_v41 = vpop.eup %2028 }
 0x324   : > { %v894_v42 = vmul.f32 0.6931472, %v2029_v41 }
 0x326   : > { %v900_v47 = vsel %vm899_vm7, %v897_v43, %v894_v42 }
 0x327   : > { %v2031_v48 = vpop.eup %2030  ;;  %v912_v49 = vadd.f32 %v910_v45, %v900_v47 }
 0x328   : > { %v903_v50 = vmul.f32 0.6931472, %v2031_v48 }
 0x329   : > { %914 = vst.msk [vmem:[#allocation3] sm:$0xff] %vm619_vm4, %v912_v49 }
 0x32a   : > { %v909_v53 = vsel %vm908_vm8, %v906_v51, %v903_v50 }
 0x32b   : > { %v913_v54 = vadd.f32 %v911_v52, %v909_v53 }
 0x32d   : > { %915 = vst.msk [vmem:[#allocation3 + $0x8] sm:$0xff] %vm619_vm4, %v913_v54 }
 0x32e LB: >> { %v2347_v55 = vmov 1   ;;  %s2673_s28 = sshll.u32 %s2334_s26, 3  ;;  %v2348_v57 = vmov 0   ;;  %v2349_v60 = vmov 2   ;;  %v2350_v61 = vmov 3   ;;  %s926_s26 = sadd.s32 1, %s2334_s26   ;;  %s2334_s26 = sphi %s2661_s26, %s926_s26   ;;  %v2330_v18 = vphi %v919_v18, %v3061_v18   ;;  %v2326_v19 = vphi %v920_v19, %v3060_v19  }
 0x32f   : >> { %2033 = vset.pattern.permute.xlu1 %v2347_v55  ;;  %s956_s16 = scalar_lea.vmem [#allocation4], %s2673_s28  ;;  %v2351_v0 = vmov 4   ;;  %v2352_v1 = vmov 5   ;;  %v2353_v2 = vmov 6   ;;  %v2354_v4 = vmov 7   ;;  %s930_s22 = scalar_lea.vmem [#allocation3], %s2673_s28 }
 0x330   : >> { %v957_v56 = vld [vmem:[%s956_s16] sm:$0xff]  ;;  %v990_v5 = vlaneseq  ;;  %s2728_s23 = scalar_lea.vmem [#allocation6], %s2673_s28  ;;  %s935_s20 = sshra.s32 %s2673_s28, 3  ;;  %vm1156_vm9 = vcmask 517121   ;;  %vm1285_vm10 = vcmask 520196   ;;  %vm1113_vm11 = vcmask 516096  }
 0x331   : >> { %958 = vxpose.xlu0.b32.start.end [1/1] (short) (narrow) %v957_v56, 32  ;;  %v2731_v29 = vld [vmem:[%s2728_s23 + $0x8] sm:$0xff]  ;;  %s1730_s25 = sshll.u32 %s935_s20, 2  ;;  %vm1199_vm12 = vcmask 518146   ;;  %vm1242_vm13 = vcmask 519171   ;;  %vm1328_vm14 = vcmask 521221  }
 0x332   : >> { %v2697_v6 = vshrl.u32 %v990_v5, 7  ;;  %s938_s29 = scalar_lea.vmem [#allocation2], %s1730_s25  ;;  %vm1371_vm15 = vcmask 522246   ;;  %vm1414_vm0 = vcmask 523271   ;;  %p923_p4 = scmp.ge.s32.totalorder %s926_s26, 2  }
 0x333   : > { %1834 = vmatprep.subr.bf16.mxu0 (%p923_p4), %v2345_v3  ;;  %1842 = vmatprep.mubr.msk.bf16.mxu0 (%p923_p4), %vm2346_vm2, %v2345_v3  ;;  %s1755_s20 = sshll.u32 (%p923_p4), %s2310_s21, 2  ;;  %s1515_s27 = sshll.u32 (%p923_p4), %s2566_s30, 4  ;;  %s2972_s27 = int_to_ptr.vmem [resolvable:$true] %s1515_s27 }
 0x334   : >> { %v992_v7 = vsub.s32 0, %v2697_v6  ;;  %v931_v8 = vld [vmem:[%s930_s22] sm:$0xff]  ;;  %v998_v10 = vsub.s32 1, %v2697_v6  ;;  %v1004_v12 = vsub.s32 2, %v2697_v6  ;;  %v1010_v21 = vsub.s32 3, %v2697_v6  ;;  %s1512_s25 = sadd.s32 (%p923_p4), %s1755_s20, %s2555_s19  ;;  %s2978_s21 = scalar_lea.sflag (%p923_p4), [#allocation10], %s457_s3 }
 0x335   : >> { %v1016_v26 = vsub.s32 4, %v2697_v6  ;;  %v1022_v31 = vsub.s32 5, %v2697_v6  ;;  %v2739_v32 = vmul.f32 %v2731_v29, %v931_v8  ;;  %v1028_v36 = vsub.s32 6, %v2697_v6  ;;  %s2206_s19 = scalar_lea.vmem (%p923_p4), %s2972_s27, 256  ;;  %s2355_s28 = smov (%p923_p4), [#allocation16]  }
 0x336   : >> { %v2702_v9 = vrot.slane %v931_v8, %v992_v7  ;;  %v2711_v13 = vrot.slane %v931_v8, %v998_v10  ;;  %v2713_v20 = vrot.slane %v931_v8, %v1004_v12  ;;  %v2721_v24 = vrot.slane %v931_v8, %v1010_v21  ;;  %p2207_p6 = scmp.ne.s32.totalorder (%p923_p4), %s2972_s27, %s2206_s19  ;;  %s2210_s16 = sshll.u32 (%p923_p4), %s2355_s28, 4  ;;  %s2211_s16 = int_to_ptr.vmem [resolvable:$false] %s2210_s16 }
 0x337   : >> { %v2733_v30 = vrot.slane %v931_v8, %v1016_v26  ;;  %v2743_v35 = vrot.slane %v931_v8, %v1022_v31  ;;  %v2749_v38 = vrot.slane %v2739_v32, %v992_v7  ;;  %v2753_v41 = vrot.slane %v931_v8, %v1028_v36  ;;  %s2212_s22 = scalar_lea.vmem (%p923_p4), %s2211_s16, 512  ;;  %p2213_p9 = scmp.lt.s32.totalorder (%p923_p4), %s2972_s27, %s2211_s16 }
 0x338   : >> { %v994_v11 = vmul.f32 %v2702_v9, %v2646_v15  ;;  %v1000_v22 = vmul.f32 %v2711_v13, %v2646_v15  ;;  %v1006_v23 = vmul.f32 %v2713_v20, %v2646_v15  ;;  %v1012_v28 = vmul.f32 %v2721_v24, %v2646_v15  ;;  %p2208_p5 = pnand (%p923_p4), %p2207_p6, %p2470_p3  ;;  %p2214_p11 = scmp.lt.s32.totalorder (%p923_p4), %s2212_s22, %s2206_s19 }
 0x339   : >> { %v1018_v34 = vmul.f32 %v2733_v30, %v2646_v15  ;;  %v1024_v40 = vmul.f32 %v2743_v35, %v2646_v15  ;;  %v1034_v42 = vsub.s32 7, %v2697_v6  ;;  %v2758_v45 = vrot.slane %v2739_v32, %v998_v10 }
 0x33a   : >> { %v1038_v14 = vmul.f32 1.442695, %v994_v11  ;;  %v1042_v25 = vmul.f32 1.442695, %v1000_v22  ;;  %v1046_v27 = vmul.f32 1.442695, %v1006_v23  ;;  %v1030_v49 = vmul.f32 %v2753_v41, %v2646_v15  ;;  %p2209_p7 = pneg (%p923_p4), %p2208_p5  ;;  %p2215_p8 = por (%p923_p4), %p2214_p11, %p2213_p9 }
 0x33b   : >> { %v1050_v33 = vmul.f32 1.442695, %v1012_v28  ;;  %v1054_v39 = vmul.f32 1.442695, %v1018_v34  ;;  %v1058_v48 = vmul.f32 1.442695, %v1024_v40  ;;  %v2763_v51 = vrot.slane %v931_v8, %v1034_v42 }
 0x33c   : >> { %2062 = vpow2.f32 %v1038_v14  ;;  %v2768_v53 = vrot.slane %v2739_v32, %v1004_v12  ;;  %v2786_v5 = vrot.slane %v2739_v32, %v1016_v26  ;;  %v2797_v22 = vrot.slane %v2739_v32, %v1022_v31  ;;  %p2216_p13 = pnand (%p923_p4), %p2215_p8, %p2209_p7 }
 0x33d   : >> { %2064 = vpow2.f32 %v1042_v25 }
 0x33e   : >> { %2066 = vpow2.f32 %v1046_v27  ;;  %v995_v27 = vmul.f32 %v2702_v9, %v2648_v16  ;;  %v2816_v9 = vrot.slane %v2739_v32, %v1034_v42  ;;  %v1007_v42 = vmul.f32 %v2713_v20, %v2648_v16 }
 0x33f   : >> { %2068 = vpow2.f32 %v1050_v33 }
 0x340   : >> { %2070 = vpow2.f32 %v1054_v39  ;;  %v2808_v39 = vrot.slane %v2739_v32, %v1028_v36 }
 0x341   : >> { %2072 = vpow2.f32 %v1058_v48 }
 0x349   : >> { %v2063_v37 = vpop.eup %2062 }
 0x34a   : >> { %v1086_v43 = vmul.f32 %v2330_v18, %v2063_v37  ;;  %v2065_v50 = vpop.eup %2064 }
 0x34b   : >> { %v2067_v18 = vpop.eup %2066 }
 0x35a   : >> { %2032 = vset.pattern.permute.xlu0 %v2348_v57 }
 0x3ad   : >> { %v974_v58 = vpop.trf.xlu0 }
 0x3ae   : >> { %1116 = vperm.xlu1 %2033, %v974_v58   ;;  %1072 = vperm.xlu0 %2032, %v974_v58  }
 0x3b1   : >> { %v975_v59 = vpop.trf.xlu0 }
 0x3b2   : >> { %2034 = vset.pattern.permute.xlu1 %v2349_v60  ;;  %2050 = vset.pattern.permute.xlu0 %v2350_v61 }
 0x3b3   : >> { %1159 = vperm.xlu1 %2034, %v974_v58  }
 0x3b5   : >> { %v2677_v62 = vpop.trf.xlu0 }
 0x3b6   : >> { %1220 = vperm.xlu0 %2050, %v2677_v62  }
 0x3b7   : >> { %2035 = vset.pattern.permute.xlu1 %v2350_v61 }
 0x3b8   : >> { %1202 = vperm.xlu1 %2035, %v974_v58  }
 0x3b9   : >> { %v2681_v63 = vpop.trf.xlu0 }
 0x3ba   : >> { %2053 = vset.pattern.permute.xlu0 %v2347_v55 }
 0x3bb   : >> { %1138 = vperm.xlu0 %2053, %v2681_v63  }
 0x3bc   : >> { %2036 = vset.pattern.permute.xlu1 %v2351_v0 }
 0x3bd   : >> { %1245 = vperm.xlu1 %2036, %v974_v58  }
 0x3bf   : >> { %2057 = vset.pattern.permute.xlu0 %v2351_v0 }
 0x3c0   : >> { %1267 = vperm.xlu0 %2057, %v2681_v63  }
 0x3c1   : >> { %2037 = vset.pattern.permute.xlu1 %v2352_v1 }
 0x3c2   : >> { %1288 = vperm.xlu1 %2037, %v974_v58  }
 0x3c4   : >> { %2058 = vset.pattern.permute.xlu0 %v2353_v2 }
 0x3c5   : >> { %1349 = vperm.xlu0 %2058, %v2677_v62  }
 0x3c6   : >> { %2038 = vset.pattern.permute.xlu1 %v2353_v2 }
 0x3c7   : >> { %1331 = vperm.xlu1 %2038, %v974_v58  }
 0x3c9   : >> { %2059 = vset.pattern.permute.xlu0 %v2354_v4 }
 0x3ca   : >> { %1374 = vperm.xlu0 %2059, %v974_v58   ;;  %v1036_v58 = vmul.f32 %v2763_v51, %v2646_v15  ;;  %v2099_v15 = vld [vmem:[%s3039_s10 + $0x10] sm:$0xff] (%p923_p4)  }
 0x3cb   : >> { %2039 = vset.pattern.permute.xlu1 %v2348_v57 }
 0x3cc   : >> { %1077 = vperm.xlu1 %2039, %v975_v59  }
 0x3ce   : >> { %1396 = vperm.xlu0 %2059, %v2681_v63  }
 0x3d0   : >> { %2040 = vset.pattern.permute.xlu1 %v2347_v55 }
 0x3d1   : >> { %1120 = vperm.xlu1 %2040, %v975_v59  }
 0x3d5   : >> { %2041 = vset.pattern.permute.xlu1 %v2349_v60 }
 0x3d6   : >> { %1163 = vperm.xlu1 %2041, %v975_v59  }
 0x3da   : >> { %2042 = vset.pattern.permute.xlu1 %v2350_v61 }
 0x3db   : >> { %1206 = vperm.xlu1 %2042, %v975_v59  }
 0x3df   : >> { %2043 = vset.pattern.permute.xlu1 %v2351_v0 }
 0x3e0   : >> { %1249 = vperm.xlu1 %2043, %v975_v59  }
 0x3e4   : >> { %2044 = vset.pattern.permute.xlu1 %v2352_v1 }
 0x3e5   : >> { %1292 = vperm.xlu1 %2044, %v975_v59  }
 0x3e9   : >> { %2045 = vset.pattern.permute.xlu1 %v2353_v2 }
 0x3ea   : >> { %1335 = vperm.xlu1 %2045, %v975_v59  }
 0x3ee   : >> { %2046 = vset.pattern.permute.xlu1 %v2354_v4 }
 0x3ef   : >> { %1378 = vperm.xlu1 %2046, %v975_v59  }
 0x3f3   : >> { %2047 = vset.pattern.permute.xlu1 %v2348_v57 }
 0x3f4   : >> { %1092 = vperm.xlu1 %2047, %v2677_v62  }
 0x3f8   : >> { %2048 = vset.pattern.permute.xlu1 %v2347_v55 }
 0x3f9   : >> { %1134 = vperm.xlu1 %2048, %v2677_v62  }
 0x3fd   : >> { %2049 = vset.pattern.permute.xlu1 %v2349_v60 }
 0x3fe   : >> { %1177 = vperm.xlu1 %2049, %v2677_v62  }
 0x402   : >> { %2051 = vset.pattern.permute.xlu1 %v2351_v0  ;;  %v2069_v0 = vpop.eup %2068 }
 0x403   : >> { %1263 = vperm.xlu1 %2051, %v2677_v62   ;;  %v2071_v10 = vpop.eup %2070 }
 0x404   : >> { %v2073_v23 = vpop.eup %2072 }
 0x407   : >> { %2052 = vset.pattern.permute.xlu1 %v2348_v57  ;;  %v1062_v57 = vmul.f32 1.442695, %v1030_v49  ;;  %v1001_v49 = vmul.f32 %v2711_v13, %v2648_v16  ;;  %v1048_v13 = vmul.f32 1.442695, %v1007_v42  ;;  %v1031_v42 = vmul.f32 %v2753_v41, %v2648_v16 }
 0x408   : >> { %1097 = vperm.xlu1 %2052, %v2681_v63   ;;  %v1037_v41 = vmul.f32 %v2763_v51, %v2648_v16 }
 0x409   : >> { %2074 = vpow2.f32 %v1062_v57 }
 0x40c   : >> { %2054 = vset.pattern.permute.xlu1 %v2349_v60 }
 0x40d   : >> { %1181 = vperm.xlu1 %2054, %v2681_v63  }
 0x411   : >> { %2055 = vset.pattern.permute.xlu1 %v2350_v61 }
 0x412   : >> { %1224 = vperm.xlu1 %2055, %v2681_v63  }
 0x416   : >> { %2056 = vset.pattern.permute.xlu1 %v2352_v1  ;;  %v2075_v37 = vpop.eup %2074 }
 0x417   : >> { %1306 = vperm.xlu1 %2056, %v2677_v62  }
 0x41b   : >> { %1310 = vperm.xlu1 %2056, %v2681_v63  }
 0x41f   : >> { %2060 = vset.pattern.permute.xlu1 %v2353_v2  ;;  %v1066_v2 = vmul.f32 1.442695, %v1036_v58 }
 0x420   : >> { %1353 = vperm.xlu1 %2060, %v2681_v63   ;;  %v2781_v63 = vrot.slane %v2739_v32, %v1010_v21 }
 0x421   : >> { %2076 = vpow2.f32 %v1066_v2 }
 0x424   : >> { %2061 = vset.pattern.permute.xlu1 %v2354_v4 }
 0x425   : >> { %1392 = vperm.xlu1 %2061, %v2677_v62  }
 0x429   : >> { %v1117_v44 = vpop.permute.xlu1 %1116  ;;  %v1073_v46 = vpop.permute.xlu0 %1072 }
 0x42a   : >> { %v1084_v47 = vmul.f32 %v2749_v38, %v1073_v46  ;;  %v1127_v54 = vmul.f32 %v2758_v45, %v1117_v44 }
 0x42c   : >> { %v2765_v52 = vadd.f32 %v1086_v43, %v1084_v47  ;;  %v1040_v43 = vmul.f32 1.442695, %v995_v27 }
 0x42e   : >> { %v1129_v55 = vmul.f32 %v2065_v50, %v2765_v52  ;;  %v1160_v56 = vpop.permute.xlu1 %1159  ;;  %v2077_v48 = vpop.eup %2076  ;;  %2078 = vpow2.f32 %v1040_v43 }
 0x42f   : >> { %v1170_v61 = vmul.f32 %v2768_v53, %v1160_v56  ;;  %v1044_v56 = vmul.f32 1.442695, %v1001_v49 }
 0x430   : >> { %v2774_v59 = vadd.f32 %v1129_v55, %v1127_v54 }
 0x431   : >> { %v2776_v60 = vpop.permute.xlu0 %1220  ;;  %2080 = vpow2.f32 %v1044_v56 }
 0x432   : >> { %v1172_v62 = vmul.f32 %v2067_v18, %v2774_v59  ;;  %2082 = vpow2.f32 %v1048_v13 }
 0x433   : >> { %v1203_v1 = vpop.permute.xlu1 %1202 }
 0x434   : >> { %v2783_v4 = vadd.f32 %v1172_v62, %v1170_v61  ;;  %v1213_v6 = vmul.f32 %v2781_v63, %v1203_v1  ;;  %v2830_v62 = vld [vmem:[%s938_s29] sm:$0xf]  ;;  %s1756_s29 = sshll.u32 (%p923_p4), %s1512_s25, 7 }
 0x435   : > { %s2970_s26 = scalar_lea.hbm (%p923_p4), %s3040_s11, %s1756_s29 }
 0x436   : >> { %v1215_v7 = vmul.f32 %v2069_v0, %v2783_v4  ;;  %v2790_v8 = vpop.permute.xlu0 %1138  ;;  %v1013_v0 = vmul.f32 %v2721_v24, %v2648_v16 }
 0x438   : >> { %v2792_v11 = vadd.f32 %v1215_v7, %v1213_v6  ;;  %v1246_v12 = vpop.permute.xlu1 %1245  ;;  %v940_v7 = vunpack.c.l.bf16 %v2830_v62 }
 0x439   : >> { %v1256_v14 = vmul.f32 %v2786_v5, %v1246_v12 }
 0x43a   : >> { %v1258_v21 = vmul.f32 %v2071_v10, %v2792_v11  ;;  %v1052_v10 = vmul.f32 1.442695, %v1013_v0 }
 0x43b   : >> { %v2799_v25 = vpop.permute.xlu0 %1267  ;;  %v2079_v61 = vpop.eup %2078 }
 0x43c   : >> { %v2801_v26 = vadd.f32 %v1258_v21, %v1256_v14  ;;  %v1087_v2 = vmul.f32 %v2326_v19, %v2079_v61  ;;  %v1731_v14 = vmul.f32 -1.442695, %v940_v7  ;;  %2084 = vpow2.f32 %v1052_v10 }
 0x43d   : >> { %v1289_v28 = vpop.permute.xlu1 %1288 }
 0x43e   : >> { %v1299_v33 = vmul.f32 %v2797_v22, %v1289_v28  ;;  %v1301_v34 = vmul.f32 %v2073_v23, %v2801_v26  ;;  %v2081_v12 = vpop.eup %2080  ;;  %v1019_v23 = vmul.f32 %v2733_v30, %v2648_v16  ;;  %2086 = vpow2.f32 %v1731_v14 }
 0x440   : >> { %v2810_v40 = vadd.f32 %v1301_v34, %v1299_v33  ;;  %v2812_v31 = vpop.permute.xlu0 %1349  ;;  %v1056_v27 = vmul.f32 1.442695, %v1019_v23  ;;  %v2083_v33 = vpop.eup %2082 }
 0x442   : >> { %v1332_v44 = vpop.permute.xlu1 %1331  ;;  %v1344_v46 = vmul.f32 %v2075_v37, %v2810_v40  ;;  %2088 = vpow2.f32 %v1056_v27 }
 0x443   : >> { %v1342_v47 = vmul.f32 %v2808_v39, %v1332_v44 }
 0x445   : >> { %v2821_v36 = vadd.f32 %v1344_v46, %v1342_v47  ;;  %v1375_v50 = vpop.permute.xlu0 %1374 }
 0x446   : >> { %v1385_v18 = vmul.f32 %v2816_v9, %v1375_v50 }
 0x447   : >> { %v1078_v54 = vpop.permute.xlu1 %1077  ;;  %v1387_v55 = vmul.f32 %v2077_v48, %v2821_v36 }
 0x448   : >> { %v1085_v1 = vmul.f32 %v2749_v38, %v1078_v54 }
 0x449   : >> { %v2825_v18 = vadd.f32 %v1387_v55, %v1385_v18   ;;  %v2085_v46 = vpop.eup %2084 }
 0x44a   : >> { %v2837_v20 = vadd.f32 %v1087_v2, %v1085_v1  ;;  %v1064_v1 = vmul.f32 1.442695, %v1031_v42 }
 0x44b   : >> { %v3059_v57 = vmov %v2825_v18  ;;  %v2087_v30 = vpop.eup %2086 }
 0x44c   : >> { %v1121_v32 = vpop.permute.xlu1 %1120  ;;  %v1130_v38 = vmul.f32 %v2081_v12, %v2837_v20  ;;  %v944_v50 = vadd.f32 1.0, %v2087_v30  ;;  %1416 = vst.msk [vmem:[#allocation5] sm:$0xff] (%p923_p4), %vm619_vm4, %v3059_v57 }
 0x44d   : >> { %v1128_v24 = vmul.f32 %v2758_v45, %v1121_v32  ;;  %v1025_v45 = vmul.f32 %v2743_v35, %v2648_v16  ;;  %v2100_v16 = vld [vmem:[%s3039_s10 + $0x8] sm:$0xff] (%p923_p4)  }
 0x44e   : >> { %2090 = vrcp.f32 %v944_v50 }
 0x44f   : >> { %v1132_v28 = vadd.f32 %v1130_v38, %v1128_v24  ;;  %v1060_v54 = vmul.f32 1.442695, %v1025_v45  ;;  %v2089_v55 = vpop.eup %2088  ;;  %v1068_v38 = vmul.f32 1.442695, %v1037_v41 }
 0x451   : >> { %v1164_v58 = vpop.permute.xlu1 %1163  ;;  %v1173_v37 = vmul.f32 %v2083_v33, %v1132_v28  ;;  %v1142_v56 = vmul.f32 %v2790_v8, %v1132_v28  ;;  %2092 = vpow2.f32 %v1060_v54 }
 0x452   : >> { %v1171_v34 = vmul.f32 %v2768_v53, %v1164_v58  ;;  %2094 = vpow2.f32 %v1064_v1 }
 0x453   : >> { %v1144_v61 = vsel %vm619_vm4, %v1142_v56, 0.0  ;;  %2096 = vpow2.f32 %v1068_v38 }
 0x454   : >> { %v2848_v44 = vadd.f32 %v1173_v37, %v1171_v34  ;;  %v2875_v34 = vmul.f32 %v2650_v17, %v2731_v29  ;;  %v2101_v17 = vld [vmem:[%s3039_s10] sm:$0xff] (%p923_p4)  }
 0x456   : >> { %v1207_v6 = vpop.permute.xlu1 %1206  ;;  %v1216_v49 = vmul.f32 %v2085_v46, %v2848_v44 }
 0x457   : >> { %v1214_v48 = vmul.f32 %v2781_v63, %v1207_v6 }
 0x459   : >> { %v2856_v53 = vadd.f32 %v1216_v49, %v1214_v48 }
 0x45b   : >> { %v1250_v21 = vpop.permute.xlu1 %1249  ;;  %v1259_v63 = vmul.f32 %v2089_v55, %v2856_v53 }
 0x45c   : >> { %v1257_v35 = vmul.f32 %v2786_v5, %v1250_v21  ;;  %v2091_v21 = vpop.eup %2090 }
 0x45e   : >> { %v1261_v2 = vadd.f32 %v1259_v63, %v1257_v35  ;;  %v2093_v24 = vpop.eup %2092 }
 0x460   : >> { %v1293_v19 = vpop.permute.xlu1 %1292  ;;  %v1271_v5 = vmul.f32 %v2799_v25, %v1261_v2 }
 0x461   : >> { %v1300_v48 = vmul.f32 %v2797_v22, %v1293_v19  ;;  %v2095_v19 = vpop.eup %2094 }
 0x462   : >> { %v1273_v28 = vsel %vm619_vm4, %v1271_v5, 0.0 }
 0x465   : >> { %v2846_v43 = vpop.permute.xlu1 %1335 }
 0x46a   : >> { %v2850_v47 = vpop.permute.xlu1 %1378 }
 0x46f   : >> { %v1093_v18 = vpop.permute.xlu1 %1092 }
 0x470   : >> { %v1100_v33 = vmul.f32 %v1093_v18, %v2765_v52  ;;  %v1302_v52 = vmul.f32 %v2093_v24, %v1261_v2 }
 0x472   : >> { %v1102_v49 = vsel %vm619_vm4, %v1100_v33, 0.0  ;;  %v1304_v56 = vadd.f32 %v1302_v52, %v1300_v48 }
 0x474   : >> { %v1135_v32 = vpop.permute.xlu1 %1134 }
 0x475   : >> { %v1141_v13 = vmul.f32 %v1135_v32, %v2774_v59 }
 0x477   : >> { %v1143_v58 = vsel %vm619_vm4, %v1141_v13, 0.0 }
 0x478   : >> { %v1145_v0 = vadd.f32 %v1144_v61, %v1143_v58 }
 0x479   : >> { %v1178_v6 = vpop.permute.xlu1 %1177 }
 0x47a   : >> { %v1146_v8 = vrot.slane %v1145_v0, 4  ;;  %v1184_v62 = vmul.f32 %v1178_v6, %v2783_v4  ;;  %v1227_v4 = vmul.f32 %v2776_v60, %v2792_v11  ;;  %v1343_v6 = vmul.f32 %v2808_v39, %v2846_v43 }
 0x47c   : >> { %v1147_v10 = vadd.f32 %v1146_v8, %v1145_v0  ;;  %v1186_v35 = vsel %vm619_vm4, %v1184_v62, 0.0  ;;  %v1345_v0 = vmul.f32 %v2095_v19, %v1304_v56  ;;  %v1229_v5 = vsel %vm619_vm4, %v1227_v4, 0.0 }
 0x47e   : >> { %v1148_v12 = vrot.slane %v1147_v10, 2  ;;  %v1264_v14 = vpop.permute.xlu1 %1263 }
 0x47f   : >> { %v1270_v59 = vmul.f32 %v1264_v14, %v2801_v26  ;;  %v2879_v26 = vmul.f32 %v2091_v21, %v940_v7  ;;  %v2097_v21 = vpop.eup %2096 }
 0x480   : >> { %v1149_v23 = vadd.f32 %v1148_v12, %v1147_v10 }
 0x481   : >> { %v1272_v27 = vsel %vm619_vm4, %v1270_v59, 0.0 }
 0x482   : >> { %v1150_v51 = vrot.slane %v1149_v23, 1  ;;  %v1274_v25 = vadd.f32 %v1273_v28, %v1272_v27 }
 0x483   : >> { %v1098_v37 = vpop.permute.xlu1 %1097 }
 0x484   : >> { %v1151_v46 = vadd.f32 %v1150_v51, %v1149_v23  ;;  %v1275_v30 = vrot.slane %v1274_v25, 4  ;;  %v1101_v45 = vmul.f32 %v1098_v37, %v2837_v20  ;;  %v1347_v23 = vadd.f32 %v1345_v0, %v1343_v6 }
 0x486   : >> { %v1152_v29 = vadd.f32 %v1151_v46, %v2875_v34  ;;  %v1276_v50 = vadd.f32 %v1275_v30, %v1274_v25  ;;  %v1103_v18 = vsel %vm619_vm4, %v1101_v45, 0.0  ;;  %v1388_v25 = vmul.f32 %v2097_v21, %v1347_v23 }
 0x487   : >> { %v1104_v7 = vadd.f32 %v1103_v18, %v1102_v49  ;;  %v1386_v30 = vmul.f32 %v2816_v9, %v2850_v47 }
 0x488   : >> { %v1153_v54 = vmul.f32 %v1152_v29, %v2879_v26  ;;  %v1277_v55 = vrot.slane %v1276_v50, 2  ;;  %v1182_v20 = vpop.permute.xlu1 %1181 }
 0x489   : >> { %v1105_v32 = vrot.slane %v1104_v7, 4  ;;  %v1185_v22 = vmul.f32 %v1182_v20, %v2848_v44 }
 0x48a   : >> { %1735 = vst.msk [vmem:[%s2728_s23 + $0x8] sm:$0x2] %vm1156_vm9, %v1153_v54  ;;  %v1278_v42 = vadd.f32 %v1277_v55, %v1276_v50  ;;  %v1390_v54 = vadd.f32 %v1388_v25, %v1386_v30   ;;  %v1397_v55 = vpop.permute.xlu0 %1396 }
 0x48b   : >> { %v1106_v63 = vadd.f32 %v1105_v32, %v1104_v7  ;;  %v1187_v13 = vsel %vm619_vm4, %v1185_v22, 0.0  ;;  %v1356_v7 = vmul.f32 %v2812_v31, %v2821_v36 }
 0x48c   : >> { %v1279_v58 = vrot.slane %v1278_v42, 1  ;;  %v1188_v61 = vadd.f32 %v1187_v13, %v1186_v35  ;;  %1417 = vst.msk [vmem:[#allocation5 + $0x8] sm:$0xff] (%p923_p4), %vm619_vm4, %v1390_v54 }
 0x48d   : >> { %v1107_v1 = vrot.slane %v1106_v63, 2  ;;  %v1225_v2 = vpop.permute.xlu1 %1224 }
 0x48e   : >> { %v1280_v44 = vadd.f32 %v1279_v58, %v1278_v42  ;;  %v1189_v8 = vrot.slane %v1188_v61, 4  ;;  %v1228_v10 = vmul.f32 %v1225_v2, %v2856_v53  ;;  %v1358_v42 = vsel %vm619_vm4, %v1356_v7, 0.0 }
 0x48f   : >> { %v1108_v41 = vadd.f32 %v1107_v1, %v1106_v63  ;;  %v1400_v63 = vmul.f32 %v1397_v55, %v1390_v54 }
 0x490   : >> { %v1281_v12 = vadd.f32 %v1280_v44, %v2875_v34  ;;  %v1190_v14 = vadd.f32 %v1189_v8, %v1188_v61  ;;  %v1230_v60 = vsel %vm619_vm4, %v1228_v10, 0.0 }
 0x491   : >> { %v1109_v11 = vrot.slane %v1108_v41, 1  ;;  %v1231_v59 = vadd.f32 %v1230_v60, %v1229_v5  ;;  %v1402_v2 = vsel %vm619_vm4, %v1400_v63, 0.0 }
 0x492   : >> { %v1282_v39 = vmul.f32 %v1281_v12, %v2879_v26  ;;  %v1191_v43 = vrot.slane %v1190_v14, 2  ;;  %v1307_v24 = vpop.permute.xlu1 %1306 }
 0x493   : >> { %v1110_v38 = vadd.f32 %v1109_v11, %v1108_v41  ;;  %v1232_v53 = vrot.slane %v1231_v59, 4  ;;  %v1313_v51 = vmul.f32 %v1307_v24, %v2810_v40 }
 0x494   : >> { %1741 = vst.msk [vmem:[%s2728_s23 + $0x8] sm:$0x10] %vm1285_vm10, %v1282_v39  ;;  %v1192_v27 = vadd.f32 %v1191_v43, %v1190_v14 }
 0x495   : >> { %v1111_v28 = vadd.f32 %v1110_v38, %v2875_v34  ;;  %v1233_v33 = vadd.f32 %v1232_v53, %v1231_v59  ;;  %v1315_v50 = vsel %vm619_vm4, %v1313_v51, 0.0 }
 0x496   : >> { %v1193_v37 = vrot.slane %v1192_v27, 1  ;;  %v1311_v46 = vpop.permute.xlu1 %1310 }
 0x497   : >> { %v1112_v45 = vmul.f32 %v1111_v28, %v2879_v26  ;;  %v1234_v48 = vrot.slane %v1233_v33, 2  ;;  %v1314_v52 = vmul.f32 %v1311_v46, %v1304_v56 }
 0x498   : >> { %v1194_v49 = vadd.f32 %v1193_v37, %v1192_v27 }
 0x499   : >> { %1733 = vst.msk [vmem:[%s2728_s23 + $0x8] sm:$0x1] %vm1113_vm11, %v1112_v45  ;;  %v1235_v29 = vadd.f32 %v1234_v48, %v1233_v33  ;;  %v1316_v18 = vsel %vm619_vm4, %v1314_v52, 0.0 }
 0x49a   : >> { %v1195_v40 = vadd.f32 %v1194_v49, %v2875_v34  ;;  %v1317_v62 = vadd.f32 %v1316_v18, %v1315_v50  ;;  %v3061_v18 = vmov %v3059_v57 }
 0x49b   : >> { %v1236_v9 = vrot.slane %v1235_v29, 1  ;;  %v1354_v47 = vpop.permute.xlu1 %1353 }
 0x49c   : >> { %v1196_v20 = vmul.f32 %v1195_v40, %v2879_v26  ;;  %v1318_v56 = vrot.slane %v1317_v62, 4  ;;  %v1357_v32 = vmul.f32 %v1354_v47, %v1347_v23 }
 0x49d   : >> { %v1237_v22 = vadd.f32 %v1236_v9, %v1235_v29 }
 0x49e   : >> { %1737 = vst.msk [vmem:[%s2728_s23 + $0x8] sm:$0x4] %vm1199_vm12, %v1196_v20  ;;  %v1319_v19 = vadd.f32 %v1318_v56, %v1317_v62  ;;  %v1359_v35 = vsel %vm619_vm4, %v1357_v32, 0.0 }
 0x49f   : >> { %v1238_v31 = vadd.f32 %v1237_v22, %v2875_v34  ;;  %v1360_v36 = vadd.f32 %v1359_v35, %v1358_v42 }
 0x4a0   : >> { %v1320_v13 = vrot.slane %v1319_v19, 2  ;;  %v1393_v4 = vpop.permute.xlu1 %1392 }
 0x4a1   : >> { %v1239_v58 = vmul.f32 %v1238_v31, %v2879_v26  ;;  %v1361_v61 = vrot.slane %v1360_v36, 4  ;;  %v1399_v0 = vmul.f32 %v1393_v4, %v3059_v57 }
 0x4a2   : >> { %v1321_v1 = vadd.f32 %v1320_v13, %v1319_v19  ;;  %v3060_v19 = vmov %v1390_v54 }
 0x4a3   : >> { %1739 = vst.msk [vmem:[%s2728_s23 + $0x8] sm:$0x8] %vm1242_vm13, %v1239_v58  ;;  %v1362_v6 = vadd.f32 %v1361_v61, %v1360_v36  ;;  %v1401_v44 = vsel %vm619_vm4, %v1399_v0, 0.0 }
 0x4a4   : >> { %v1322_v8 = vrot.slane %v1321_v1, 1  ;;  %v1403_v10 = vadd.f32 %v1402_v2, %v1401_v44 }
 0x4a5   : >> { %v1363_v41 = vrot.slane %v1362_v6, 2 }
 0x4a6   : >> { %v1323_v5 = vadd.f32 %v1322_v8, %v1321_v1  ;;  %v1404_v12 = vrot.slane %v1403_v10, 4 }
 0x4a7   : >> { %v1364_v14 = vadd.f32 %v1363_v41, %v1362_v6 }
 0x4a8   : >> { %v1324_v60 = vadd.f32 %v1323_v5, %v2875_v34  ;;  %v1405_v11 = vadd.f32 %v1404_v12, %v1403_v10 }
 0x4a9   : >> { %v1365_v59 = vrot.slane %v1364_v14, 1 }
 0x4aa   : >> { %v1325_v21 = vmul.f32 %v1324_v60, %v2879_v26  ;;  %v1406_v23 = vrot.slane %v1405_v11, 2 }
 0x4ab   : >> { %v1366_v39 = vadd.f32 %v1365_v59, %v1364_v14 }
 0x4ac   : >> { %1743 = vst.msk [vmem:[%s2728_s23 + $0x8] sm:$0x20] %vm1328_vm14, %v1325_v21  ;;  %v1407_v43 = vadd.f32 %v1406_v23, %v1405_v11 }
 0x4ad   : >> { %v1367_v24 = vadd.f32 %v1366_v39, %v2875_v34 }
 0x4ae   : >> { %v1408_v38 = vrot.slane %v1407_v43, 1 }
 0x4af   : >> { %v1368_v53 = vmul.f32 %v1367_v24, %v2879_v26 }
 0x4b0   : >> { %v1409_v27 = vadd.f32 %v1408_v38, %v1407_v43 }
 0x4b1   : >> { %1745 = vst.msk [vmem:[%s2728_s23 + $0x8] sm:$0x40] %vm1371_vm15, %v1368_v53 }
 0x4b2   : >> { %v1410_v28 = vadd.f32 %v1409_v27, %v2875_v34  ;;  %v2098_v34 = vld [vmem:[%s3039_s10 + $0x18] sm:$0xff] (%p923_p4)  }
 0x4b3   : > { %925 = sbr.rel (!%p923_p4) target bundleno = 814 (0x32e), region = 142  ;;  %1835 = vmatpush3.bf16.msra.mxu0 (%p923_p4), %v2098_v34 }
 0x4b4   : >> { %v1411_v33 = vmul.f32 %v1410_v28, %v2879_v26  ;;  %1836 = vmatprep.subr.bf16.mxu0 (%p923_p4), %v2345_v3 }
 0x4b6   : >> { %1747 = vst.msk [vmem:[%s2728_s23 + $0x8] sm:$0x80] %vm1414_vm0, %v1411_v33 }
 0x4b7   : > { %1837 = vmatpush3.bf16.msra.mxu0 (%p923_p4), %v2099_v15 }
 0x4b8   : > { %1838 = vmatprep.subr.bf16.mxu0 %v2345_v3 }
 0x4bb   : > { %1839 = vmatpush3.bf16.msra.mxu0 %v2100_v16 }
 0x4bc   : > { %1840 = vmatprep.subr.bf16.mxu0 %v2345_v3 }
 0x4bd   : > { %v1418_v57 = vld [vmem:[#allocation6 + $0x8] sm:$0xff]  ;;  %v1419_v26 = vld [vmem:[#allocation6 + $0x10] sm:$0xff] }
 0x4be   : > { %v1420_v51 = vpack.c.bf16 %v1419_v26, %v1418_v57 }
 0x4bf   : > { %1841 = vmatpush3.bf16.msra.mxu0 %v2101_v17 }
 0x4c2   : > { %1843 = vmatmul.mubr.msk.bf16.vlgmr.msra.gmra.mxu0 %vm619_vm4, %v1420_v51 }
 0x582   : > { %v1490_v25 = vpop.f32.mrf.mxu0 }
 0x583   : > { %1497 = vst.msk [vmem:[%s2566_s30] sm:$0xff] %vm506_vm3, %v1490_v25 }
 0x584   : > { %v1844_v37 = vpop.f32.mrf.mxu0 }
 0x586   : > { %v1493_v3 = vpop.f32.mrf.mxu0 }
 0x587   : > { %1498 = vst.msk [vmem:[%s2566_s30 + $0x8] sm:$0xff] %vm506_vm3, %v1493_v3 }
 0x588   : > { %v1845_v46 = vpop.f32.mrf.mxu0 }
 0x589   : > { %2219 = shalt.err (!%p2216_p13)
}
 0x58a   : > { %s2220_s3 = scalar_lea.hbm %s2970_s26, 256  ;;  %s2224_s20 = scalar_lea.hbm %s3040_s11, 1024 }
 0x58b   : > { %p2221_p2 = scmp.ne.s32.totalorder %s2970_s26, %s2220_s3  ;;  %p2225_p12 = scmp.lt.s32.totalorder %s2970_s26, %s3040_s11 }
 0x58c   : > { %p2226_p1 = scmp.lt.s32.totalorder %s2224_s20, %s2220_s3 }
 0x58d   : > { %p2222_p10 = pnand %p2221_p2, %p2470_p3 }
 0x58e   : > { %p2227_p4 = por %p2226_p1, %p2225_p12 }
 0x58f   : > { %p2223_p0 = pneg %p2222_p10 }
 0x591   : > { %p2228_p6 = pnand %p2227_p4, %p2223_p0 }
 0x593   : > { %2231 = shalt.err (!%p2228_p6)
}
 0x594   : > { %s2356_s14 = smov 128   ;;  %s2357_s15 = smov 8  }
 0x595   : > { %1862 = dma.vmem_to_hbm [thread:$0]  (%p2470_p3), %s2972_s27, 256, %s2970_s26, %s2978_s21, %s2356_s14, %s2356_s14, %s2357_s15  }
 0x596 PF: > { %p1889_p5 = scmp.ge.s32.totalorder %s2322_s24, 2  ;;  %s1530_s19 = sand.u32 1, %s2294_s17  }
 0x597   : > { %p3062_p7 = scmp.ne.s32.totalorder %s3053_s13, 0  ;;  %s1531_s28 = scalar_lea.sflag [#allocation10], %s1530_s19 }
 0x599   : > { %p1878_p9 = pnand %p1889_p5, %p3062_p7 }
 0x59b   : > { %p1879_p11 = pneg %p1878_p9 }
 0x59d   : > { %2289 = dma.done.wait (%p1879_p11), %s1531_s28, 256  }
 0x59e   : > { %2291 = vsyncadd (%p1879_p11), %s1531_s28, 4294967040  ;;  %s27_s24 = sadd.s32 1, %s2322_s24   ;;  %s3063_s16 = sld [smem:[#allocation21_spill]] }
 0x59f   : > { %p24_p8 = scmp.ge.s32.totalorder %s27_s24, 6   ;;  %s3064_s19 = sld [smem:[#allocation26_spill]] }
 0x5a0   : > { %s3065_s20 = sld [smem:[#allocation22_spill]]  ;;  %s3069_s17 = smov %s2298_s18 }
 0x5a1   : > { %s3066_s21 = sld [smem:[#allocation23_spill]]  ;;  %26 = sbr.rel (!%p24_p8) target bundleno = 10 (0xa), region = 153 }
 0x5a2   : > { %s3067_s22 = sld [smem:[#allocation24_spill]] }
 0x5a3   : > { %s3068_s23 = sld [smem:[#allocation25_spill]] }
 0x5a4   : > { %s3070_s18 = smov %s3063_s16 }
 0x5a6   :  { %1536 = vsyncpa [#allocation9], 1 }
 0x5a7   :  { %1538 = vsyncpa [#allocation9 + $0x1], 1 }
 0x5a8   :  { %1539 = vsyncpa [#allocation12], 1 }
 0x5a9   :  { %1540 = vsyncpa [#allocation15], 1 }
 0x5aa   :  { %1541 = vsyncpa [#allocation10], 1 }
 0x5ab   :  { %1543 = vsyncpa [#allocation10 + $0x1], 1 }

// kernel: tpu_custom_call.1
= control target key start
LH: loop header
LB: loop body
LE: loop exit
PB: predicated region body
PF: predicated region fallthrough
CT: control target
= control target key end

     0   :  { %s3029_s0 = inlined_call_operand.vmem [shape: f32[2,32,32], index: 0, kind: input, shape index: {}]   ;;  %s3030_s1 = inlined_call_operand.vmem [shape: bf16[32,64], index: 1, kind: input, shape index: {}]   ;;  %s3031_s2 = inlined_call_operand.hbm [shape: bf16[32,64], index: 2, kind: input, shape index: {}]   ;;  %s3032_s3 = inlined_call_operand.hbm [shape: f32[4,64], index: 3, kind: input, shape index: {}]   ;;  %s3033_s4 = inlined_call_operand.vmem [shape: f32[1,64], index: 4, kind: input, shape index: {}]   ;;  %s3034_s5 = inlined_call_operand.vmem [shape: bf16[64,128], index: 5, kind: input, shape index: {}]   ;;  %s3035_s6 = inlined_call_operand.vmem [shape: bf16[128,64], index: 6, kind: input, shape index: {}]   ;;  %s3036_s7 = inlined_call_operand.vmem [shape: f32[1,64], index: 7, kind: input, shape index: {}]   ;;  %s3037_s8 = inlined_call_operand.hbm [shape: f32[16,64], index: 8, kind: input, shape index: {}]   ;;  %s3038_s9 = inlined_call_operand.hbm [shape: f32[1,64], index: 9, kind: input, shape index: {}]   ;;  %s3039_s10 = inlined_call_operand.vmem [shape: bf16[64,32], index: 10, kind: input, shape index: {}]   ;;  %s3040_s11 = inlined_call_operand.hbm [shape: f32[2,32,32], index: 11, kind: output, shape index: {}]  }
   0x1   :  { %3046 = sst [smem:[#allocation27_spill]] %s3032_s3 }
   0x2   :  { %16 = vsyncpa [#allocation9], 0 }
   0x3   :  { %17 = vsyncpa [#allocation12], 0 }
   0x4   :  { %18 = vsyncpa [#allocation15], 0 }
   0x5   :  { %19 = vsyncpa [#allocation10], 0 }
   0x6   :  { %21 = vsyncpa [#allocation10 + $0x1], 0  ;;  %s2418_s17 = smov 0   ;;  %s2420_s18 = smov 0  }
   0x7   :  { %s2422_s19 = smov 0   ;;  %s2424_s20 = smov 0  }
   0x8   :  { %s2426_s21 = smov 0   ;;  %s2428_s22 = smov 0  }
   0x9   :  { %s2430_s23 = smov 0   ;;  %s2432_s24 = smov 0  }
   0xa LB: > { %3047 = sst [smem:[#allocation21_spill]] %s2302_s19  ;;  %s1679_s25 = sadd.s32 4294967295, %s2322_s24   ;;  %s2322_s24 = sphi %s2432_s24, %s27_s24   ;;  %s2318_s23 = sphi %s2430_s23, %s3068_s23   ;;  %s2314_s22 = sphi %s2428_s22, %s3067_s22   ;;  %s2310_s21 = sphi %s2426_s21, %s3066_s21   ;;  %s2306_s20 = sphi %s2424_s20, %s3065_s20   ;;  %s2302_s19 = sphi %s2422_s19, %s3064_s19   ;;  %s2298_s18 = sphi %s2420_s18, %s3070_s18   ;;  %s2294_s17 = sphi %s2418_s17, %s3069_s17  }
   0xb   : > { %3048 = sst [smem:[#allocation22_spill]] %s2314_s22  ;;  %s1680_s26 = sadd.s32 4294967294, %s2322_s24  }
   0xc   : > { %3049 = sst [smem:[#allocation23_spill]] %s2318_s23  ;;  %s36_s27 = sadd.s32 1, %s2314_s22 }
   0xd   : > { %s39_s28 = sadd.s32 1, %s2318_s23  ;;  %p37_p0 = scmp.ge.s32.totalorder %s36_s27, 2 }
   0xe   : > { %s286_s29 = sadd.s32 1, %s2302_s19  ;;  %p296_p1 = scmp.ne.s32.totalorder %s2302_s19, %s2298_s18 }
   0xf   : > { %p297_p2 = scmp.eq.s32.totalorder %s1679_s25, 3  ;;  %s3072_s27 = smov (%p37_p0, %s36_s27), 0 }
  0x10   : > { %3050 = sst [smem:[#allocation24_spill]] %s3072_s27  ;;  %s3074_s28 = smov (!%p37_p0, %s39_s28), %s2318_s23 }
  0x11   : > { %s282_s30 = ssub.s32 %s2314_s22, %s3072_s27  ;;  %p2470_p3 = por %p297_p2, %p296_p1 }
  0x12   : > { %p41_p4 = scmp.ge.s32.totalorder %s3074_s28, 2  ;;  %p302_p5 = scmp.ne.s32.totalorder %s2298_s18, %s2294_s17 }
  0x13   : > { %p303_p6 = scmp.eq.s32.totalorder %s1680_s26, 3  ;;  %p1681_p7 = scmp.ge.s32.totalorder %s2322_s24, 1 }
  0x14   : > { %s3076_s28 = smov (%p41_p4, %s3074_s28), 0  ;;  %p310_p9 = scmp.lt.s32.totalorder %s2322_s24, 5 }
  0x15   : > { %3052 = sst [smem:[#allocation25_spill]] %s3076_s28  ;;  %p2479_p8 = por %p303_p6, %p302_p5 }
  0x16   : > { %s281_s14 = ssub.s32 %s2318_s23, %s3076_s28  ;;  %p2486_p10 = pnand %p1681_p7, %p310_p9 }
  0x17   : > { %s3053_s13 = scalar_select %p2479_p8, 1, 0 }
  0x18   : > { %s283_s15 = sor.u32 %s282_s30, %s281_s14  ;;  %p2490_p12 = scmp.eq.s32.totalorder %s1679_s25, 0 }
  0x19   : > { %p284_p11 = scmp.eq.s32.totalorder %s283_s15, 0  ;;  %p1864_p13 = pneg %p2486_p10 }
  0x1a   : > { %s2336_s30 = smov [#allocation11]  }
  0x1b   : > { %s2497_s26 = scalar_select %p284_p11, %s2302_s19, %s286_s29  }
  0x1c   : > { %p2501_p0 = pnand %p2490_p12, %p1864_p13  ;;  %s339_s14 = sshll.u32 %s2336_s30, 4  ;;  %s340_s14 = int_to_ptr.vmem [resolvable:$true] %s339_s14 }
  0x1d   : > { %3056 = sst [smem:[#allocation26_spill]] %s2497_s26  ;;  %s2113_s25 = scalar_lea.vmem %s340_s14, 64 }
  0x1e   : > { %p2104_p1 = pneg %p2501_p0  ;;  %p2114_p2 = scmp.ne.s32.totalorder %s340_s14, %s2113_s25 }
  0x1f   : > { %p2121_p6 = scmp.lt.s32.totalorder %s340_s14, %s340_s14  ;;  %p2122_p7 = scmp.lt.s32.totalorder %s2113_s25, %s2113_s25 }
  0x20   : > { %p2116_p4 = pnand %p2114_p2, %p2104_p1 }
  0x21   : > { %p2123_p9 = por %p2122_p7, %p2121_p6 }
  0x22   : > { %p2117_p5 = pneg %p2116_p4 }
  0x24   : > { %p2124_p11 = pnand %p2123_p9, %p2117_p5 }
  0x26   : > { %2127 = shalt.err (!%p2124_p11)
}
  0x27   : > { %s3058_s3 = sld [smem:[#allocation27_spill]]  ;;  %s2337_s30 = smov [#allocation8]  }
  0x28   : > { %s325_s28 = sshll.u32 %s2337_s30, 4  ;;  %s326_s28 = int_to_ptr.vmem [resolvable:$true] %s325_s28 }
  0x29   : > { %s2139_s23 = scalar_lea.vmem %s326_s28, 256  ;;  %p2147_p8 = scmp.lt.s32.totalorder %s326_s28, %s326_s28 }
  0x2a   : > { %p2140_p13 = scmp.ne.s32.totalorder %s326_s28, %s2139_s23  ;;  %p2148_p6 = scmp.lt.s32.totalorder %s2139_s23, %s2139_s23 }
  0x2c   : > { %p2142_p2 = pnand %p2140_p13, %p2104_p1  ;;  %p2149_p5 = por %p2148_p6, %p2147_p8 }
  0x2d   : > { %1870 = dma.hbm_to_vmem [thread:$0]  (!%p2501_p0), %s3058_s3, 64, %s340_s14, [#allocation12]  }
  0x2e   : > { %p2143_p4 = pneg %p2142_p2 }
  0x30   : > { %p2150_p7 = pnand %p2149_p5, %p2143_p4 }
  0x32   : > { %2153 = shalt.err (!%p2150_p7)
}
  0x33   : > { %s2338_s25 = smov 64   ;;  %s2339_s29 = smov 4  }
  0x34   : > { %1867 = dma.hbm_to_vmem [thread:$0]  (!%p2501_p0), %s3031_s2, 256, %s326_s28, [#allocation9], %s2338_s25, %s2338_s25, %s2339_s29  }
  0x35   : > { %s2340_s30 = smov [#allocation13]  }
  0x36   : > { %s361_s3 = sshll.u32 %s2340_s30, 4  ;;  %s362_s3 = int_to_ptr.vmem [resolvable:$true] %s361_s3 }
  0x37   : > { %s2165_s26 = scalar_lea.vmem %s362_s3, 256  ;;  %p2173_p13 = scmp.lt.s32.totalorder %s362_s3, %s362_s3 }
  0x38   : > { %p2166_p9 = scmp.ne.s32.totalorder %s362_s3, %s2165_s26  ;;  %p2174_p2 = scmp.lt.s32.totalorder %s2165_s26, %s2165_s26 }
  0x3a   : > { %p2168_p11 = pnand %p2166_p9, %p2104_p1  ;;  %p2175_p4 = por %p2174_p2, %p2173_p13 }
  0x3c   : > { %p2169_p8 = pneg %p2168_p11 }
  0x3e   : > { %p2176_p6 = pnand %p2175_p4, %p2169_p8 }
  0x40   : > { %2179 = shalt.err (!%p2176_p6)
}
  0x41   : > { %s2341_s23 = smov 128   ;;  %s2342_s19 = smov 8  }
  0x42   : > { %1873 = dma.hbm_to_vmem [thread:$0]  (!%p2501_p0), %s3037_s8, 256, %s362_s3, [#allocation12], %s2341_s23, %s2341_s23, %s2342_s19  }
  0x43   : > { %s2343_s29 = smov [#allocation14]  }
  0x44   : > { %s375_s14 = sshll.u32 %s2343_s29, 4  ;;  %s376_s14 = int_to_ptr.vmem [resolvable:$true] %s375_s14 }
  0x45   : > { %s2191_s15 = scalar_lea.vmem %s376_s14, 16  ;;  %s2198_s26 = scalar_lea.vmem %s376_s14, 32 }
  0x46   : > { %p2192_p5 = scmp.ne.s32.totalorder %s376_s14, %s2191_s15  ;;  %p2199_p11 = scmp.lt.s32.totalorder %s376_s14, %s376_s14 }
  0x47   : > { %p2200_p8 = scmp.lt.s32.totalorder %s2198_s26, %s2191_s15 }
  0x48   : > { %p2194_p7 = pnand %p2192_p5, %p2104_p1 }
  0x49   : > { %p2201_p13 = por %p2200_p8, %p2199_p11 }
  0x4a   : > { %p2195_p9 = pneg %p2194_p7 }
  0x4c   : > { %p2202_p2 = pnand %p2201_p13, %p2195_p9 }
  0x4e   : > { %2205 = shalt.err (!%p2202_p2)
}
  0x4f   : > { %1876 = dma.hbm_to_vmem [thread:$0]  (!%p2501_p0), %s3038_s9, 16, %s376_s14, [#allocation15]  }
  0x50   : > { %404 = sbr.rel (%p2486_p10) target bundleno = 1430 (0x596), region = 64 }
  0x55   : > { %2277 = dma.done.wait (%p2490_p12), [#allocation9], 256  }
  0x56   : > { %2279 = vsyncadd (%p2490_p12), [#allocation9], 4294967040 }
  0x57   : > { %2281 = dma.done.wait (%p2490_p12), [#allocation12], 320  }
  0x58   : > { %2283 = vsyncadd (%p2490_p12), [#allocation12], 4294966976 }
  0x59   : > { %2285 = dma.done.wait (%p2490_p12), [#allocation15], 16  }
  0x5a   : > { %2287 = vsyncadd (%p2490_p12), [#allocation15], 4294967280  ;;  %s457_s3 = sand.u32 1, %s2298_s18   ;;  %s2555_s19 = sshll.u32 %s2306_s20, 1 }
  0x5b   : > { %s1692_s22 = sshll.u32 %s457_s3, 4  ;;  %p461_p10 = scmp.lt.s32.totalorder %s2310_s21, 1 }
  0x5c   : > { %p463_p0 = scmp.lt.s32.totalorder %s2555_s19, 3  ;;  %s2566_s30 = scalar_lea.vmem [#allocation16], %s1692_s22 }
  0x5d   : > { %s462_s16 = scalar_select %p461_p10, %s2310_s21, 1 }
  0x5e   : > { %s464_s23 = scalar_select %p463_p0, %s2555_s19, 3 }
  0x5f   : > { %s1694_s25 = sshll.u32 %s462_s16, 2  ;;  %p1696_p12 = scmp.ne.s32.totalorder %s2306_s20, 0 }
  0x60   : > { %s466_s29 = sadd.s32 %s1694_s25, %s464_s23 }
  0x61   : > { %s1695_s27 = sshll.u32 %s466_s29, 3  ;;  %475 = sbr.rel (%p1696_p12) target bundleno = 105 (0x69), region = 84 }
  0x62   : > { %s468_s26 = scalar_lea.vmem %s3029_s0, %s1695_s27 }
  0x66   : > { %vm476_vm0 = vcmask 523264   ;;  %v2344_v0 = vmov 0.0  }
  0x67   : > { %477 = vst.msk [vmem:[#allocation5] sm:$0xff] %vm476_vm0, %v2344_v0  ;;  %478 = vst.msk [vmem:[#allocation5 + $0x8] sm:$0xff] %vm476_vm0, %v2344_v0 }
  0x68   : > { %479 = vst.msk [vmem:[#allocation6] sm:$0xff] %vm476_vm0, %v2344_v0 }
  0x69 PF: > { %p1697_p1 = scmp.le.s32.totalorder %s2306_s20, 0 }
  0x6b   : > { %483 = sbr.rel (%p1697_p1) target bundleno = 114 (0x72), region = 88 }
  0x70   : > { %v484_v1 = vld [vmem:[#allocation7] sm:$0x7]  ;;  %vm485_vm1 = vcmask 518144  }
  0x71   : > { %486 = vst.msk [vmem:[#allocation6 + $0x5] sm:$0x7] %vm485_vm1, %v484_v1 }
  0x72 PF: > { %v2000_v2 = vld [vmem:[%s3030_s1 + $0x8] sm:$0xff]   ;;  %v2345_v3 = vmov 0.0   ;;  %v2001_v4 = vld [vmem:[%s3030_s1] sm:$0xff]   ;;  %vm2346_vm2 = vmmov 0   ;;  %vm506_vm3 = vcmask 261120   ;;  %v2002_v8 = vld [vmem:[%s3034_s5 + $0x18] sm:$0xff]  }
  0x73   : > { %1786 = vmatprep.subr.bf16.mxu0 %v2345_v3  ;;  %1794 = vmatprep.subr.bf16.mxu1 %v2345_v3  ;;  %v487_v5 = vld [vmem:[%s468_s26] sm:$0xff]  ;;  %v488_v6 = vld [vmem:[%s468_s26 + $0x8] sm:$0xff]  ;;  %v2003_v9 = vld [vmem:[%s3034_s5 + $0x10] sm:$0xff]   ;;  %vm619_vm4 = vcmask 523264   ;;  %vm623_vm5 = vcmask 518144   ;;  %vm616_vm6 = vcmask 519168  }
  0x74   : > { %1787 = vmatpush3.bf16.msra.mxu0 %v2000_v2  ;;  %1790 = vmatprep.mubr.msk.bf16.mxu0 %vm2346_vm2, %v2345_v3  ;;  %v489_v7 = vpack.c.bf16 %v488_v6, %v487_v5  ;;  %v2004_v10 = vld [vmem:[%s3034_s5 + $0x8] sm:$0xff]   ;;  %v2005_v11 = vld [vmem:[%s3034_s5] sm:$0xff]   ;;  %v2007_v13 = vld [vmem:[#allocation8] sm:$0xff]   ;;  %s2661_s26 = smov 0  }
  0x75   : > { %1788 = vmatprep.subr.bf16.mxu0 %v2345_v3  ;;  %1798 = vmatprep.mubr.msk.bf16.mxu1 %vm2346_vm2, %v2345_v3  ;;  %v2006_v12 = vld [vmem:[#allocation8 + $0x8] sm:$0xff]   ;;  %v2008_v14 = vld [vmem:[%s3035_s6 + $0x38] sm:$0xff]   ;;  %v2009_v15 = vld [vmem:[%s3035_s6 + $0x30] sm:$0xff]  }
  0x76   : > { %1795 = vmatpush3.bf16.msra.mxu1 %v2006_v12  ;;  %v2010_v16 = vld [vmem:[%s3035_s6 + $0x28] sm:$0xff]   ;;  %v2011_v17 = vld [vmem:[%s3035_s6 + $0x20] sm:$0xff]   ;;  %v2012_v18 = vld [vmem:[%s3035_s6 + $0x18] sm:$0xff]  }
  0x77   : > { %1796 = vmatprep.subr.bf16.mxu1 %v2345_v3  ;;  %v2013_v19 = vld [vmem:[%s3035_s6 + $0x10] sm:$0xff]   ;;  %v1706_v24 = vld [vmem:[#allocation11] ss:$0 sm:$0xff]  ;;  %v1708_v25 = vld [vmem:[#allocation11 + $0x1] ss:$0 sm:$0xff] }
  0x78   : > { %1789 = vmatpush3.bf16.msra.mxu0 %v2001_v4  ;;  %v1707_v26 = vld [vmem:[%s3033_s4] ss:$0 sm:$0xff]  ;;  %v1709_v31 = vld [vmem:[#allocation11 + $0x2] ss:$0 sm:$0xff]  ;;  %v1710_v35 = vld [vmem:[#allocation11 + $0x3] ss:$0 sm:$0xff] }
  0x79   : > { %1802 = vmatprep.subr.bf16.mxu0 %v2345_v3  ;;  %v2014_v1 = vld [vmem:[%s3035_s6 + $0x8] sm:$0xff]   ;;  %v2015_v2 = vld [vmem:[%s3035_s6] sm:$0xff]  }
  0x7a   : > { %1797 = vmatpush3.bf16.msra.mxu1 %v2007_v13 }
  0x7b   : > { %1791 = vmatmul.mubr.msk.bf16.vlgmr.msra.gmra.mxu0 %vm506_vm3, %v489_v7  ;;  %1814 = vmatprep.subr.bf16.mxu1 %v2345_v3 }
  0x7c   : > { %1810 = vmatprep.mubr.msk.bf16.mxu0 %vm2346_vm2, %v2345_v3  ;;  %1803 = vmatpush3.bf16.msra.mxu0 %v2002_v8 }
  0x7d   : > { %1804 = vmatprep.subr.bf16.mxu0 %v2345_v3  ;;  %1799 = vmatmul.mubr.msk.bf16.vlgmr.msra.gmra.mxu1 %vm506_vm3, %v489_v7 }
  0x7e   : > { %1815 = vmatpush3.bf16.msra.mxu1 %v2008_v14  ;;  %1830 = vmatprep.mubr.msk.bf16.mxu1 %vm2346_vm2, %v2345_v3 }
  0x7f   : > { %1816 = vmatprep.subr.bf16.mxu1 %v2345_v3 }
  0x80   : > { %1805 = vmatpush3.bf16.msra.mxu0 %v2003_v9 }
  0x81   : > { %1806 = vmatprep.subr.bf16.mxu0 %v2345_v3 }
  0x82   : > { %1817 = vmatpush3.bf16.msra.mxu1 %v2009_v15  ;;  %v2646_v15 = vld [vmem:[#allocation13] sm:$0xff] }
  0x83   : > { %1818 = vmatprep.subr.bf16.mxu1 %v2345_v3 }
  0x84   : > { %1807 = vmatpush3.bf16.msra.mxu0 %v2004_v10 }
  0x85   : > { %1808 = vmatprep.subr.bf16.mxu0 %v2345_v3 }
  0x86   : > { %1819 = vmatpush3.bf16.msra.mxu1 %v2010_v16  ;;  %v2648_v16 = vld [vmem:[#allocation13 + $0x8] sm:$0xff] }
  0x87   : > { %1820 = vmatprep.subr.bf16.mxu1 %v2345_v3 }
  0x88   : > { %1809 = vmatpush3.bf16.msra.mxu0 %v2005_v11 }
  0x8a   : > { %1821 = vmatpush3.bf16.msra.mxu1 %v2011_v17  ;;  %v2650_v17 = vld [vmem:[#allocation14] ss:$0 sm:$0xff] }
  0x8b   : > { %1822 = vmatprep.subr.bf16.mxu1 %v2345_v3 }
  0x8e   : > { %1823 = vmatpush3.bf16.msra.mxu1 %v2012_v18  ;;  %v919_v18 = vld [vmem:[#allocation5] sm:$0xff]  }
  0x8f   : > { %1824 = vmatprep.subr.bf16.mxu1 %v2345_v3 }
  0x92   : > { %1825 = vmatpush3.bf16.msra.mxu1 %v2013_v19  ;;  %v920_v19 = vld [vmem:[#allocation5 + $0x8] sm:$0xff]  }
  0x93   : > { %1826 = vmatprep.subr.bf16.mxu1 %v2345_v3 }
  0x96   : > { %1827 = vmatpush3.bf16.msra.mxu1 %v2014_v1 }
  0x97   : > { %1828 = vmatprep.subr.bf16.mxu1 %v2345_v3 }
  0x9a   : > { %1829 = vmatpush3.bf16.msra.mxu1 %v2015_v2 }
 0x13b   : > { %v544_v20 = vpop.f32.mrf.mxu0 }
 0x13c   : > { %620 = vst.msk [vmem:[#allocation6 + $0x8] sm:$0xff] %vm619_vm4, %v544_v20  ;;  %v1718_v20 = vld [vmem:[%s3036_s7] ss:$0 sm:$0xff] }
 0x13d   : > { %v1792_v21 = vpop.f32.mrf.mxu0  ;;  %v601_v4 = vpop.f32.mrf.mxu1 }
 0x13e   : > { %v1759_v5 = vpack.c.bf16 %v601_v4, %v601_v4 }
 0x13f   : > { %v547_v22 = vpop.f32.mrf.mxu0  ;;  %v1800_v6 = vpop.f32.mrf.mxu1 }
 0x140   : > { %621 = vst.msk [vmem:[#allocation6 + $0x10] sm:$0xff] %vm619_vm4, %v547_v22 }
 0x141   : > { %v1793_v23 = vpop.f32.mrf.mxu0  ;;  %617 = vst.msk [vmem:[#allocation2] sm:$0xf] %vm616_vm6, %v1759_v5  ;;  %v604_v7 = vpop.f32.mrf.mxu1 }
 0x142   : > { %v1760_v8 = vpack.c.bf16 %v604_v7, %v604_v7 }
 0x143   : > { %v626_v27 = vld [vmem:[#allocation6 + $0x5] sm:$0xff]  ;;  %v1801_v9 = vpop.f32.mrf.mxu1 }
 0x144   : > { %v643_v28 = vld [vmem:[#allocation6 + $0x6] sm:$0xff]  ;;  %v633_v29 = vmul.f32 %v1706_v24, %v626_v27  ;;  %618 = vst.msk [vmem:[#allocation2 + $0x4] sm:$0xf] %vm616_vm6, %v1760_v8 }
 0x145   : > { %v654_v30 = vld [vmem:[#allocation6 + $0x7] sm:$0xff]  ;;  %v650_v33 = vmul.f32 %v1708_v25, %v643_v28 }
 0x146   : > { %v641_v32 = vadd.f32 %v1707_v26, %v633_v29  ;;  %v665_v34 = vld [vmem:[#allocation6 + $0x8] sm:$0xff]  ;;  %v661_v41 = vmul.f32 %v1709_v31, %v654_v30 }
 0x147   : > { %v622_v36 = vld [vmem:[#allocation6 + $0x15] sm:$0x7]  ;;  %v627_v37 = vld [vmem:[#allocation6 + $0xd] sm:$0xff]  ;;  %v672_v46 = vmul.f32 %v1710_v35, %v665_v34 }
 0x148   : > { %v644_v38 = vld [vmem:[#allocation6 + $0xe] sm:$0xff]  ;;  %624 = vst.msk [vmem:[#allocation7] sm:$0x7] %vm623_vm5, %v622_v36  ;;  %v634_v39 = vmul.f32 %v1706_v24, %v627_v37  ;;  %v652_v40 = vadd.f32 %v650_v33, %v641_v32 }
 0x149   : > { %v655_v42 = vld [vmem:[#allocation6 + $0xf] sm:$0xff]  ;;  %v651_v44 = vmul.f32 %v1708_v25, %v644_v38 }
 0x14a   : > { %v642_v43 = vadd.f32 %v1707_v26, %v634_v39  ;;  %v663_v45 = vadd.f32 %v661_v41, %v652_v40  ;;  %v666_v47 = vld [vmem:[#allocation6 + $0x10] sm:$0xff]  ;;  %v662_v49 = vmul.f32 %v1709_v31, %v655_v42 }
 0x14b   : > { %v673_v52 = vmul.f32 %v1710_v35, %v666_v47 }
 0x14c   : > { %v653_v48 = vadd.f32 %v651_v44, %v642_v43  ;;  %v674_v50 = vadd.f32 %v672_v46, %v663_v45 }
 0x14e   : > { %v664_v51 = vadd.f32 %v662_v49, %v653_v48  ;;  %v1711_v53 = vmul.f32 -1.442695, %v674_v50 }
 0x150   : > { %v675_v54 = vadd.f32 %v673_v52, %v664_v51  ;;  %2016 = vpow2.f32 %v1711_v53 }
 0x152   : > { %v1712_v55 = vmul.f32 -1.442695, %v675_v54 }
 0x154   : > { %2018 = vpow2.f32 %v1712_v55 }
 0x15d   : > { %v2017_v56 = vpop.eup %2016 }
 0x15e   : > { %v682_v57 = vadd.f32 1.0, %v2017_v56 }
 0x160   : > { %2020 = vrcp.f32 %v682_v57 }
 0x161   : > { %v2019_v58 = vpop.eup %2018 }
 0x162   : > { %v683_v59 = vadd.f32 1.0, %v2019_v58 }
 0x164   : > { %2022 = vrcp.f32 %v683_v59 }
 0x16d   : > { %v2021_v60 = vpop.eup %2020 }
 0x16e   : > { %v688_v61 = vmul.f32 %v2021_v60, %v674_v50 }
 0x170   : > { %690 = vst.msk [vmem:[#allocation6 + $0x8] sm:$0xff] %vm619_vm4, %v688_v61 }
 0x171   : > { %v2023_v62 = vpop.eup %2022 }
 0x172   : > { %v689_v63 = vmul.f32 %v2023_v62, %v675_v54 }
 0x174   : > { %691 = vst.msk [vmem:[#allocation6 + $0x10] sm:$0xff] %vm619_vm4, %v689_v63  ;;  %v692_v0 = vpack.c.bf16 %v689_v63, %v688_v61 }
 0x176   : > { %1811 = vmatmul.mubr.msk.bf16.vlgmr.msra.gmra.mxu0 %vm619_vm4, %v692_v0 }
 0x236   : > { %v762_v10 = vpop.f32.mrf.mxu0 }
 0x237   : > { %769 = vst [vmem:[#allocation4] sm:$0xff] %v762_v10 }
 0x238   : > { %v1812_v11 = vpop.f32.mrf.mxu0 }
 0x23a   : > { %v765_v12 = vpop.f32.mrf.mxu0 }
 0x23b   : > { %770 = vst [vmem:[#allocation4 + $0x8] sm:$0xff] %v765_v12  ;;  %v771_v13 = vpack.c.bf16 %v765_v12, %v762_v10 }
 0x23c   : > { %v1813_v14 = vpop.f32.mrf.mxu0 }
 0x23d   : > { %1831 = vmatmul.mubr.bf16.vlgmr.msra.gmra.mxu1 %v771_v13 }
 0x2fd   : > { %v877_v21 = vpop.f32.mrf.mxu1 }
 0x2fe   : > { %v878_v22 = vadd.f32 %v1718_v20, %v877_v21 }
 0x2ff   : > { %v1832_v23 = vpop.f32.mrf.mxu1 }
 0x300   : > { %v884_v24 = vand.u32 2147483647, %v878_v22  ;;  %v910_v45 = vmax.f32 %v878_v22, 0.0 }
 0x301   : > { %v880_v25 = vpop.f32.mrf.mxu1 }
 0x302   : > { %v886_v26 = vsub.f32 0.0, %v884_v24  ;;  %v881_v27 = vadd.f32 %v1718_v20, %v880_v25 }
 0x303   : > { %v1833_v28 = vpop.f32.mrf.mxu1 }
 0x304   : > { %v888_v29 = vmul.f32 1.442695, %v886_v26  ;;  %v885_v30 = vand.u32 2147483647, %v881_v27  ;;  %v911_v52 = vmax.f32 %v881_v27, 0.0 }
 0x306   : > { %2024 = vpow2.f32 %v888_v29  ;;  %v887_v31 = vsub.f32 0.0, %v885_v30 }
 0x308   : > { %v890_v32 = vmul.f32 1.442695, %v887_v31 }
 0x30a   : > { %2026 = vpow2.f32 %v890_v32 }
 0x313   : > { %v2025_v33 = vpop.eup %2024 }
 0x314   : > { %v892_v34 = vadd.f32 1.0, %v2025_v33  ;;  %v895_v37 = vmul.f32 -0.5, %v2025_v33  ;;  %v898_v40 = vand.u32 2147483647, %v2025_v33 }
 0x316   : > { %2028 = vlog2.f32 %v892_v34  ;;  %v896_v38 = vadd.f32 1.0, %v895_v37  ;;  %vm899_vm7 = vcmp.lt.f32.partialorder %v898_v40, 0.0004427343 }
 0x317   : > { %v2027_v35 = vpop.eup %2026 }
 0x318   : > { %v901_v36 = vadd.f32 1.0, %v2027_v35  ;;  %v904_v39 = vmul.f32 -0.5, %v2027_v35  ;;  %v897_v43 = vmul.f32 %v2025_v33, %v896_v38  ;;  %v907_v46 = vand.u32 2147483647, %v2027_v35 }
 0x31a   : > { %2030 = vlog2.f32 %v901_v36  ;;  %v905_v44 = vadd.f32 1.0, %v904_v39  ;;  %vm908_vm8 = vcmp.lt.f32.partialorder %v907_v46, 0.0004427343 }
 0x31c   : > { %v906_v51 = vmul.f32 %v2027_v35, %v905_v44 }
 0x323   : > { %v2029_v41 = vpop.eup %2028 }
 0x324   : > { %v894_v42 = vmul.f32 0.6931472, %v2029_v41 }
 0x326   : > { %v900_v47 = vsel %vm899_vm7, %v897_v43, %v894_v42 }
 0x327   : > { %v2031_v48 = vpop.eup %2030  ;;  %v912_v49 = vadd.f32 %v910_v45, %v900_v47 }
 0x328   : > { %v903_v50 = vmul.f32 0.6931472, %v2031_v48 }
 0x329   : > { %914 = vst.msk [vmem:[#allocation3] sm:$0xff] %vm619_vm4, %v912_v49 }
 0x32a   : > { %v909_v53 = vsel %vm908_vm8, %v906_v51, %v903_v50 }
 0x32b   : > { %v913_v54 = vadd.f32 %v911_v52, %v909_v53 }
 0x32d   : > { %915 = vst.msk [vmem:[#allocation3 + $0x8] sm:$0xff] %vm619_vm4, %v913_v54 }
 0x32e LB: >> { %v2347_v55 = vmov 1   ;;  %s2673_s28 = sshll.u32 %s2334_s26, 3  ;;  %v2348_v57 = vmov 0   ;;  %v2349_v60 = vmov 2   ;;  %v2350_v61 = vmov 3   ;;  %s926_s26 = sadd.s32 1, %s2334_s26   ;;  %s2334_s26 = sphi %s2661_s26, %s926_s26   ;;  %v2330_v18 = vphi %v919_v18, %v3061_v18   ;;  %v2326_v19 = vphi %v920_v19, %v3060_v19  }
 0x32f   : >> { %2033 = vset.pattern.permute.xlu1 %v2347_v55  ;;  %s956_s16 = scalar_lea.vmem [#allocation4], %s2673_s28  ;;  %v2351_v0 = vmov 4   ;;  %v2352_v1 = vmov 5   ;;  %v2353_v2 = vmov 6   ;;  %v2354_v4 = vmov 7   ;;  %s930_s22 = scalar_lea.vmem [#allocation3], %s2673_s28 }
 0x330   : >> { %v957_v56 = vld [vmem:[%s956_s16] sm:$0xff]  ;;  %v990_v5 = vlaneseq  ;;  %s2728_s23 = scalar_lea.vmem [#allocation6], %s2673_s28  ;;  %s935_s20 = sshra.s32 %s2673_s28, 3  ;;  %vm1156_vm9 = vcmask 517121   ;;  %vm1285_vm10 = vcmask 520196   ;;  %vm1113_vm11 = vcmask 516096  }
 0x331   : >> { %958 = vxpose.xlu0.b32.start.end [1/1] (short) (narrow) %v957_v56, 32  ;;  %v2731_v29 = vld [vmem:[%s2728_s23 + $0x8] sm:$0xff]  ;;  %s1730_s25 = sshll.u32 %s935_s20, 2  ;;  %vm1199_vm12 = vcmask 518146   ;;  %vm1242_vm13 = vcmask 519171   ;;  %vm1328_vm14 = vcmask 521221  }
 0x332   : >> { %v2697_v6 = vshrl.u32 %v990_v5, 7  ;;  %s938_s29 = scalar_lea.vmem [#allocation2], %s1730_s25  ;;  %vm1371_vm15 = vcmask 522246   ;;  %vm1414_vm0 = vcmask 523271   ;;  %p923_p4 = scmp.ge.s32.totalorder %s926_s26, 2  }
 0x333   : > { %1834 = vmatprep.subr.bf16.mxu0 (%p923_p4), %v2345_v3  ;;  %1842 = vmatprep.mubr.msk.bf16.mxu0 (%p923_p4), %vm2346_vm2, %v2345_v3  ;;  %s1755_s20 = sshll.u32 (%p923_p4), %s2310_s21, 2  ;;  %s1515_s27 = sshll.u32 (%p923_p4), %s2566_s30, 4  ;;  %s2972_s27 = int_to_ptr.vmem [resolvable:$true] %s1515_s27 }
 0x334   : >> { %v992_v7 = vsub.s32 0, %v2697_v6  ;;  %v931_v8 = vld [vmem:[%s930_s22] sm:$0xff]  ;;  %v998_v10 = vsub.s32 1, %v2697_v6  ;;  %v1004_v12 = vsub.s32 2, %v2697_v6  ;;  %v1010_v21 = vsub.s32 3, %v2697_v6  ;;  %s1512_s25 = sadd.s32 (%p923_p4), %s1755_s20, %s2555_s19  ;;  %s2978_s21 = scalar_lea.sflag (%p923_p4), [#allocation10], %s457_s3 }
 0x335   : >> { %v1016_v26 = vsub.s32 4, %v2697_v6  ;;  %v1022_v31 = vsub.s32 5, %v2697_v6  ;;  %v2739_v32 = vmul.f32 %v2731_v29, %v931_v8  ;;  %v1028_v36 = vsub.s32 6, %v2697_v6  ;;  %s2206_s19 = scalar_lea.vmem (%p923_p4), %s2972_s27, 256  ;;  %s2355_s28 = smov (%p923_p4), [#allocation16]  }
 0x336   : >> { %v2702_v9 = vrot.slane %v931_v8, %v992_v7  ;;  %v2711_v13 = vrot.slane %v931_v8, %v998_v10  ;;  %v2713_v20 = vrot.slane %v931_v8, %v1004_v12  ;;  %v2721_v24 = vrot.slane %v931_v8, %v1010_v21  ;;  %p2207_p6 = scmp.ne.s32.totalorder (%p923_p4), %s2972_s27, %s2206_s19  ;;  %s2210_s16 = sshll.u32 (%p923_p4), %s2355_s28, 4  ;;  %s2211_s16 = int_to_ptr.vmem [resolvable:$false] %s2210_s16 }
 0x337   : >> { %v2733_v30 = vrot.slane %v931_v8, %v1016_v26  ;;  %v2743_v35 = vrot.slane %v931_v8, %v1022_v31  ;;  %v2749_v38 = vrot.slane %v2739_v32, %v992_v7  ;;  %v2753_v41 = vrot.slane %v931_v8, %v1028_v36  ;;  %s2212_s22 = scalar_lea.vmem (%p923_p4), %s2211_s16, 512  ;;  %p2213_p9 = scmp.lt.s32.totalorder (%p923_p4), %s2972_s27, %s2211_s16 }
 0x338   : >> { %v994_v11 = vmul.f32 %v2702_v9, %v2646_v15  ;;  %v1000_v22 = vmul.f32 %v2711_v13, %v2646_v15  ;;  %v1006_v23 = vmul.f32 %v2713_v20, %v2646_v15  ;;  %v1012_v28 = vmul.f32 %v2721_v24, %v2646_v15  ;;  %p2208_p5 = pnand (%p923_p4), %p2207_p6, %p2470_p3  ;;  %p2214_p11 = scmp.lt.s32.totalorder (%p923_p4), %s2212_s22, %s2206_s19 }
 0x339   : >> { %v1018_v34 = vmul.f32 %v2733_v30, %v2646_v15  ;;  %v1024_v40 = vmul.f32 %v2743_v35, %v2646_v15  ;;  %v1034_v42 = vsub.s32 7, %v2697_v6  ;;  %v2758_v45 = vrot.slane %v2739_v32, %v998_v10 }
 0x33a   : >> { %v1038_v14 = vmul.f32 1.442695, %v994_v11  ;;  %v1042_v25 = vmul.f32 1.442695, %v1000_v22  ;;  %v1046_v27 = vmul.f32 1.442695, %v1006_v23  ;;  %v1030_v49 = vmul.f32 %v2753_v41, %v2646_v15  ;;  %p2209_p7 = pneg (%p923_p4), %p2208_p5  ;;  %p2215_p8 = por (%p923_p4), %p2214_p11, %p2213_p9 }
 0x33b   : >> { %v1050_v33 = vmul.f32 1.442695, %v1012_v28  ;;  %v1054_v39 = vmul.f32 1.442695, %v1018_v34  ;;  %v1058_v48 = vmul.f32 1.442695, %v1024_v40  ;;  %v2763_v51 = vrot.slane %v931_v8, %v1034_v42 }
 0x33c   : >> { %2062 = vpow2.f32 %v1038_v14  ;;  %v2768_v53 = vrot.slane %v2739_v32, %v1004_v12  ;;  %v2786_v5 = vrot.slane %v2739_v32, %v1016_v26  ;;  %v2797_v22 = vrot.slane %v2739_v32, %v1022_v31  ;;  %p2216_p13 = pnand (%p923_p4), %p2215_p8, %p2209_p7 }
 0x33d   : >> { %2064 = vpow2.f32 %v1042_v25 }
 0x33e   : >> { %2066 = vpow2.f32 %v1046_v27  ;;  %v995_v27 = vmul.f32 %v2702_v9, %v2648_v16  ;;  %v2816_v9 = vrot.slane %v2739_v32, %v1034_v42  ;;  %v1007_v42 = vmul.f32 %v2713_v20, %v2648_v16 }
 0x33f   : >> { %2068 = vpow2.f32 %v1050_v33 }
 0x340   : >> { %2070 = vpow2.f32 %v1054_v39  ;;  %v2808_v39 = vrot.slane %v2739_v32, %v1028_v36 }
 0x341   : >> { %2072 = vpow2.f32 %v1058_v48 }
 0x349   : >> { %v2063_v37 = vpop.eup %2062 }
 0x34a   : >> { %v1086_v43 = vmul.f32 %v2330_v18, %v2063_v37  ;;  %v2065_v50 = vpop.eup %2064 }
 0x34b   : >> { %v2067_v18 = vpop.eup %2066 }
 0x35a   : >> { %2032 = vset.pattern.permute.xlu0 %v2348_v57 }
 0x3ad   : >> { %v974_v58 = vpop.trf.xlu0 }
 0x3ae   : >> { %1116 = vperm.xlu1 %2033, %v974_v58   ;;  %1072 = vperm.xlu0 %2032, %v974_v58  }
 0x3b1   : >> { %v975_v59 = vpop.trf.xlu0 }
 0x3b2   : >> { %2034 = vset.pattern.permute.xlu1 %v2349_v60  ;;  %2050 = vset.pattern.permute.xlu0 %v2350_v61 }
 0x3b3   : >> { %1159 = vperm.xlu1 %2034, %v974_v58  }
 0x3b5   : >> { %v2677_v62 = vpop.trf.xlu0 }
 0x3b6   : >> { %1220 = vperm.xlu0 %2050, %v2677_v62  }
 0x3b7   : >> { %2035 = vset.pattern.permute.xlu1 %v2350_v61 }
 0x3b8   : >> { %1202 = vperm.xlu1 %2035, %v974_v58  }
 0x3b9   : >> { %v2681_v63 = vpop.trf.xlu0 }
 0x3ba   : >> { %2053 = vset.pattern.permute.xlu0 %v2347_v55 }
 0x3bb   : >> { %1138 = vperm.xlu0 %2053, %v2681_v63  }
 0x3bc   : >> { %2036 = vset.pattern.permute.xlu1 %v2351_v0 }
 0x3bd   : >> { %1245 = vperm.xlu1 %2036, %v974_v58  }
 0x3bf   : >> { %2057 = vset.pattern.permute.xlu0 %v2351_v0 }
 0x3c0   : >> { %1267 = vperm.xlu0 %2057, %v2681_v63  }
 0x3c1   : >> { %2037 = vset.pattern.permute.xlu1 %v2352_v1 }
 0x3c2   : >> { %1288 = vperm.xlu1 %2037, %v974_v58  }
 0x3c4   : >> { %2058 = vset.pattern.permute.xlu0 %v2353_v2 }
 0x3c5   : >> { %1349 = vperm.xlu0 %2058, %v2677_v62  }
 0x3c6   : >> { %2038 = vset.pattern.permute.xlu1 %v2353_v2 }
 0x3c7   : >> { %1331 = vperm.xlu1 %2038, %v974_v58  }
 0x3c9   : >> { %2059 = vset.pattern.permute.xlu0 %v2354_v4 }
 0x3ca   : >> { %1374 = vperm.xlu0 %2059, %v974_v58   ;;  %v1036_v58 = vmul.f32 %v2763_v51, %v2646_v15  ;;  %v2099_v15 = vld [vmem:[%s3039_s10 + $0x10] sm:$0xff] (%p923_p4)  }
 0x3cb   : >> { %2039 = vset.pattern.permute.xlu1 %v2348_v57 }
 0x3cc   : >> { %1077 = vperm.xlu1 %2039, %v975_v59  }
 0x3ce   : >> { %1396 = vperm.xlu0 %2059, %v2681_v63  }
 0x3d0   : >> { %2040 = vset.pattern.permute.xlu1 %v2347_v55 }
 0x3d1   : >> { %1120 = vperm.xlu1 %2040, %v975_v59  }
 0x3d5   : >> { %2041 = vset.pattern.permute.xlu1 %v2349_v60 }
 0x3d6   : >> { %1163 = vperm.xlu1 %2041, %v975_v59  }
 0x3da   : >> { %2042 = vset.pattern.permute.xlu1 %v2350_v61 }
 0x3db   : >> { %1206 = vperm.xlu1 %2042, %v975_v59  }
 0x3df   : >> { %2043 = vset.pattern.permute.xlu1 %v2351_v0 }
 0x3e0   : >> { %1249 = vperm.xlu1 %2043, %v975_v59  }
 0x3e4   : >> { %2044 = vset.pattern.permute.xlu1 %v2352_v1 }
 0x3e5   : >> { %1292 = vperm.xlu1 %2044, %v975_v59  }
 0x3e9   : >> { %2045 = vset.pattern.permute.xlu1 %v2353_v2 }
 0x3ea   : >> { %1335 = vperm.xlu1 %2045, %v975_v59  }
 0x3ee   : >> { %2046 = vset.pattern.permute.xlu1 %v2354_v4 }
 0x3ef   : >> { %1378 = vperm.xlu1 %2046, %v975_v59  }
 0x3f3   : >> { %2047 = vset.pattern.permute.xlu1 %v2348_v57 }
 0x3f4   : >> { %1092 = vperm.xlu1 %2047, %v2677_v62  }
 0x3f8   : >> { %2048 = vset.pattern.permute.xlu1 %v2347_v55 }
 0x3f9   : >> { %1134 = vperm.xlu1 %2048, %v2677_v62  }
 0x3fd   : >> { %2049 = vset.pattern.permute.xlu1 %v2349_v60 }
 0x3fe   : >> { %1177 = vperm.xlu1 %2049, %v2677_v62  }
 0x402   : >> { %2051 = vset.pattern.permute.xlu1 %v2351_v0  ;;  %v2069_v0 = vpop.eup %2068 }
 0x403   : >> { %1263 = vperm.xlu1 %2051, %v2677_v62   ;;  %v2071_v10 = vpop.eup %2070 }
 0x404   : >> { %v2073_v23 = vpop.eup %2072 }
 0x407   : >> { %2052 = vset.pattern.permute.xlu1 %v2348_v57  ;;  %v1062_v57 = vmul.f32 1.442695, %v1030_v49  ;;  %v1001_v49 = vmul.f32 %v2711_v13, %v2648_v16  ;;  %v1048_v13 = vmul.f32 1.442695, %v1007_v42  ;;  %v1031_v42 = vmul.f32 %v2753_v41, %v2648_v16 }
 0x408   : >> { %1097 = vperm.xlu1 %2052, %v2681_v63   ;;  %v1037_v41 = vmul.f32 %v2763_v51, %v2648_v16 }
 0x409   : >> { %2074 = vpow2.f32 %v1062_v57 }
 0x40c   : >> { %2054 = vset.pattern.permute.xlu1 %v2349_v60 }
 0x40d   : >> { %1181 = vperm.xlu1 %2054, %v2681_v63  }
 0x411   : >> { %2055 = vset.pattern.permute.xlu1 %v2350_v61 }
 0x412   : >> { %1224 = vperm.xlu1 %2055, %v2681_v63  }
 0x416   : >> { %2056 = vset.pattern.permute.xlu1 %v2352_v1  ;;  %v2075_v37 = vpop.eup %2074 }
 0x417   : >> { %1306 = vperm.xlu1 %2056, %v2677_v62  }
 0x41b   : >> { %1310 = vperm.xlu1 %2056, %v2681_v63  }
 0x41f   : >> { %2060 = vset.pattern.permute.xlu1 %v2353_v2  ;;  %v1066_v2 = vmul.f32 1.442695, %v1036_v58 }
 0x420   : >> { %1353 = vperm.xlu1 %2060, %v2681_v63   ;;  %v2781_v63 = vrot.slane %v2739_v32, %v1010_v21 }
 0x421   : >> { %2076 = vpow2.f32 %v1066_v2 }
 0x424   : >> { %2061 = vset.pattern.permute.xlu1 %v2354_v4 }
 0x425   : >> { %1392 = vperm.xlu1 %2061, %v2677_v62  }
 0x429   : >> { %v1117_v44 = vpop.permute.xlu1 %1116  ;;  %v1073_v46 = vpop.permute.xlu0 %1072 }
 0x42a   : >> { %v1084_v47 = vmul.f32 %v2749_v38, %v1073_v46  ;;  %v1127_v54 = vmul.f32 %v2758_v45, %v1117_v44 }
 0x42c   : >> { %v2765_v52 = vadd.f32 %v1086_v43, %v1084_v47  ;;  %v1040_v43 = vmul.f32 1.442695, %v995_v27 }
 0x42e   : >> { %v1129_v55 = vmul.f32 %v2065_v50, %v2765_v52  ;;  %v1160_v56 = vpop.permute.xlu1 %1159  ;;  %v2077_v48 = vpop.eup %2076  ;;  %2078 = vpow2.f32 %v1040_v43 }
 0x42f   : >> { %v1170_v61 = vmul.f32 %v2768_v53, %v1160_v56  ;;  %v1044_v56 = vmul.f32 1.442695, %v1001_v49 }
 0x430   : >> { %v2774_v59 = vadd.f32 %v1129_v55, %v1127_v54 }
 0x431   : >> { %v2776_v60 = vpop.permute.xlu0 %1220  ;;  %2080 = vpow2.f32 %v1044_v56 }
 0x432   : >> { %v1172_v62 = vmul.f32 %v2067_v18, %v2774_v59  ;;  %2082 = vpow2.f32 %v1048_v13 }
 0x433   : >> { %v1203_v1 = vpop.permute.xlu1 %1202 }
 0x434   : >> { %v2783_v4 = vadd.f32 %v1172_v62, %v1170_v61  ;;  %v1213_v6 = vmul.f32 %v2781_v63, %v1203_v1  ;;  %v2830_v62 = vld [vmem:[%s938_s29] sm:$0xf]  ;;  %s1756_s29 = sshll.u32 (%p923_p4), %s1512_s25, 7 }
 0x435   : > { %s2970_s26 = scalar_lea.hbm (%p923_p4), %s3040_s11, %s1756_s29 }
 0x436   : >> { %v1215_v7 = vmul.f32 %v2069_v0, %v2783_v4  ;;  %v2790_v8 = vpop.permute.xlu0 %1138  ;;  %v1013_v0 = vmul.f32 %v2721_v24, %v2648_v16 }
 0x438   : >> { %v2792_v11 = vadd.f32 %v1215_v7, %v1213_v6  ;;  %v1246_v12 = vpop.permute.xlu1 %1245  ;;  %v940_v7 = vunpack.c.l.bf16 %v2830_v62 }
 0x439   : >> { %v1256_v14 = vmul.f32 %v2786_v5, %v1246_v12 }
 0x43a   : >> { %v1258_v21 = vmul.f32 %v2071_v10, %v2792_v11  ;;  %v1052_v10 = vmul.f32 1.442695, %v1013_v0 }
 0x43b   : >> { %v2799_v25 = vpop.permute.xlu0 %1267  ;;  %v2079_v61 = vpop.eup %2078 }
 0x43c   : >> { %v2801_v26 = vadd.f32 %v1258_v21, %v1256_v14  ;;  %v1087_v2 = vmul.f32 %v2326_v19, %v2079_v61  ;;  %v1731_v14 = vmul.f32 -1.442695, %v940_v7  ;;  %2084 = vpow2.f32 %v1052_v10 }
 0x43d   : >> { %v1289_v28 = vpop.permute.xlu1 %1288 }
 0x43e   : >> { %v1299_v33 = vmul.f32 %v2797_v22, %v1289_v28  ;;  %v1301_v34 = vmul.f32 %v2073_v23, %v2801_v26  ;;  %v2081_v12 = vpop.eup %2080  ;;  %v1019_v23 = vmul.f32 %v2733_v30, %v2648_v16  ;;  %2086 = vpow2.f32 %v1731_v14 }
 0x440   : >> { %v2810_v40 = vadd.f32 %v1301_v34, %v1299_v33  ;;  %v2812_v31 = vpop.permute.xlu0 %1349  ;;  %v1056_v27 = vmul.f32 1.442695, %v1019_v23  ;;  %v2083_v33 = vpop.eup %2082 }
 0x442   : >> { %v1332_v44 = vpop.permute.xlu1 %1331  ;;  %v1344_v46 = vmul.f32 %v2075_v37, %v2810_v40  ;;  %2088 = vpow2.f32 %v1056_v27 }
 0x443   : >> { %v1342_v47 = vmul.f32 %v2808_v39, %v1332_v44 }
 0x445   : >> { %v2821_v36 = vadd.f32 %v1344_v46, %v1342_v47  ;;  %v1375_v50 = vpop.permute.xlu0 %1374 }
 0x446   : >> { %v1385_v18 = vmul.f32 %v2816_v9, %v1375_v50 }
 0x447   : >> { %v1078_v54 = vpop.permute.xlu1 %1077  ;;  %v1387_v55 = vmul.f32 %v2077_v48, %v2821_v36 }
 0x448   : >> { %v1085_v1 = vmul.f32 %v2749_v38, %v1078_v54 }
 0x449   : >> { %v2825_v18 = vadd.f32 %v1387_v55, %v1385_v18   ;;  %v2085_v46 = vpop.eup %2084 }
 0x44a   : >> { %v2837_v20 = vadd.f32 %v1087_v2, %v1085_v1  ;;  %v1064_v1 = vmul.f32 1.442695, %v1031_v42 }
 0x44b   : >> { %v3059_v57 = vmov %v2825_v18  ;;  %v2087_v30 = vpop.eup %2086 }
 0x44c   : >> { %v1121_v32 = vpop.permute.xlu1 %1120  ;;  %v1130_v38 = vmul.f32 %v2081_v12, %v2837_v20  ;;  %v944_v50 = vadd.f32 1.0, %v2087_v30  ;;  %1416 = vst.msk [vmem:[#allocation5] sm:$0xff] (%p923_p4), %vm619_vm4, %v3059_v57 }
 0x44d   : >> { %v1128_v24 = vmul.f32 %v2758_v45, %v1121_v32  ;;  %v1025_v45 = vmul.f32 %v2743_v35, %v2648_v16  ;;  %v2100_v16 = vld [vmem:[%s3039_s10 + $0x8] sm:$0xff] (%p923_p4)  }
 0x44e   : >> { %2090 = vrcp.f32 %v944_v50 }
 0x44f   : >> { %v1132_v28 = vadd.f32 %v1130_v38, %v1128_v24  ;;  %v1060_v54 = vmul.f32 1.442695, %v1025_v45  ;;  %v2089_v55 = vpop.eup %2088  ;;  %v1068_v38 = vmul.f32 1.442695, %v1037_v41 }
 0x451   : >> { %v1164_v58 = vpop.permute.xlu1 %1163  ;;  %v1173_v37 = vmul.f32 %v2083_v33, %v1132_v28  ;;  %v1142_v56 = vmul.f32 %v2790_v8, %v1132_v28  ;;  %2092 = vpow2.f32 %v1060_v54 }
 0x452   : >> { %v1171_v34 = vmul.f32 %v2768_v53, %v1164_v58  ;;  %2094 = vpow2.f32 %v1064_v1 }
 0x453   : >> { %v1144_v61 = vsel %vm619_vm4, %v1142_v56, 0.0  ;;  %2096 = vpow2.f32 %v1068_v38 }
 0x454   : >> { %v2848_v44 = vadd.f32 %v1173_v37, %v1171_v34  ;;  %v2875_v34 = vmul.f32 %v2650_v17, %v2731_v29  ;;  %v2101_v17 = vld [vmem:[%s3039_s10] sm:$0xff] (%p923_p4)  }
 0x456   : >> { %v1207_v6 = vpop.permute.xlu1 %1206  ;;  %v1216_v49 = vmul.f32 %v2085_v46, %v2848_v44 }
 0x457   : >> { %v1214_v48 = vmul.f32 %v2781_v63, %v1207_v6 }
 0x459   : >> { %v2856_v53 = vadd.f32 %v1216_v49, %v1214_v48 }
 0x45b   : >> { %v1250_v21 = vpop.permute.xlu1 %1249  ;;  %v1259_v63 = vmul.f32 %v2089_v55, %v2856_v53 }
 0x45c   : >> { %v1257_v35 = vmul.f32 %v2786_v5, %v1250_v21  ;;  %v2091_v21 = vpop.eup %2090 }
 0x45e   : >> { %v1261_v2 = vadd.f32 %v1259_v63, %v1257_v35  ;;  %v2093_v24 = vpop.eup %2092 }
 0x460   : >> { %v1293_v19 = vpop.permute.xlu1 %1292  ;;  %v1271_v5 = vmul.f32 %v2799_v25, %v1261_v2 }
 0x461   : >> { %v1300_v48 = vmul.f32 %v2797_v22, %v1293_v19  ;;  %v2095_v19 = vpop.eup %2094 }
 0x462   : >> { %v1273_v28 = vsel %vm619_vm4, %v1271_v5, 0.0 }
 0x465   : >> { %v2846_v43 = vpop.permute.xlu1 %1335 }
 0x46a   : >> { %v2850_v47 = vpop.permute.xlu1 %1378 }
 0x46f   : >> { %v1093_v18 = vpop.permute.xlu1 %1092 }
 0x470   : >> { %v1100_v33 = vmul.f32 %v1093_v18, %v2765_v52  ;;  %v1302_v52 = vmul.f32 %v2093_v24, %v1261_v2 }
 0x472   : >> { %v1102_v49 = vsel %vm619_vm4, %v1100_v33, 0.0  ;;  %v1304_v56 = vadd.f32 %v1302_v52, %v1300_v48 }
 0x474   : >> { %v1135_v32 = vpop.permute.xlu1 %1134 }
 0x475   : >> { %v1141_v13 = vmul.f32 %v1135_v32, %v2774_v59 }
 0x477   : >> { %v1143_v58 = vsel %vm619_vm4, %v1141_v13, 0.0 }
 0x478   : >> { %v1145_v0 = vadd.f32 %v1144_v61, %v1143_v58 }
 0x479   : >> { %v1178_v6 = vpop.permute.xlu1 %1177 }
 0x47a   : >> { %v1146_v8 = vrot.slane %v1145_v0, 4  ;;  %v1184_v62 = vmul.f32 %v1178_v6, %v2783_v4  ;;  %v1227_v4 = vmul.f32 %v2776_v60, %v2792_v11  ;;  %v1343_v6 = vmul.f32 %v2808_v39, %v2846_v43 }
 0x47c   : >> { %v1147_v10 = vadd.f32 %v1146_v8, %v1145_v0  ;;  %v1186_v35 = vsel %vm619_vm4, %v1184_v62, 0.0  ;;  %v1345_v0 = vmul.f32 %v2095_v19, %v1304_v56  ;;  %v1229_v5 = vsel %vm619_vm4, %v1227_v4, 0.0 }
 0x47e   : >> { %v1148_v12 = vrot.slane %v1147_v10, 2  ;;  %v1264_v14 = vpop.permute.xlu1 %1263 }
 0x47f   : >> { %v1270_v59 = vmul.f32 %v1264_v14, %v2801_v26  ;;  %v2879_v26 = vmul.f32 %v2091_v21, %v940_v7  ;;  %v2097_v21 = vpop.eup %2096 }
 0x480   : >> { %v1149_v23 = vadd.f32 %v1148_v12, %v1147_v10 }
 0x481   : >> { %v1272_v27 = vsel %vm619_vm4, %v1270_v59, 0.0 }
 0x482   : >> { %v1150_v51 = vrot.slane %v1149_v23, 1  ;;  %v1274_v25 = vadd.f32 %v1273_v28, %v1272_v27 }
 0x483   : >> { %v1098_v37 = vpop.permute.xlu1 %1097 }
 0x484   : >> { %v1151_v46 = vadd.f32 %v1150_v51, %v1149_v23  ;;  %v1275_v30 = vrot.slane %v1274_v25, 4  ;;  %v1101_v45 = vmul.f32 %v1098_v37, %v2837_v20  ;;  %v1347_v23 = vadd.f32 %v1345_v0, %v1343_v6 }
 0x486   : >> { %v1152_v29 = vadd.f32 %v1151_v46, %v2875_v34  ;;  %v1276_v50 = vadd.f32 %v1275_v30, %v1274_v25  ;;  %v1103_v18 = vsel %vm619_vm4, %v1101_v45, 0.0  ;;  %v1388_v25 = vmul.f32 %v2097_v21, %v1347_v23 }
 0x487   : >> { %v1104_v7 = vadd.f32 %v1103_v18, %v1102_v49  ;;  %v1386_v30 = vmul.f32 %v2816_v9, %v2850_v47 }
 0x488   : >> { %v1153_v54 = vmul.f32 %v1152_v29, %v2879_v26  ;;  %v1277_v55 = vrot.slane %v1276_v50, 2  ;;  %v1182_v20 = vpop.permute.xlu1 %1181 }
 0x489   : >> { %v1105_v32 = vrot.slane %v1104_v7, 4  ;;  %v1185_v22 = vmul.f32 %v1182_v20, %v2848_v44 }
 0x48a   : >> { %1735 = vst.msk [vmem:[%s2728_s23 + $0x8] sm:$0x2] %vm1156_vm9, %v1153_v54  ;;  %v1278_v42 = vadd.f32 %v1277_v55, %v1276_v50  ;;  %v1390_v54 = vadd.f32 %v1388_v25, %v1386_v30   ;;  %v1397_v55 = vpop.permute.xlu0 %1396 }
 0x48b   : >> { %v1106_v63 = vadd.f32 %v1105_v32, %v1104_v7  ;;  %v1187_v13 = vsel %vm619_vm4, %v1185_v22, 0.0  ;;  %v1356_v7 = vmul.f32 %v2812_v31, %v2821_v36 }
 0x48c   : >> { %v1279_v58 = vrot.slane %v1278_v42, 1  ;;  %v1188_v61 = vadd.f32 %v1187_v13, %v1186_v35  ;;  %1417 = vst.msk [vmem:[#allocation5 + $0x8] sm:$0xff] (%p923_p4), %vm619_vm4, %v1390_v54 }
 0x48d   : >> { %v1107_v1 = vrot.slane %v1106_v63, 2  ;;  %v1225_v2 = vpop.permute.xlu1 %1224 }
 0x48e   : >> { %v1280_v44 = vadd.f32 %v1279_v58, %v1278_v42  ;;  %v1189_v8 = vrot.slane %v1188_v61, 4  ;;  %v1228_v10 = vmul.f32 %v1225_v2, %v2856_v53  ;;  %v1358_v42 = vsel %vm619_vm4, %v1356_v7, 0.0 }
 0x48f   : >> { %v1108_v41 = vadd.f32 %v1107_v1, %v1106_v63  ;;  %v1400_v63 = vmul.f32 %v1397_v55, %v1390_v54 }
 0x490   : >> { %v1281_v12 = vadd.f32 %v1280_v44, %v2875_v34  ;;  %v1190_v14 = vadd.f32 %v1189_v8, %v1188_v61  ;;  %v1230_v60 = vsel %vm619_vm4, %v1228_v10, 0.0 }
 0x491   : >> { %v1109_v11 = vrot.slane %v1108_v41, 1  ;;  %v1231_v59 = vadd.f32 %v1230_v60, %v1229_v5  ;;  %v1402_v2 = vsel %vm619_vm4, %v1400_v63, 0.0 }
 0x492   : >> { %v1282_v39 = vmul.f32 %v1281_v12, %v2879_v26  ;;  %v1191_v43 = vrot.slane %v1190_v14, 2  ;;  %v1307_v24 = vpop.permute.xlu1 %1306 }
 0x493   : >> { %v1110_v38 = vadd.f32 %v1109_v11, %v1108_v41  ;;  %v1232_v53 = vrot.slane %v1231_v59, 4  ;;  %v1313_v51 = vmul.f32 %v1307_v24, %v2810_v40 }
 0x494   : >> { %1741 = vst.msk [vmem:[%s2728_s23 + $0x8] sm:$0x10] %vm1285_vm10, %v1282_v39  ;;  %v1192_v27 = vadd.f32 %v1191_v43, %v1190_v14 }
 0x495   : >> { %v1111_v28 = vadd.f32 %v1110_v38, %v2875_v34  ;;  %v1233_v33 = vadd.f32 %v1232_v53, %v1231_v59  ;;  %v1315_v50 = vsel %vm619_vm4, %v1313_v51, 0.0 }
 0x496   : >> { %v1193_v37 = vrot.slane %v1192_v27, 1  ;;  %v1311_v46 = vpop.permute.xlu1 %1310 }
 0x497   : >> { %v1112_v45 = vmul.f32 %v1111_v28, %v2879_v26  ;;  %v1234_v48 = vrot.slane %v1233_v33, 2  ;;  %v1314_v52 = vmul.f32 %v1311_v46, %v1304_v56 }
 0x498   : >> { %v1194_v49 = vadd.f32 %v1193_v37, %v1192_v27 }
 0x499   : >> { %1733 = vst.msk [vmem:[%s2728_s23 + $0x8] sm:$0x1] %vm1113_vm11, %v1112_v45  ;;  %v1235_v29 = vadd.f32 %v1234_v48, %v1233_v33  ;;  %v1316_v18 = vsel %vm619_vm4, %v1314_v52, 0.0 }
 0x49a   : >> { %v1195_v40 = vadd.f32 %v1194_v49, %v2875_v34  ;;  %v1317_v62 = vadd.f32 %v1316_v18, %v1315_v50  ;;  %v3061_v18 = vmov %v3059_v57 }
 0x49b   : >> { %v1236_v9 = vrot.slane %v1235_v29, 1  ;;  %v1354_v47 = vpop.permute.xlu1 %1353 }
 0x49c   : >> { %v1196_v20 = vmul.f32 %v1195_v40, %v2879_v26  ;;  %v1318_v56 = vrot.slane %v1317_v62, 4  ;;  %v1357_v32 = vmul.f32 %v1354_v47, %v1347_v23 }
 0x49d   : >> { %v1237_v22 = vadd.f32 %v1236_v9, %v1235_v29 }
 0x49e   : >> { %1737 = vst.msk [vmem:[%s2728_s23 + $0x8] sm:$0x4] %vm1199_vm12, %v1196_v20  ;;  %v1319_v19 = vadd.f32 %v1318_v56, %v1317_v62  ;;  %v1359_v35 = vsel %vm619_vm4, %v1357_v32, 0.0 }
 0x49f   : >> { %v1238_v31 = vadd.f32 %v1237_v22, %v2875_v34  ;;  %v1360_v36 = vadd.f32 %v1359_v35, %v1358_v42 }
 0x4a0   : >> { %v1320_v13 = vrot.slane %v1319_v19, 2  ;;  %v1393_v4 = vpop.permute.xlu1 %1392 }
 0x4a1   : >> { %v1239_v58 = vmul.f32 %v1238_v31, %v2879_v26  ;;  %v1361_v61 = vrot.slane %v1360_v36, 4  ;;  %v1399_v0 = vmul.f32 %v1393_v4, %v3059_v57 }
 0x4a2   : >> { %v1321_v1 = vadd.f32 %v1320_v13, %v1319_v19  ;;  %v3060_v19 = vmov %v1390_v54 }
 0x4a3   : >> { %1739 = vst.msk [vmem:[%s2728_s23 + $0x8] sm:$0x8] %vm1242_vm13, %v1239_v58  ;;  %v1362_v6 = vadd.f32 %v1361_v61, %v1360_v36  ;;  %v1401_v44 = vsel %vm619_vm4, %v1399_v0, 0.0 }
 0x4a4   : >> { %v1322_v8 = vrot.slane %v1321_v1, 1  ;;  %v1403_v10 = vadd.f32 %v1402_v2, %v1401_v44 }
 0x4a5   : >> { %v1363_v41 = vrot.slane %v1362_v6, 2 }
 0x4a6   : >> { %v1323_v5 = vadd.f32 %v1322_v8, %v1321_v1  ;;  %v1404_v12 = vrot.slane %v1403_v10, 4 }
 0x4a7   : >> { %v1364_v14 = vadd.f32 %v1363_v41, %v1362_v6 }
 0x4a8   : >> { %v1324_v60 = vadd.f32 %v1323_v5, %v2875_v34  ;;  %v1405_v11 = vadd.f32 %v1404_v12, %v1403_v10 }
 0x4a9   : >> { %v1365_v59 = vrot.slane %v1364_v14, 1 }
 0x4aa   : >> { %v1325_v21 = vmul.f32 %v1324_v60, %v2879_v26  ;;  %v1406_v23 = vrot.slane %v1405_v11, 2 }
 0x4ab   : >> { %v1366_v39 = vadd.f32 %v1365_v59, %v1364_v14 }
 0x4ac   : >> { %1743 = vst.msk [vmem:[%s2728_s23 + $0x8] sm:$0x20] %vm1328_vm14, %v1325_v21  ;;  %v1407_v43 = vadd.f32 %v1406_v23, %v1405_v11 }
 0x4ad   : >> { %v1367_v24 = vadd.f32 %v1366_v39, %v2875_v34 }
 0x4ae   : >> { %v1408_v38 = vrot.slane %v1407_v43, 1 }
 0x4af   : >> { %v1368_v53 = vmul.f32 %v1367_v24, %v2879_v26 }
 0x4b0   : >> { %v1409_v27 = vadd.f32 %v1408_v38, %v1407_v43 }
 0x4b1   : >> { %1745 = vst.msk [vmem:[%s2728_s23 + $0x8] sm:$0x40] %vm1371_vm15, %v1368_v53 }
 0x4b2   : >> { %v1410_v28 = vadd.f32 %v1409_v27, %v2875_v34  ;;  %v2098_v34 = vld [vmem:[%s3039_s10 + $0x18] sm:$0xff] (%p923_p4)  }
 0x4b3   : > { %925 = sbr.rel (!%p923_p4) target bundleno = 814 (0x32e), region = 142  ;;  %1835 = vmatpush3.bf16.msra.mxu0 (%p923_p4), %v2098_v34 }
 0x4b4   : >> { %v1411_v33 = vmul.f32 %v1410_v28, %v2879_v26  ;;  %1836 = vmatprep.subr.bf16.mxu0 (%p923_p4), %v2345_v3 }
 0x4b6   : >> { %1747 = vst.msk [vmem:[%s2728_s23 + $0x8] sm:$0x80] %vm1414_vm0, %v1411_v33 }
 0x4b7   : > { %1837 = vmatpush3.bf16.msra.mxu0 (%p923_p4), %v2099_v15 }
 0x4b8   : > { %1838 = vmatprep.subr.bf16.mxu0 %v2345_v3 }
 0x4bb   : > { %1839 = vmatpush3.bf16.msra.mxu0 %v2100_v16 }
 0x4bc   : > { %1840 = vmatprep.subr.bf16.mxu0 %v2345_v3 }
 0x4bd   : > { %v1418_v57 = vld [vmem:[#allocation6 + $0x8] sm:$0xff]  ;;  %v1419_v26 = vld [vmem:[#allocation6 + $0x10] sm:$0xff] }
 0x4be   : > { %v1420_v51 = vpack.c.bf16 %v1419_v26, %v1418_v57 }
 0x4bf   : > { %1841 = vmatpush3.bf16.msra.mxu0 %v2101_v17 }
 0x4c2   : > { %1843 = vmatmul.mubr.msk.bf16.vlgmr.msra.gmra.mxu0 %vm619_vm4, %v1420_v51 }
 0x582   : > { %v1490_v25 = vpop.f32.mrf.mxu0 }
 0x583   : > { %1497 = vst.msk [vmem:[%s2566_s30] sm:$0xff] %vm506_vm3, %v1490_v25 }
 0x584   : > { %v1844_v37 = vpop.f32.mrf.mxu0 }
 0x586   : > { %v1493_v3 = vpop.f32.mrf.mxu0 }
 0x587   : > { %1498 = vst.msk [vmem:[%s2566_s30 + $0x8] sm:$0xff] %vm506_vm3, %v1493_v3 }
 0x588   : > { %v1845_v46 = vpop.f32.mrf.mxu0 }
 0x589   : > { %2219 = shalt.err (!%p2216_p13)
}
 0x58a   : > { %s2220_s3 = scalar_lea.hbm %s2970_s26, 256  ;;  %s2224_s20 = scalar_lea.hbm %s3040_s11, 1024 }
 0x58b   : > { %p2221_p2 = scmp.ne.s32.totalorder %s2970_s26, %s2220_s3  ;;  %p2225_p12 = scmp.lt.s32.totalorder %s2970_s26, %s3040_s11 }
 0x58c   : > { %p2226_p1 = scmp.lt.s32.totalorder %s2224_s20, %s2220_s3 }
 0x58d   : > { %p2222_p10 = pnand %p2221_p2, %p2470_p3 }
 0x58e   : > { %p2227_p4 = por %p2226_p1, %p2225_p12 }
 0x58f   : > { %p2223_p0 = pneg %p2222_p10 }
 0x591   : > { %p2228_p6 = pnand %p2227_p4, %p2223_p0 }
 0x593   : > { %2231 = shalt.err (!%p2228_p6)
}
 0x594   : > { %s2356_s14 = smov 128   ;;  %s2357_s15 = smov 8  }
 0x595   : > { %1862 = dma.vmem_to_hbm [thread:$0]  (%p2470_p3), %s2972_s27, 256, %s2970_s26, %s2978_s21, %s2356_s14, %s2356_s14, %s2357_s15  }
 0x596 PF: > { %p1889_p5 = scmp.ge.s32.totalorder %s2322_s24, 2  ;;  %s1530_s19 = sand.u32 1, %s2294_s17  }
 0x597   : > { %p3062_p7 = scmp.ne.s32.totalorder %s3053_s13, 0  ;;  %s1531_s28 = scalar_lea.sflag [#allocation10], %s1530_s19 }
 0x599   : > { %p1878_p9 = pnand %p1889_p5, %p3062_p7 }
 0x59b   : > { %p1879_p11 = pneg %p1878_p9 }
 0x59d   : > { %2289 = dma.done.wait (%p1879_p11), %s1531_s28, 256  }
 0x59e   : > { %2291 = vsyncadd (%p1879_p11), %s1531_s28, 4294967040  ;;  %s27_s24 = sadd.s32 1, %s2322_s24   ;;  %s3063_s16 = sld [smem:[#allocation21_spill]] }
 0x59f   : > { %p24_p8 = scmp.ge.s32.totalorder %s27_s24, 6   ;;  %s3064_s19 = sld [smem:[#allocation26_spill]] }
 0x5a0   : > { %s3065_s20 = sld [smem:[#allocation22_spill]]  ;;  %s3069_s17 = smov %s2298_s18 }
 0x5a1   : > { %s3066_s21 = sld [smem:[#allocation23_spill]]  ;;  %26 = sbr.rel (!%p24_p8) target bundleno = 10 (0xa), region = 153 }
 0x5a2   : > { %s3067_s22 = sld [smem:[#allocation24_spill]] }
 0x5a3   : > { %s3068_s23 = sld [smem:[#allocation25_spill]] }
 0x5a4   : > { %s3070_s18 = smov %s3063_s16 }
 0x5a6   :  { %1536 = vsyncpa [#allocation9], 1 }
 0x5a7   :  { %1538 = vsyncpa [#allocation9 + $0x1], 1 }
 0x5a8   :  { %1539 = vsyncpa [#allocation12], 1 }
 0x5a9   :  { %1540 = vsyncpa [#allocation15], 1 }
 0x5aa   :  { %1541 = vsyncpa [#allocation10], 1 }
 0x5ab   :  { %1543 = vsyncpa [#allocation10 + $0x1], 1 }

</bundles_post_ra>
